<compile_context>
chip_gen: v6e
topology: v6e:2x2x1
jax: 0.10.0
libtpu: 0.0.40
codegen_flags: <defaults>
</compile_context>

<pallas_src>
import jax
import jax.numpy as jnp
from jax.experimental import pallas as pl
from jax.experimental.pallas import tpu as pltpu

_LANE = 512                       # lane-dense last dim for the ragged fallback
_BLOCK_BYTES = 2 * 1024 * 1024    # ~2 MiB per block buffer (x4 buffers = 8 MiB VMEM)


def _round_up(a: int, b: int) -> int:
    return ((a + b - 1) // b) * b


def _num_tensorcores() -> int:
    """2 on v7x (Pallas 'parallel' axes shard across its two TensorCores), else 1."""
    try:
        kind = jax.devices()[0].device_kind.lower()
    except Exception:
        return 1
    return 2 if "v7" in kind else 1


def _make_sine_kernel(omega: float):
    # `omega` is a Python float -> scalar literal in the kernel jaxpr (no captured
    # array constant). Compute in f32 regardless of I/O dtype; cast only the result.
    def kernel(x_ref, o_ref):
        x = x_ref[...].astype(jnp.float32)
        o_ref[...] = jnp.sin(x * omega).astype(o_ref.dtype)

    return kernel


def _sine_2d(slab: jax.Array, omega: float) -> jax.Array:
    """sin(omega * slab) for a 2-D array whose last dim is a multiple of 128."""
    rows, lane = slab.shape
    itemsize = jnp.dtype(slab.dtype).itemsize

    # ~2 MiB per block buffer, multiple of 8 sublanes, never larger than needed.
    tile_rows = max(8, (_BLOCK_BYTES // (lane * itemsize)) // 8 * 8)
    tile_rows = min(tile_rows, _round_up(rows, 8))
    steps = pl.cdiv(rows, tile_rows)

    # On dual-TC chips, aim for a step count that splits evenly across cores.
    cores = _num_tensorcores()
    if cores > 1 and steps % cores != 0 and rows > 8 * cores:
        target_steps = _round_up(steps, cores)
        tile_rows = min(tile_rows, max(8, _round_up(pl.cdiv(rows, target_steps), 8)))
        steps = pl.cdiv(rows, tile_rows)

    return pl.pallas_call(
        _make_sine_kernel(omega),
        out_shape=jax.ShapeDtypeStruct((rows, lane), slab.dtype),
        grid_spec=pl.GridSpec(
            grid=(steps,),
            in_specs=[pl.BlockSpec((tile_rows, lane), lambda i: (i, 0))],
            out_specs=pl.BlockSpec((tile_rows, lane), lambda i: (i, 0)),
        ),
        compiler_params=pltpu.CompilerParams(
            dimension_semantics=("parallel",),
        ),
    )(slab)


def sine(x: jax.Array, omega: float) -> jax.Array:
    """Elementwise sin(omega * x) as a Pallas TPU kernel. Any shape / float dtype."""
    orig_shape = x.shape
    n = x.size
    if n == 0:
        return x
    omega = float(omega)

    # Fast path A: >=2-D with lane-aligned last dim -> collapse leading dims (free).
    if x.ndim >= 2 and x.shape[-1] % 128 == 0:
        lane = x.shape[-1]
        out = _sine_2d(x.reshape(-1, lane), omega)
        return out.reshape(orig_shape)

    # Fast path B: 1-D and lane-aligned -> free reshape to a 2-D slab.
    if x.ndim == 1 and n % 128 == 0:
        lane = _LANE if n % _LANE == 0 else 128
        out = _sine_2d(x.reshape(-1, lane), omega)
        return out.reshape(orig_shape)

    # Ragged fallback: flatten, pad only to the next multiple of _LANE (<= 511 elems).
    flat = jnp.ravel(x)
    n_padded = _round_up(n, _LANE)
    if n_padded != n:
        flat = jnp.pad(flat, (0, n_padded - n))
    out = _sine_2d(flat.reshape(n_padded // _LANE, _LANE), omega)
    if n_padded == n:
        return out.reshape(orig_shape)
    return out.reshape(-1)[:n].reshape(orig_shape)


if __name__ == "__main__":
    omega = 30.0

    # SIREN-style hidden activations (aligned fast path): batch=128, hidden=256.
    x = jax.random.uniform(jax.random.PRNGKey(0), (128, 256),
                           dtype=jnp.float32, minval=-1.0, maxval=1.0)
    out = jax.block_until_ready(sine(x, omega))
    ref = jnp.sin(omega * x)
    assert out.shape == x.shape and out.dtype == x.dtype
    assert jnp.allclose(out, ref, atol=1e-5, rtol=1e-5), "f32 mismatch vs reference"

    # Ragged shape exercising the flatten + minimal-pad fallback.
    x2 = jax.random.uniform(jax.random.PRNGKey(0), (3, 50, 7),
                            dtype=jnp.float32, minval=-1.0, maxval=1.0)
    out2 = jax.block_until_ready(sine(x2, omega))
    ref2 = jnp.sin(omega * x2)
    assert out2.shape == x2.shape and out2.dtype == x2.dtype
    assert jnp.allclose(out2, ref2, atol=1e-5, rtol=1e-5), "ragged mismatch vs reference"

    # bf16 I/O (halves HBM bytes); computed in f32 internally.
    x3 = jax.random.uniform(jax.random.PRNGKey(0), (64, 96),
                            dtype=jnp.float32, minval=-1.0, maxval=1.0).astype(jnp.bfloat16)
    out3 = jax.block_until_ready(sine(x3, omega))
    ref3 = jnp.sin(jnp.float32(omega) * x3.astype(jnp.float32))
    assert out3.shape == x3.shape and out3.dtype == jnp.bfloat16
    assert jnp.allclose(out3.astype(jnp.float32), ref3, atol=2e-2, rtol=2e-2), \
        "bf16 mismatch vs reference"

    print("KERNEL_OK")
</pallas_src>

<mosaic_0001>
module attributes {stable_mosaic.version = 11 : i64} {
  func.func @kernel(%arg0: i32, %arg1: memref<128x256xf32, #tpu.memory_space<vmem>>, %arg2: memref<128x256xf32, #tpu.memory_space<vmem>>) attributes {dimension_semantics = [#tpu.dimension_semantics<parallel>], iteration_bounds = array<i64: 1>, scalar_prefetch = 0 : i64, scratch_operands = 0 : i64, tpu.core_type = #tpu.core_type<tc>, window_params = [{transform_indices = @transform_0, window_bounds = array<i64: 128, 256>}, {transform_indices = @transform_1, window_bounds = array<i64: 128, 256>}]} {
    %c0 = arith.constant 0 : index
    %c0_0 = arith.constant 0 : index
    %0 = vector.load %arg1[%c0, %c0_0] : memref<128x256xf32, #tpu.memory_space<vmem>>, vector<128x256xf32>
    %cst = arith.constant 3.000000e+01 : f32
    %1 = vector.broadcast %cst : f32 to vector<128x256xf32>
    %2 = arith.mulf %0, %1 : vector<128x256xf32>
    %3 = math.sin %2 : vector<128x256xf32>
    %c0_1 = arith.constant 0 : index
    %c0_2 = arith.constant 0 : index
    %4 = vector.load %arg2[%c0_1, %c0_2] : memref<128x256xf32, #tpu.memory_space<vmem>>, vector<128x256xf32>
    tpu.vector_store %arg2[%c0_1, %c0_2], %3 {strides = array<i32>} : memref<128x256xf32, #tpu.memory_space<vmem>>, vector<128x256xf32>,
    return
  }
  func.func @transform_0(%arg0: i32) -> (i32, i32) {
    %c0_i32 = arith.constant 0 : i32
    %c0_i32_0 = arith.constant 0 : i32
    return %arg0, %c0_i32 : i32, i32
  }
  func.func @transform_1(%arg0: i32) -> (i32, i32) {
    %c0_i32 = arith.constant 0 : i32
    %c0_i32_0 = arith.constant 0 : i32
    return %arg0, %c0_i32 : i32, i32
  }
}

</mosaic_0001>

<bundles_post_ra>
// kernel: tpu_custom_call.1
= control target key start
LH: loop header
LB: loop body
LE: loop exit
PB: predicated region body
PF: predicated region fallthrough
CT: control target
= control target key end

     0   :  { %6 = vsyncpa [#allocation3], 0  ;;  %s6550_s0 = inlined_call_operand.hbm [shape: f32[128,256], index: 0, kind: input, shape index: {}]   ;;  %s6551_s1 = inlined_call_operand.hbm [shape: f32[128,256], index: 1, kind: output, shape index: {}]  }
   0x1   :  { %7 = vsyncpa [#allocation4], 0  ;;  %s3902_s6 = smov [#allocation2]  }
   0x2   :  { %s13_s7 = sshll.u32 %s3902_s6, 4  ;;  %s14_s7 = int_to_ptr.vmem [resolvable:$true] %s13_s7 }
   0x3   :  { %s3866_s8 = scalar_lea.vmem %s14_s7, 4096  ;;  %p3871_p1 = scmp.lt.s32.totalorder %s14_s7, %s14_s7 }
   0x4   :  { %p3867_p0 = scmp.ne.s32.totalorder %s14_s7, %s3866_s8  ;;  %p3872_p2 = scmp.lt.s32.totalorder %s3866_s8, %s3866_s8 }
   0x6   :  { %p3873_p3 = por %p3872_p2, %p3871_p1 }
   0x8   :  { %p3874_p4 = pnand %p3873_p3, %p3867_p0 }
   0xa   :  { %3877 = shalt.err (!%p3874_p4)
}
   0xb   :  { %s3903_s9 = smov 256   ;;  %s3904_s10 = smov 16  }
   0xc   :  { %19 = dma.hbm_to_vmem [thread:$0]  %s6550_s0, 4096, %s14_s7, [#allocation3], %s3903_s9, %s3903_s9, %s3904_s10  }
   0xd   :  { %3898 = dma.done.wait [#allocation3], 4096  }
   0xe   :  { %3899 = vsyncadd [#allocation3], 4294963200  ;;  %v23_v0 = vld [vmem:[#allocation2] sm:$0xff]  ;;  %v24_v1 = vld [vmem:[#allocation2 + $0x8] sm:$0xff]  ;;  %v3905_v36 = vmov 683565275  }
   0xf   :  { %v25_v2 = vld [vmem:[#allocation2 + $0x10] sm:$0xff]  ;;  %v3928_v3 = vmul.f32 30.0, %v23_v0  ;;  %v3930_v4 = vmul.f32 30.0, %v24_v1  ;;  %v26_v18 = vld [vmem:[#allocation2 + $0x18] sm:$0xff]  ;;  %v3906_v38 = vmov 2475754826  }
  0x10   :  { %v3932_v5 = vmul.f32 30.0, %v25_v2  ;;  %v3944_v25 = vmul.f32 30.0, %v26_v18  ;;  %v3907_v40 = vmov 2131351028   ;;  %v3908_v42 = vmov 2102212464  }
  0x11   :  { %v87_v6 = vand.u32 2147483647, %v3928_v3  ;;  %v90_v7 = vand.u32 2139095040, %v3928_v3  ;;  %v191_v8 = vand.u32 2147483647, %v3930_v4  ;;  %v194_v9 = vand.u32 2139095040, %v3930_v4 }
  0x12   :  { %v298_v14 = vand.u32 2139095040, %v3932_v5  ;;  %v295_v20 = vand.u32 2147483647, %v3932_v5  ;;  %v3909_v44 = vmov 920167782   ;;  %vm89_vm13 = vcmp.lt.s32.totalorder %v3928_v3, 0 }
  0x13   :  { %v91_v10 = vshrl.u32 %v90_v7, 23  ;;  %v94_v11 = vand.u32 8388607, %v87_v6  ;;  %v195_v12 = vshrl.u32 %v194_v9, 23  ;;  %v198_v13 = vand.u32 8388607, %v191_v8 }
  0x14   :  { %v299_v17 = vshrl.u32 %v298_v14, 23  ;;  %v3948_v30 = vand.u32 8388607, %v295_v20  ;;  %v3910_v52 = vmov 1326507024   ;;  %s3911_s0 = smov [#allocation5]  }
  0x15   :  { %v3464_v15 = vadd.s32 4294967169, %v91_v10  ;;  %v3468_v16 = vadd.s32 4294967169, %v195_v12  ;;  %v95_v21 = vor.u32 8388608, %v94_v11  ;;  %v199_v22 = vor.u32 8388608, %v198_v13  ;;  %s3452_s13 = sshll.u32 %s3911_s0, 4  ;;  %s3453_s13 = int_to_ptr.vmem [resolvable:$true] %s3452_s13 }
  0x16   :  { %v3472_v24 = vadd.s32 4294967169, %v299_v17  ;;  %vm4066_vm15 = vcmp.le.f32.partialorder %v87_v6, 0.7853982  ;;  %s3878_s14 = scalar_lea.vmem %s3453_s13, 4096  ;;  %p3883_p6 = scmp.lt.s32.totalorder %s3453_s13, %s3453_s13 }
  0x17   :  { %v97_v19 = vadd.s32 1, %v3464_v15  ;;  %v201_v23 = vadd.s32 1, %v3468_v16  ;;  %v3950_v31 = vshll.u32 %v95_v21, 8  ;;  %v3952_v33 = vshll.u32 %v199_v22, 8  ;;  %p3879_p5 = scmp.ne.s32.totalorder %s3453_s13, %s3878_s14  ;;  %p3884_p7 = scmp.lt.s32.totalorder %s3878_s14, %s3878_s14 }
  0x18   :  { %v3954_v34 = vadd.s32 1, %v3472_v24 }
  0x19   :  { %vm98_vm0 = vcmp.gt.s32.totalorder %v97_v19, 0  ;;  %vm202_vm1 = vcmp.gt.s32.totalorder %v201_v23, 0  ;;  %p3885_p8 = por %p3884_p7, %p3883_p6 }
  0x1a   :  { %v99_v26 = vsel %vm98_vm0, %v97_v19, 0  ;;  %v203_v29 = vsel %vm202_vm1, %v201_v23, 0  ;;  %vm306_vm6 = vcmp.gt.s32.totalorder %v3954_v34, 0 }
  0x1b   :  { %v100_v27 = vshrl.u32 %v99_v26, 5  ;;  %v101_v28 = vand.u32 31, %v99_v26  ;;  %v205_v32 = vand.u32 31, %v203_v29  ;;  %v3961_v46 = vshrl.u32 %v203_v29, 5  ;;  %p3886_p9 = pnand %p3885_p8, %p3879_p5 }
  0x1d   :  { %v102_v35 = vsub.s32 32, %v101_v28  ;;  %v104_v37 = vshll.u32 %v3905_v36, %v101_v28  ;;  %v107_v39 = vshll.u32 %v3906_v38, %v101_v28  ;;  %v110_v41 = vshll.u32 %v3907_v40, %v101_v28 }
  0x1e   :  { %v113_v43 = vshll.u32 %v3908_v42, %v101_v28  ;;  %v116_v45 = vshll.u32 %v3909_v44, %v101_v28  ;;  %vm119_vm2 = vcmp.lt.s32.totalorder %v100_v27, 1  ;;  %vm120_vm3 = vcmp.lt.s32.totalorder %v100_v27, 2 }
  0x1f   :  { %v103_v47 = vshrl.u32 %v3905_v36, %v102_v35  ;;  %v105_v48 = vshrl.u32 %v3906_v38, %v102_v35  ;;  %v108_v49 = vshrl.u32 %v3907_v40, %v102_v35  ;;  %v111_v50 = vshrl.u32 %v3908_v42, %v102_v35 }
  0x20   :  { %v114_v51 = vshrl.u32 %v3909_v44, %v102_v35  ;;  %v117_v53 = vshrl.u32 %v3910_v52, %v102_v35  ;;  %vm122_vm4 = vcmp.lt.s32.totalorder %v100_v27, 4  ;;  %v206_v57 = vsub.s32 32, %v205_v32 }
  0x21   :  { %v106_v54 = vor.u32 %v105_v48, %v104_v37  ;;  %v109_v55 = vor.u32 %v108_v49, %v107_v39  ;;  %v112_v56 = vor.u32 %v111_v50, %v110_v41  ;;  %vm121_vm5 = vcmp.lt.s32.totalorder %v100_v27, 3 }
  0x22   :  { %v115_v58 = vor.u32 %v114_v51, %v113_v43  ;;  %v118_v59 = vor.u32 %v117_v53, %v116_v45  ;;  %v208_v60 = vshll.u32 %v3905_v36, %v205_v32  ;;  %v211_v9 = vshll.u32 %v3906_v38, %v205_v32 }
  0x23   :  { %v123_v61 = vsel %vm119_vm2, %v103_v47, %v106_v54  ;;  %v124_v62 = vsel %vm122_vm4, %v112_v56, 2102212464  ;;  %v127_v63 = vsel %vm119_vm2, %v106_v54, %v109_v55  ;;  %v131_v0 = vsel %vm119_vm2, %v109_v55, %v112_v56 }
  0x24   :  { %v125_v1 = vsel %vm121_vm5, %v109_v55, %v124_v62  ;;  %v128_v2 = vsel %vm122_vm4, %v115_v58, 920167782  ;;  %v132_v7 = vsel %vm122_vm4, %v118_v59, 1326507024  ;;  %v207_v12 = vshrl.u32 %v3905_v36, %v206_v57 }
  0x25   :  { %v129_v10 = vsel %vm121_vm5, %v112_v56, %v128_v2  ;;  %v133_v11 = vsel %vm121_vm5, %v115_v58, %v132_v7  ;;  %v209_v13 = vshrl.u32 %v3906_v38, %v206_v57  ;;  %v126_v14 = vsel %vm120_vm3, %v123_v61, %v125_v1  ;;  %v27_v1 = vld [vmem:[#allocation2 + $0x20] sm:$0xff] }
  0x26   :  { %v130_v15 = vsel %vm120_vm3, %v127_v63, %v129_v10  ;;  %v134_v16 = vsel %vm120_vm3, %v131_v0, %v133_v11  ;;  %v212_v17 = vshrl.u32 %v3907_v40, %v206_v57  ;;  %v214_v26 = vshll.u32 %v3907_v40, %v205_v32  ;;  %v28_v10 = vld [vmem:[#allocation2 + $0x28] sm:$0xff] }
  0x27   :  { %v3982_v18 = vmul.u32.u64.low %v3950_v31, %v134_v16  ;;  %v3983_v19 = vmul.u32.u64.high %v3950_v31, %v134_v16, %v3982_v18  ;;  %v3986_v21 = vmul.u32.u64.low %v3950_v31, %v130_v15  ;;  %v3987_v22 = vmul.u32.u64.high %v3950_v31, %v130_v15, %v3986_v21 }
  0x28   :  { %v210_v23 = vor.u32 %v209_v13, %v208_v60  ;;  %v213_v24 = vor.u32 %v212_v17, %v211_v9  ;;  %v215_v28 = vshrl.u32 %v3908_v42, %v206_v57  ;;  %v217_v27 = vshll.u32 %v3908_v42, %v205_v32 }
  0x29   :  { %v218_v29 = vshrl.u32 %v3909_v44, %v206_v57  ;;  %v220_v35 = vshll.u32 %v3909_v44, %v205_v32  ;;  %v221_v37 = vshrl.u32 %v3910_v52, %v206_v57  ;;  %v142_v39 = vmul.u32 %v3950_v31, %v126_v14 }
  0x2a   :  { %v216_v41 = vor.u32 %v215_v28, %v214_v26  ;;  %vm223_vm7 = vcmp.lt.s32.totalorder %v3961_v46, 1  ;;  %vm224_vm8 = vcmp.lt.s32.totalorder %v3961_v46, 2  ;;  %vm144_vm9 = vc.u32 %v3983_v19, %v3986_v21 }
  0x2b   :  { %v145_v43 = vadd.s32 1, %v3987_v22  ;;  %v219_v45 = vor.u32 %v218_v29, %v217_v27  ;;  %vm225_vm10 = vcmp.lt.s32.totalorder %v3961_v46, 3  ;;  %v222_v47 = vor.u32 %v221_v37, %v220_v35 }
  0x2c   :  { %vm226_vm11 = vcmp.lt.s32.totalorder %v3961_v46, 4  ;;  %v227_v32 = vsel %vm223_vm7, %v207_v12, %v210_v23  ;;  %v231_v48 = vsel %vm223_vm7, %v210_v23, %v213_v24  ;;  %v235_v51 = vsel %vm223_vm7, %v213_v24, %v216_v41 }
  0x2d   :  { %v146_v31 = vsel %vm144_vm9, %v145_v43, %v3987_v22  ;;  %v228_v49 = vsel %vm226_vm11, %v216_v41, 2102212464  ;;  %v232_v50 = vsel %vm226_vm11, %v219_v45, 920167782  ;;  %v236_v56 = vsel %vm226_vm11, %v222_v47, 1326507024 }
  0x2e   :  { %v147_v53 = vadd.s32 %v146_v31, %v142_v39  ;;  %v229_v54 = vsel %vm225_vm10, %v213_v24, %v228_v49  ;;  %v233_v55 = vsel %vm225_vm10, %v216_v41, %v232_v50  ;;  %v237_v59 = vsel %vm225_vm10, %v219_v45, %v236_v56 }
  0x2f   :  { %v230_v57 = vsel %vm224_vm8, %v227_v32, %v229_v54  ;;  %v234_v58 = vsel %vm224_vm8, %v231_v48, %v233_v55  ;;  %v307_v60 = vsel %vm306_vm6, %v3954_v34, 0  ;;  %v238_v62 = vsel %vm224_vm8, %v235_v51, %v237_v59 }
  0x30   :  { %v148_v61 = vadd.s32 536870912, %v147_v53  ;;  %v4015_v63 = vmul.u32.u64.low %v3952_v33, %v234_v58  ;;  %v4016_v0 = vmul.u32.u64.high %v3952_v33, %v234_v58, %v4015_v63  ;;  %v303_v9 = vor.u32 8388608, %v3948_v30 }
  0x31   :  { %v4020_v2 = vmul.u32.u64.low %v3952_v33, %v238_v62  ;;  %v4021_v7 = vmul.u32.u64.high %v3952_v33, %v238_v62, %v4020_v2  ;;  %v309_v12 = vand.u32 31, %v307_v60  ;;  %v399_v34 = vand.u32 2147483647, %v3944_v25 }
  0x32   :  { %v149_v11 = vshrl.u32 %v148_v61, 30  ;;  %v246_v46 = vmul.u32 %v3952_v33, %v230_v57  ;;  %v4026_v13 = vmul.f32 30.0, %v27_v1  ;;  %v249_v15 = vadd.s32 1, %v4016_v0 }
  0x33   :  { %v310_v16 = vsub.s32 32, %v309_v12  ;;  %v4029_v17 = vmul.f32 30.0, %v28_v10  ;;  %vm248_vm12 = vc.u32 %v4021_v7, %v4015_v63  ;;  %v4033_v18 = vshll.u32 %v303_v9, 8 }
  0x34   :  { %v150_v14 = vshll.u32 %v149_v11, 30  ;;  %v402_v30 = vand.u32 2139095040, %v3944_v25  ;;  %v250_v33 = vsel %vm248_vm12, %v249_v15, %v4016_v0  ;;  %v4040_v23 = vshrl.u32 %v307_v60, 5 }
  0x35   :  { %v4044_v24 = vand.u32 8388607, %v399_v34  ;;  %v251_v26 = vadd.s32 %v250_v33, %v246_v46  ;;  %v312_v28 = vshll.u32 %v3905_v36, %v309_v12  ;;  %v313_v27 = vshrl.u32 %v3906_v38, %v310_v16 }
  0x36   :  { %v4037_v22 = vsub.s32 %v147_v53, %v150_v14  ;;  %v315_v29 = vshll.u32 %v3906_v38, %v309_v12  ;;  %v316_v37 = vshrl.u32 %v3907_v40, %v310_v16  ;;  %v318_v39 = vshll.u32 %v3907_v40, %v309_v12 }
  0x37   :  { %v319_v41 = vshrl.u32 %v3908_v42, %v310_v16  ;;  %v143_v43 = vadd.s32 %v3986_v21, %v3983_v19  ;;  %v252_v45 = vadd.s32 536870912, %v251_v26  ;;  %v321_v47 = vshll.u32 %v3908_v42, %v309_v12 }
  0x38   :  { %v153_v35 = vsub.s32 0, %v4037_v22  ;;  %v403_v32 = vshrl.u32 %v402_v30, 23  ;;  %v173_v31 = vsub.s32 4, %v149_v11  ;;  %v322_v49 = vshrl.u32 %v3909_v44, %v310_v16 }
  0x39   :  { %vm330_vm14 = vcmp.lt.s32.totalorder %v4040_v23, 4  ;;  %v4059_v50 = vshrl.u32 %v252_v45, 30  ;;  %v311_v51 = vshrl.u32 %v3905_v36, %v310_v16  ;;  %v324_v53 = vshll.u32 %v3909_v44, %v309_v12 }
  0x3a   :  { %v3465_v48 = vmin.u32 %v153_v35, %v4037_v22  ;;  %v325_v54 = vshrl.u32 %v3910_v52, %v310_v16  ;;  %v314_v55 = vor.u32 %v313_v27, %v312_v28  ;;  %v317_v56 = vor.u32 %v316_v37, %v315_v29 }
  0x3b   :  { %v320_v57 = vor.u32 %v319_v41, %v318_v39  ;;  %v254_v58 = vshll.u32 %v4059_v50, 30  ;;  %v323_v59 = vor.u32 %v322_v49, %v321_v47  ;;  %vm327_vm0 = vcmp.lt.s32.totalorder %v4040_v23, 1 }
  0x3c   :  { %v155_v21 = vclz %v3465_v48  ;;  %vm329_vm1 = vcmp.lt.s32.totalorder %v4040_v23, 3  ;;  %v326_v61 = vor.u32 %v325_v54, %v324_v53  ;;  %v3476_v6 = vadd.s32 4294967169, %v403_v32 }
  0x3d   :  { %v332_v62 = vsel %vm330_vm14, %v320_v57, 2102212464  ;;  %v174_v0 = vsel %vm89_vm13, %v173_v31, %v149_v11  ;;  %v4077_v1 = vsub.s32 %v251_v26, %v254_v58  ;;  %vm328_vm2 = vcmp.lt.s32.totalorder %v4040_v23, 2 }
  0x3e   :  { %v3466_v60 = vadd.s32 4294967294, %v155_v21  ;;  %v336_v2 = vsel %vm330_vm14, %v323_v59, 920167782  ;;  %v331_v9 = vsel %vm327_vm0, %v311_v51, %v314_v55  ;;  %v335_v10 = vsel %vm327_vm0, %v314_v55, %v317_v56 }
  0x3f   :  { %v337_v12 = vsel %vm329_vm1, %v320_v57, %v336_v2  ;;  %v257_v11 = vsub.s32 0, %v4077_v1  ;;  %v333_v14 = vsel %vm329_vm1, %v317_v56, %v332_v62  ;;  %v339_v15 = vsel %vm327_vm0, %v317_v56, %v320_v57 }
  0x40   :  { %vm3467_vm3 = vcmp.lt.s32.totalorder %v3466_v60, 0  ;;  %v340_v26 = vsel %vm330_vm14, %v326_v61, 1326507024  ;;  %v338_v27 = vsel %vm328_vm2, %v335_v10, %v337_v12  ;;  %v407_v35 = vor.u32 8388608, %v4044_v24 }
  0x41   :  { %v158_v46 = vsel %vm3467_vm3, 0, %v3466_v60  ;;  %v3469_v28 = vmin.u32 %v257_v11, %v4077_v1  ;;  %v341_v29 = vsel %vm329_vm1, %v323_v59, %v340_v26  ;;  %v176_v45 = vsel %vm4066_vm15, 0, %v174_v0 }
  0x42   :  { %v159_v16 = vsub.s32 32, %v158_v46  ;;  %v160_v30 = vshll.u32 %v4037_v22, %v158_v46  ;;  %v163_v33 = vsub.s32 4294967266, %v158_v46  ;;  %v342_v41 = vsel %vm328_vm2, %v339_v15, %v341_v29 }
  0x43   :  { %v409_v22 = vadd.s32 1, %v3476_v6  ;;  %v259_v47 = vclz %v3469_v28  ;;  %v334_v32 = vsel %vm328_vm2, %v331_v9, %v333_v14  ;;  %v503_v48 = vand.u32 2147483647, %v4026_v13 }
  0x44   :  { %v161_v37 = vshrl.u32 %v143_v43, %v159_v16  ;;  %v164_v39 = vadd.s32 127, %v163_v33  ;;  %v4110_v51 = vmul.u32.u64.low %v4033_v18, %v342_v41  ;;  %v4111_v24 = vmul.u32.u64.high %v4033_v18, %v342_v41, %v4110_v51 }
  0x45   :  { %v3470_v43 = vadd.s32 4294967294, %v259_v47  ;;  %v4114_v53 = vmul.u32.u64.low %v4033_v18, %v338_v27  ;;  %v4115_v54 = vmul.u32.u64.high %v4033_v18, %v338_v27, %v4114_v53  ;;  %vm410_vm4 = vcmp.gt.s32.totalorder %v409_v22, 0 }
  0x46   :  { %v162_v31 = vor.u32 %v161_v37, %v160_v30  ;;  %v165_v49 = vshll.u32 %v164_v39, 23  ;;  %v411_v56 = vsel %vm410_vm4, %v409_v22, 0  ;;  %v4118_v23 = vshll.u32 %v407_v35, 8 }
  0x47   :  { %v180_v57 = vadd.s32 3, %v176_v45  ;;  %v247_v58 = vadd.s32 %v4015_v63, %v4021_v7  ;;  %vm3471_vm5 = vcmp.lt.s32.totalorder %v3470_v43, 0  ;;  %v413_v59 = vand.u32 31, %v411_v56 }
  0x48   :  { %v166_v21 = vor.u32 4788187, %v165_v49  ;;  %v169_v55 = vcvt.s32.f32 %v162_v31  ;;  %v262_v61 = vsel %vm3471_vm5, 0, %v3470_v43  ;;  %v350_v62 = vmul.u32 %v4033_v18, %v334_v32 }
  0x49   :  { %vm352_vm6 = vc.u32 %v4111_v24, %v4114_v53  ;;  %v263_v6 = vsub.s32 32, %v262_v61  ;;  %v264_v0 = vshll.u32 %v4077_v1, %v262_v61  ;;  %v267_v2 = vsub.s32 4294967266, %v262_v61 }
  0x4a   :  { %v167_v60 = vand.u32 2147483647, %v166_v21  ;;  %v353_v9 = vadd.s32 1, %v4115_v54  ;;  %vm193_vm7 = vcmp.lt.s32.totalorder %v3930_v4, 0  ;;  %v277_v63 = vsub.s32 4, %v4059_v50 }
  0x4b   :  { %v4129_v7 = vshrl.u32 %v411_v56, 5  ;;  %v414_v12 = vsub.s32 32, %v413_v59  ;;  %v265_v46 = vshrl.u32 %v247_v58, %v263_v6  ;;  %v268_v11 = vadd.s32 127, %v267_v2 }
  0x4c   :  { %v170_v10 = vmul.f32 %v169_v55, %v167_v60  ;;  %v354_v18 = vsel %vm352_vm6, %v353_v9, %v4115_v54  ;;  %v416_v14 = vshll.u32 %v3905_v36, %v413_v59  ;;  %v419_v30 = vshll.u32 %v3906_v38, %v413_v59 }
  0x4d   :  { %v355_v16 = vadd.s32 %v354_v18, %v350_v62  ;;  %v417_v1 = vshrl.u32 %v3906_v38, %v414_v12  ;;  %vm4137_vm8 = vcmp.le.f32.partialorder %v191_v8, 0.7853982  ;;  %v266_v26 = vor.u32 %v265_v46, %v264_v0 }
  0x4e   :  { %v171_v15 = vxor.u32 2147483648, %v170_v10  ;;  %v269_v28 = vshll.u32 %v268_v11, 23  ;;  %v420_v27 = vshrl.u32 %v3907_v40, %v414_v12  ;;  %v422_v29 = vshll.u32 %v3907_v40, %v413_v59 }
  0x4f   :  { %v356_v37 = vadd.s32 536870912, %v355_v16  ;;  %v423_v39 = vshrl.u32 %v3908_v42, %v414_v12  ;;  %v425_v41 = vshll.u32 %v3908_v42, %v413_v59  ;;  %v273_v45 = vcvt.s32.f32 %v266_v26 }
  0x50   :  { %v172_v35 = vsel %vm89_vm13, %v171_v15, %v170_v10  ;;  %v270_v22 = vor.u32 4788187, %v269_v28  ;;  %v418_v47 = vor.u32 %v417_v1, %v416_v14  ;;  %v421_v31 = vor.u32 %v420_v27, %v419_v30 }
  0x51   :  { %v175_v8 = vsel %vm4066_vm15, %v3928_v3, %v172_v35  ;;  %v357_v32 = vshrl.u32 %v356_v37, 30  ;;  %v426_v49 = vshrl.u32 %v3909_v44, %v414_v12  ;;  %v428_v43 = vshll.u32 %v3909_v44, %v413_v59 }
  0x52   :  { %3730 = vcosq.f32 %v175_v8  ;;  %v271_v51 = vand.u32 2147483647, %v270_v22  ;;  %v429_v54 = vshrl.u32 %v3910_v52, %v414_v12  ;;  %v4153_v21 = vand.u32 3, %v180_v57 }
  0x53   :  { %3732 = vsinq.f32 %v175_v8  ;;  %vm297_vm9 = vcmp.lt.s32.totalorder %v3932_v5, 0  ;;  %v358_v19 = vshll.u32 %v357_v32, 30  ;;  %v427_v55 = vor.u32 %v426_v49, %v425_v41 }
  0x54   :  { %vm431_vm10 = vcmp.lt.s32.totalorder %v4129_v7, 1  ;;  %v274_v56 = vmul.f32 %v273_v45, %v271_v51  ;;  %v278_v58 = vsel %vm193_vm7, %v277_v63, %v4059_v50  ;;  %v415_v60 = vshrl.u32 %v3905_v36, %v414_v12 }
  0x55   :  { %v424_v61 = vor.u32 %v423_v39, %v422_v29  ;;  %v4161_v62 = vsub.s32 %v355_v16, %v358_v19  ;;  %v430_v59 = vor.u32 %v429_v54, %v428_v43  ;;  %vm433_vm11 = vcmp.lt.s32.totalorder %v4129_v7, 3 }
  0x56   :  { %vm434_vm12 = vcmp.lt.s32.totalorder %v4129_v7, 4  ;;  %v275_v57 = vxor.u32 2147483648, %v274_v56  ;;  %vm4167_vm13 = vcmp.le.f32.partialorder %v295_v20, 0.7853982  ;;  %vm432_vm14 = vcmp.lt.s32.totalorder %v4129_v7, 2 }
  0x57   :  { %v436_v50 = vsel %vm434_vm12, %v424_v61, 2102212464  ;;  %v439_v0 = vsel %vm431_vm10, %v418_v47, %v421_v31  ;;  %v280_v2 = vsel %vm4137_vm8, 0, %v278_v58  ;;  %v361_v9 = vsub.s32 0, %v4161_v62 }
  0x58   :  { %v381_v10 = vsub.s32 4, %v357_v32  ;;  %v440_v20 = vsel %vm434_vm12, %v427_v55, 920167782  ;;  %v276_v63 = vsel %vm193_vm7, %v275_v57, %v274_v56  ;;  %v435_v12 = vsel %vm431_vm10, %v415_v60, %v418_v47 }
  0x59   :  { %v437_v46 = vsel %vm433_vm11, %v421_v31, %v436_v50  ;;  %v441_v11 = vsel %vm433_vm11, %v424_v61, %v440_v20  ;;  %vm179_vm15 = vweird.f32 %v3928_v3  ;;  %v279_v18 = vsel %vm4137_vm8, %v3930_v4, %v276_v63 }
  0x5a   :  { %v3473_v14 = vmin.u32 %v361_v9, %v4161_v62  ;;  %v442_v15 = vsel %vm432_vm14, %v439_v0, %v441_v11  ;;  %v443_v16 = vsel %vm431_vm10, %v421_v31, %v424_v61  ;;  %3734 = vcosq.f32 %v279_v18 }
  0x5b   :  { %v444_v1 = vsel %vm434_vm12, %v430_v59, 1326507024  ;;  %v4201_v30 = vmul.u32.u64.low %v4118_v23, %v442_v15  ;;  %v4202_v26 = vmul.u32.u64.high %v4118_v23, %v442_v15, %v4201_v30  ;;  %vm182_vm0 = vcmp.lt.s32.totalorder %v4153_v21, 2 }
  0x5c   :  { %vm183_vm1 = vcmp.eq.s32.totalorder %v4153_v21, 0  ;;  %3736 = vsinq.f32 %v279_v18  ;;  %v363_v33 = vclz %v3473_v14  ;;  %vm186_vm2 = vcmp.eq.s32.totalorder %v4153_v21, 2 }
  0x5d   :  { %v382_v28 = vsel %vm297_vm9, %v381_v10, %v357_v32  ;;  %v445_v27 = vsel %vm433_vm11, %v427_v55, %v444_v1  ;;  %v506_v29 = vand.u32 2139095040, %v4026_v13  ;;  %v284_v35 = vadd.s32 3, %v280_v2 }
  0x5e   :  { %v3474_v37 = vadd.s32 4294967294, %v363_v33  ;;  %v438_v39 = vsel %vm432_vm14, %v435_v12, %v437_v46  ;;  %v446_v41 = vsel %vm432_vm14, %v443_v16, %v445_v27  ;;  %v351_v22 = vadd.s32 %v4114_v53, %v4111_v24 }
  0x5f   :  { %v3731_v8 = vpop.eup %3730  ;;  %v4220_v45 = vmul.u32.u64.low %v4118_v23, %v446_v41  ;;  %v4221_v47 = vmul.u32.u64.high %v4118_v23, %v446_v41, %v4220_v45  ;;  %v507_v32 = vshrl.u32 %v506_v29, 23  ;;  %v384_v51 = vsel %vm4167_vm13, 0, %v382_v28 }
  0x60   :  { %v3733_v31 = vpop.eup %3732  ;;  %v187_v49 = vxor.u32 2147483648, %v3731_v8  ;;  %vm3475_vm3 = vcmp.lt.s32.totalorder %v3474_v37, 0  ;;  %v457_v43 = vadd.s32 1, %v4202_v26  ;;  %v454_v19 = vmul.u32 %v4118_v23, %v438_v39 }
  0x61   :  { %v184_v54 = vxor.u32 2147483648, %v3733_v31  ;;  %v366_v7 = vsel %vm3475_vm3, 0, %v3474_v37  ;;  %v3480_v55 = vadd.s32 4294967169, %v507_v32  ;;  %v285_v61 = vand.u32 3, %v284_v35 }
  0x62   :  { %v188_v24 = vsel %vm186_vm2, %v187_v49, %v3733_v31  ;;  %v367_v53 = vsub.s32 32, %v366_v7  ;;  %v368_v56 = vshll.u32 %v4161_v62, %v366_v7  ;;  %v371_v58 = vsub.s32 4294967266, %v366_v7 }
  0x63   :  { %v185_v60 = vsel %vm183_vm1, %v3731_v8, %v184_v54  ;;  %vm456_vm4 = vc.u32 %v4221_v47, %v4201_v30  ;;  %v513_v59 = vadd.s32 1, %v3480_v55  ;;  %v388_v62 = vadd.s32 3, %v384_v51 }
  0x64   :  { %v189_v57 = vsel %vm182_vm0, %v185_v60, %v188_v24  ;;  %v369_v23 = vshrl.u32 %v351_v22, %v367_v53  ;;  %v372_v50 = vadd.s32 127, %v371_v58  ;;  %v458_v0 = vsel %vm456_vm4, %v457_v43, %v4202_v26 }
  0x65   :  { %v190_v2 = vsel %vm179_vm15, nan, %v189_v57  ;;  %v459_v9 = vadd.s32 %v458_v0, %v454_v19  ;;  %vm514_vm5 = vcmp.gt.s32.totalorder %v513_v59, 0  ;;  %v510_v63 = vand.u32 8388607, %v503_v48 }
  0x66   :  { %v370_v10 = vor.u32 %v369_v23, %v368_v56  ;;  %v373_v20 = vshll.u32 %v372_v50, 23  ;;  %v515_v12 = vsel %vm514_vm5, %v513_v59, 0  ;;  %3415 = vst [vmem:[#allocation5] sm:$0xff] %v190_v2  ;;  %vm283_vm6 = vweird.f32 %v3930_v4 }
  0x67   :  { %vm286_vm7 = vcmp.lt.s32.totalorder %v285_v61, 2  ;;  %v460_v21 = vadd.s32 536870912, %v459_v9  ;;  %v517_v46 = vand.u32 31, %v515_v12  ;;  %v3735_v11 = vpop.eup %3734  ;;  %vm287_vm8 = vcmp.eq.s32.totalorder %v285_v61, 0 }
  0x68   :  { %vm290_vm10 = vcmp.eq.s32.totalorder %v285_v61, 2  ;;  %v374_v3 = vor.u32 4788187, %v373_v20  ;;  %v377_v18 = vcvt.s32.f32 %v370_v10  ;;  %v291_v15 = vxor.u32 2147483648, %v3735_v11 }
  0x69   :  { %v3737_v14 = vpop.eup %3736  ;;  %v4242_v16 = vand.u32 3, %v388_v62  ;;  %v461_v1 = vshrl.u32 %v460_v21, 30  ;;  %v518_v26 = vsub.s32 32, %v517_v46  ;;  %v511_v27 = vor.u32 8388608, %v510_v63 }
  0x6a   :  { %v288_v33 = vxor.u32 2147483648, %v3737_v14  ;;  %v375_v28 = vand.u32 2147483647, %v374_v3  ;;  %v607_v29 = vand.u32 2147483647, %v4029_v17  ;;  %v292_v35 = vsel %vm290_vm10, %v291_v15, %v3737_v14 }
  0x6b   :  { %v4247_v37 = vadd.s32 %v4201_v30, %v4221_v47  ;;  %v462_v39 = vshll.u32 %v461_v1, 30  ;;  %v520_v41 = vshll.u32 %v3905_v36, %v517_v46  ;;  %v516_v45 = vshrl.u32 %v515_v12, 5 }
  0x6c   :  { %v289_v8 = vsel %vm287_vm8, %v3735_v11, %v288_v33  ;;  %v378_v22 = vmul.f32 %v377_v18, %v375_v28  ;;  %v521_v32 = vshrl.u32 %v3906_v38, %v518_v26  ;;  %v523_v51 = vshll.u32 %v3906_v38, %v517_v46 }
  0x6d   :  { %v293_v31 = vsel %vm286_vm7, %v289_v8, %v292_v35  ;;  %v4253_v49 = vsub.s32 %v459_v9, %v462_v39  ;;  %v524_v43 = vshrl.u32 %v3907_v40, %v518_v26  ;;  %vm401_vm11 = vcmp.lt.s32.totalorder %v3944_v25, 0  ;;  %v29_v35 = vld [vmem:[#allocation2 + $0x30] sm:$0xff]  ;;  %v30_v39 = vld [vmem:[#allocation2 + $0x38] sm:$0xff] }
  0x6e   :  { %v294_v30 = vsel %vm283_vm6, nan, %v293_v31  ;;  %v379_v47 = vxor.u32 2147483648, %v378_v22  ;;  %v526_v54 = vshll.u32 %v3907_v40, %v517_v46  ;;  %v527_v7 = vshrl.u32 %v3908_v42, %v518_v26 }
  0x6f   :  { %v465_v19 = vsub.s32 0, %v4253_v49  ;;  %v519_v55 = vshrl.u32 %v3905_v36, %v518_v26  ;;  %v522_v24 = vor.u32 %v521_v32, %v520_v41  ;;  %v4264_v53 = vshll.u32 %v511_v27, 8  ;;  %3416 = vst [vmem:[#allocation5 + $0x8] sm:$0xff] %v294_v30 }
  0x70   :  { %v380_v56 = vsel %vm297_vm9, %v379_v47, %v378_v22  ;;  %v529_v4 = vshll.u32 %v3908_v42, %v517_v46  ;;  %v530_v58 = vshrl.u32 %v3909_v44, %v518_v26  ;;  %v532_v60 = vshll.u32 %v3909_v44, %v517_v46 }
  0x71   :  { %v383_v61 = vsel %vm4167_vm13, %v3932_v5, %v380_v56  ;;  %v3477_v59 = vmin.u32 %v465_v19, %v4253_v49  ;;  %v525_v57 = vor.u32 %v524_v43, %v523_v51  ;;  %v533_v23 = vshrl.u32 %v3910_v52, %v518_v26 }
  0x72   :  { %3738 = vcosq.f32 %v383_v61  ;;  %vm4278_vm12 = vcmp.le.f32.partialorder %v399_v34, 0.7853982  ;;  %v528_v0 = vor.u32 %v527_v7, %v526_v54  ;;  %v531_v2 = vor.u32 %v530_v58, %v529_v4 }
  0x73   :  { %vm535_vm9 = vcmp.lt.s32.totalorder %v516_v45, 1  ;;  %3740 = vsinq.f32 %v383_v61  ;;  %v467_v62 = vclz %v3477_v59  ;;  %v485_v9 = vsub.s32 4, %v461_v1 }
  0x74   :  { %v610_v6 = vand.u32 2139095040, %v4029_v17  ;;  %v534_v10 = vor.u32 %v533_v23, %v532_v60  ;;  %vm536_vm13 = vcmp.lt.s32.totalorder %v516_v45, 2  ;;  %vm537_vm14 = vcmp.lt.s32.totalorder %v516_v45, 3 }
  0x75   :  { %vm538_vm15 = vcmp.lt.s32.totalorder %v516_v45, 4  ;;  %v3478_v20 = vadd.s32 4294967294, %v467_v62  ;;  %v539_v63 = vsel %vm535_vm9, %v519_v55, %v522_v24  ;;  %v543_v21 = vsel %vm535_vm9, %v522_v24, %v525_v57 }
  0x76   :  { %v540_v12 = vsel %vm538_vm15, %v528_v0, 2102212464  ;;  %v544_v46 = vsel %vm538_vm15, %v531_v2, 920167782  ;;  %v547_v11 = vsel %vm535_vm9, %v525_v57, %v528_v0  ;;  %v548_v3 = vsel %vm538_vm15, %v534_v10, 1326507024 }
  0x77   :  { %v541_v34 = vsel %vm537_vm14, %v525_v57, %v540_v12  ;;  %vm3479_vm0 = vcmp.lt.s32.totalorder %v3478_v20, 0  ;;  %v486_v18 = vsel %vm401_vm11, %v485_v9, %v461_v1  ;;  %v545_v14 = vsel %vm537_vm14, %v528_v0, %v544_v46 }
  0x78   :  { %v549_v15 = vsel %vm537_vm14, %v531_v2, %v548_v3  ;;  %v470_v26 = vsel %vm3479_vm0, 0, %v3478_v20  ;;  %v542_v33 = vsel %vm536_vm13, %v539_v63, %v541_v34  ;;  %v546_v28 = vsel %vm536_vm13, %v543_v21, %v545_v14 }
  0x79   :  { %v550_v27 = vsel %vm536_vm13, %v547_v11, %v549_v15  ;;  %v471_v41 = vsub.s32 32, %v470_v26  ;;  %v472_v8 = vshll.u32 %v4253_v49, %v470_v26  ;;  %v475_v22 = vsub.s32 4294967266, %v470_v26 }
  0x7a   :  { %v611_v32 = vshrl.u32 %v610_v6, 23  ;;  %v4290_v31 = vmul.u32.u64.low %v4264_v53, %v550_v27  ;;  %v4291_v51 = vmul.u32.u64.high %v4264_v53, %v550_v27, %v4290_v31  ;;  %v488_v47 = vsel %vm4278_vm12, 0, %v486_v18 }
  0x7b   :  { %v4294_v1 = vmul.u32.u64.low %v4264_v53, %v546_v28  ;;  %v4295_v43 = vmul.u32.u64.high %v4264_v53, %v546_v28, %v4294_v1  ;;  %v473_v30 = vshrl.u32 %v4247_v37, %v471_v41  ;;  %v476_v45 = vadd.s32 127, %v475_v22 }
  0x7c   :  { %v3484_v54 = vadd.s32 4294967169, %v611_v32  ;;  %v4301_v7 = vmul.f32 30.0, %v29_v35  ;;  %v4303_v49 = vmul.f32 30.0, %v30_v39  ;;  %vm387_vm1 = vweird.f32 %v3932_v5 }
  0x7d   :  { %v474_v19 = vor.u32 %v473_v30, %v472_v8  ;;  %v477_v55 = vshll.u32 %v476_v45, 23  ;;  %v558_v24 = vmul.u32 %v4264_v53, %v542_v33  ;;  %v492_v4 = vadd.s32 3, %v488_v47 }
  0x7e   :  { %v617_v56 = vadd.s32 1, %v3484_v54  ;;  %vm560_vm2 = vc.u32 %v4291_v51, %v4294_v1  ;;  %v561_v37 = vadd.s32 1, %v4295_v43  ;;  %v614_v58 = vand.u32 8388607, %v607_v29 }
  0x7f   :  { %v3739_v60 = vpop.eup %3738  ;;  %vm394_vm3 = vcmp.eq.s32.totalorder %v4242_v16, 2  ;;  %v478_v61 = vor.u32 4788187, %v477_v55  ;;  %v481_v59 = vcvt.s32.f32 %v474_v19  ;;  %vm391_vm5 = vcmp.eq.s32.totalorder %v4242_v16, 0 }
  0x80   :  { %vm618_vm4 = vcmp.gt.s32.totalorder %v617_v56, 0  ;;  %v3741_v57 = vpop.eup %3740  ;;  %v395_v53 = vxor.u32 2147483648, %v3739_v60  ;;  %v562_v23 = vsel %vm560_vm2, %v561_v37, %v4295_v43  ;;  %vm390_vm6 = vcmp.lt.s32.totalorder %v4242_v16, 2 }
  0x81   :  { %v619_v0 = vsel %vm618_vm4, %v617_v56, 0  ;;  %v392_v2 = vxor.u32 2147483648, %v3741_v57  ;;  %v479_v62 = vand.u32 2147483647, %v478_v61  ;;  %v563_v9 = vadd.s32 %v562_v23, %v558_v24 }
  0x82   :  { %v396_v6 = vsel %vm394_vm3, %v395_v53, %v3741_v57  ;;  %v4316_v10 = vand.u32 3, %v492_v4  ;;  %v615_v20 = vor.u32 8388608, %v614_v58  ;;  %v621_v63 = vand.u32 31, %v619_v0 }
  0x83   :  { %v393_v12 = vsel %vm391_vm5, %v3739_v60, %v392_v2  ;;  %v482_v21 = vmul.f32 %v481_v59, %v479_v62  ;;  %v564_v34 = vadd.s32 536870912, %v563_v9  ;;  %v714_v46 = vand.u32 2139095040, %v4301_v7 }
  0x84   :  { %v397_v11 = vsel %vm390_vm6, %v393_v12, %v396_v6  ;;  %v620_v3 = vshrl.u32 %v619_v0, 5  ;;  %v622_v18 = vsub.s32 32, %v621_v63  ;;  %v624_v14 = vshll.u32 %v3905_v36, %v621_v63 }
  0x85   :  { %v398_v16 = vsel %vm387_vm1, nan, %v397_v11  ;;  %v483_v15 = vxor.u32 2147483648, %v482_v21  ;;  %v565_v26 = vshrl.u32 %v564_v34, 30  ;;  %v627_v33 = vshll.u32 %v3906_v38, %v621_v63 }
  0x86   :  { %v625_v28 = vshrl.u32 %v3906_v38, %v622_v18  ;;  %v628_v27 = vshrl.u32 %v3907_v40, %v622_v18  ;;  %v630_v35 = vshll.u32 %v3907_v40, %v621_v63  ;;  %v631_v39 = vshrl.u32 %v3908_v42, %v622_v18  ;;  %3417 = vst [vmem:[#allocation5 + $0x10] sm:$0xff] %v398_v16 }
  0x87   :  { %v484_v41 = vsel %vm401_vm11, %v483_v15, %v482_v21  ;;  %v566_v8 = vshll.u32 %v565_v26, 30  ;;  %v633_v5 = vshll.u32 %v3908_v42, %v621_v63  ;;  %v715_v22 = vshrl.u32 %v714_v46, 23 }
  0x88   :  { %v487_v32 = vsel %vm4278_vm12, %v3944_v25, %v484_v41  ;;  %v623_v31 = vshrl.u32 %v3905_v36, %v622_v18  ;;  %v626_v43 = vor.u32 %v625_v28, %v624_v14  ;;  %vm639_vm7 = vcmp.lt.s32.totalorder %v620_v3, 1 }
  0x89   :  { %3742 = vcosq.f32 %v487_v32  ;;  %v4334_v30 = vsub.s32 %v563_v9, %v566_v8  ;;  %v629_v45 = vor.u32 %v628_v27, %v627_v33  ;;  %v634_v47 = vshrl.u32 %v3909_v44, %v622_v18 }
  0x8a   :  { %3744 = vsinq.f32 %v487_v32  ;;  %v632_v54 = vor.u32 %v631_v39, %v630_v35  ;;  %v636_v19 = vshll.u32 %v3909_v44, %v621_v63  ;;  %v637_v55 = vshrl.u32 %v3910_v52, %v622_v18 }
  0x8b   :  { %v569_v24 = vsub.s32 0, %v4334_v30  ;;  %v635_v50 = vor.u32 %v634_v47, %v633_v5  ;;  %v655_v56 = vshll.u32 %v615_v20, 8  ;;  %v3488_v4 = vadd.s32 4294967169, %v715_v22 }
  0x8c   :  { %v638_v37 = vor.u32 %v637_v55, %v636_v19  ;;  %vm640_vm8 = vcmp.lt.s32.totalorder %v620_v3, 2  ;;  %vm641_vm10 = vcmp.lt.s32.totalorder %v620_v3, 3  ;;  %vm642_vm11 = vcmp.lt.s32.totalorder %v620_v3, 4 }
  0x8d   :  { %v3481_v58 = vmin.u32 %v569_v24, %v4334_v30  ;;  %v643_v60 = vsel %vm639_vm7, %v623_v31, %v626_v43  ;;  %v644_v61 = vsel %vm642_vm11, %v632_v54, 2102212464  ;;  %v647_v59 = vsel %vm639_vm7, %v626_v43, %v629_v45 }
  0x8e   :  { %v645_v57 = vsel %vm641_vm10, %v629_v45, %v644_v61  ;;  %v648_v53 = vsel %vm642_vm11, %v635_v50, 920167782  ;;  %v651_v23 = vsel %vm639_vm7, %v629_v45, %v632_v54  ;;  %v652_v0 = vsel %vm642_vm11, %v638_v37, 1326507024 }
  0x8f   :  { %vm4347_vm12 = vcmp.le.f32.partialorder %v503_v48, 0.7853982  ;;  %vm505_vm9 = vcmp.lt.s32.totalorder %v4026_v13, 0  ;;  %v571_v62 = vclz %v3481_v58  ;;  %v711_v9 = vand.u32 2147483647, %v4301_v7 }
  0x90   :  { %vm494_vm13 = vcmp.lt.s32.totalorder %v4316_v10, 2  ;;  %v589_v6 = vsub.s32 4, %v565_v26  ;;  %v649_v20 = vsel %vm641_vm10, %v632_v54, %v648_v53  ;;  %v653_v63 = vsel %vm641_vm10, %v635_v50, %v652_v0 }
  0x91   :  { %v721_v12 = vadd.s32 1, %v3488_v4  ;;  %vm491_vm14 = vweird.f32 %v3944_v25  ;;  %v3482_v21 = vadd.s32 4294967294, %v571_v62  ;;  %v646_v48 = vsel %vm640_vm8, %v643_v60, %v645_v57 }
  0x92   :  { %v650_v34 = vsel %vm640_vm8, %v647_v59, %v649_v20  ;;  %v654_v46 = vsel %vm640_vm8, %v651_v23, %v653_v63  ;;  %v559_v15 = vadd.s32 %v4294_v1, %v4291_v51  ;;  %v718_v33 = vand.u32 8388607, %v711_v9 }
  0x93   :  { %v4360_v11 = vmul.u32.u64.low %v655_v56, %v654_v46  ;;  %v4361_v18 = vmul.u32.u64.high %v655_v56, %v654_v46, %v4360_v11  ;;  %v4363_v14 = vmul.u32.u64.low %v655_v56, %v650_v34  ;;  %v4364_v16 = vmul.u32.u64.high %v655_v56, %v650_v34, %v4363_v14 }
  0x94   :  { %vm3483_vm15 = vcmp.lt.s32.totalorder %v3482_v21, 0  ;;  %vm722_vm0 = vcmp.gt.s32.totalorder %v721_v12, 0  ;;  %vm495_vm1 = vcmp.eq.s32.totalorder %v4316_v10, 0  ;;  %v590_v3 = vsel %vm505_vm9, %v589_v6, %v565_v26 }
  0x95   :  { %v574_v28 = vsel %vm3483_vm15, 0, %v3482_v21  ;;  %v723_v27 = vsel %vm722_vm0, %v721_v12, 0  ;;  %v662_v8 = vmul.u32 %v655_v56, %v646_v48  ;;  %vm498_vm2 = vcmp.eq.s32.totalorder %v4316_v10, 2 }
  0x96   :  { %v575_v35 = vsub.s32 32, %v574_v28  ;;  %v576_v39 = vshll.u32 %v4334_v30, %v574_v28  ;;  %v579_v41 = vsub.s32 4294967266, %v574_v28  ;;  %v3743_v5 = vpop.eup %3742  ;;  %vm664_vm3 = vc.u32 %v4361_v18, %v4363_v14 }
  0x97   :  { %v665_v51 = vadd.s32 1, %v4364_v16  ;;  %v725_v1 = vand.u32 31, %v723_v27  ;;  %v3745_v22 = vpop.eup %3744  ;;  %v499_v32 = vxor.u32 2147483648, %v3743_v5  ;;  %v719_v26 = vor.u32 8388608, %v718_v33 }
  0x98   :  { %v577_v31 = vshrl.u32 %v559_v15, %v575_v35  ;;  %v580_v43 = vadd.s32 127, %v579_v41  ;;  %v496_v45 = vxor.u32 2147483648, %v3745_v22  ;;  %v592_v30 = vsel %vm4347_vm12, 0, %v590_v3 }
  0x99   :  { %v666_v47 = vsel %vm664_vm3, %v665_v51, %v4364_v16  ;;  %v726_v54 = vsub.s32 32, %v725_v1  ;;  %v500_v19 = vsel %vm498_vm2, %v499_v32, %v3745_v22  ;;  %v728_v4 = vshll.u32 %v3905_v36, %v725_v1  ;;  %v31_v22 = vld [vmem:[#allocation2 + $0x40] sm:$0xff]  ;;  %v32_v32 = vld [vmem:[#allocation2 + $0x48] sm:$0xff] }
  0x9a   :  { %v578_v55 = vor.u32 %v577_v31, %v576_v39  ;;  %v581_v24 = vshll.u32 %v580_v43, 23  ;;  %v667_v50 = vadd.s32 %v666_v47, %v662_v8  ;;  %v497_v56 = vsel %vm495_vm1, %v3743_v5, %v496_v45 }
  0x9b   :  { %v729_v37 = vshrl.u32 %v3906_v38, %v726_v54  ;;  %v731_v58 = vshll.u32 %v3906_v38, %v725_v1  ;;  %v501_v60 = vsel %vm494_vm13, %v497_v56, %v500_v19  ;;  %v724_v23 = vshrl.u32 %v723_v27, 5 }
  0x9c   :  { %v582_v61 = vor.u32 4788187, %v581_v24  ;;  %v585_v59 = vcvt.s32.f32 %v578_v55  ;;  %v668_v57 = vadd.s32 536870912, %v667_v50  ;;  %v502_v53 = vsel %vm491_vm14, nan, %v501_v60 }
  0x9d   :  { %v732_v0 = vshrl.u32 %v3907_v40, %v726_v54  ;;  %v734_v62 = vshll.u32 %v3907_v40, %v725_v1  ;;  %v735_v63 = vshrl.u32 %v3908_v42, %v726_v54  ;;  %v737_v12 = vshll.u32 %v3908_v42, %v725_v1  ;;  %3418 = vst [vmem:[#allocation5 + $0x18] sm:$0xff] %v502_v53 }
  0x9e   :  { %v583_v6 = vand.u32 2147483647, %v582_v61  ;;  %v669_v20 = vshrl.u32 %v668_v57, 30  ;;  %v596_v10 = vadd.s32 3, %v592_v30  ;;  %v738_v21 = vshrl.u32 %v3909_v44, %v726_v54 }
  0x9f   :  { %v740_v48 = vshll.u32 %v3909_v44, %v725_v1  ;;  %v741_v25 = vshrl.u32 %v3910_v52, %v726_v54  ;;  %v730_v11 = vor.u32 %v729_v37, %v728_v4  ;;  %v733_v16 = vor.u32 %v732_v0, %v731_v58 }
  0xa0   :  { %v586_v34 = vmul.f32 %v585_v59, %v583_v6  ;;  %v670_v46 = vshll.u32 %v669_v20, 30  ;;  %v727_v15 = vshrl.u32 %v3905_v36, %v726_v54  ;;  %v736_v33 = vor.u32 %v735_v63, %v734_v62 }
  0xa1   :  { %v739_v28 = vor.u32 %v738_v21, %v737_v12  ;;  %vm743_vm4 = vcmp.lt.s32.totalorder %v724_v23, 1  ;;  %vm746_vm5 = vcmp.lt.s32.totalorder %v724_v23, 4  ;;  %v759_v35 = vshll.u32 %v719_v26, 8 }
  0xa2   :  { %v587_v3 = vxor.u32 2147483648, %v586_v34  ;;  %v4399_v27 = vsub.s32 %v667_v50, %v670_v46  ;;  %v742_v39 = vor.u32 %v741_v25, %v740_v48  ;;  %vm745_vm6 = vcmp.lt.s32.totalorder %v724_v23, 3 }
  0xa3   :  { %v748_v41 = vsel %vm746_vm5, %v736_v33, 2102212464  ;;  %v818_v8 = vand.u32 2139095040, %v4303_v49  ;;  %vm744_vm7 = vcmp.lt.s32.totalorder %v724_v23, 2  ;;  %v751_v1 = vsel %vm743_vm4, %v730_v11, %v733_v16 }
  0xa4   :  { %v588_v5 = vsel %vm505_vm9, %v587_v3, %v586_v34  ;;  %v673_v51 = vsub.s32 0, %v4399_v27  ;;  %v693_v43 = vsub.s32 4, %v669_v20  ;;  %v747_v26 = vsel %vm743_vm4, %v727_v15, %v730_v11 }
  0xa5   :  { %v591_v31 = vsel %vm4347_vm12, %v4026_v13, %v588_v5  ;;  %v752_v45 = vsel %vm746_vm5, %v739_v28, 920167782  ;;  %v749_v47 = vsel %vm745_vm6, %v733_v16, %v748_v41  ;;  %v755_v55 = vsel %vm743_vm4, %v733_v16, %v736_v33 }
  0xa6   :  { %3746 = vcosq.f32 %v591_v31  ;;  %v3485_v30 = vmin.u32 %v673_v51, %v4399_v27  ;;  %v753_v54 = vsel %vm745_vm6, %v736_v33, %v752_v45  ;;  %v756_v2 = vsel %vm746_vm5, %v742_v39, 1326507024 }
  0xa7   :  { %3748 = vsinq.f32 %v591_v31  ;;  %v754_v19 = vsel %vm744_vm7, %v751_v1, %v753_v54  ;;  %v4418_v24 = vmul.f32 30.0, %v31_v22  ;;  %v4420_v50 = vmul.f32 30.0, %v32_v32 }
  0xa8   :  { %vm609_vm8 = vcmp.lt.s32.totalorder %v4029_v17, 0  ;;  %v675_v56 = vclz %v3485_v30  ;;  %v757_v37 = vsel %vm745_vm6, %v739_v28, %v756_v2  ;;  %v750_v59 = vsel %vm744_vm7, %v747_v26, %v749_v47 }
  0xa9   :  { %v694_v4 = vsel %vm609_vm8, %v693_v43, %v669_v20  ;;  %v4426_v58 = vmul.u32.u64.low %v759_v35, %v754_v19  ;;  %v4427_v60 = vmul.u32.u64.high %v759_v35, %v754_v19, %v4426_v58  ;;  %v758_v57 = vsel %vm744_vm7, %v755_v55, %v757_v37 }
  0xaa   :  { %v3486_v61 = vadd.s32 4294967294, %v675_v56  ;;  %v819_v53 = vshrl.u32 %v818_v8, 23  ;;  %v597_v0 = vand.u32 3, %v596_v10  ;;  %vm4433_vm10 = vcmp.le.f32.partialorder %v607_v29, 0.7853982 }
  0xab   :  { %v4437_v6 = vmul.u32.u64.low %v759_v35, %v758_v57  ;;  %v4438_v20 = vmul.u32.u64.high %v759_v35, %v758_v57, %v4437_v6  ;;  %v663_v63 = vadd.s32 %v4363_v14, %v4361_v18  ;;  %v696_v12 = vsel %vm4433_vm10, 0, %v694_v4 }
  0xac   :  { %vm3487_vm11 = vcmp.lt.s32.totalorder %v3486_v61, 0  ;;  %v3492_v23 = vadd.s32 4294967169, %v819_v53  ;;  %v766_v48 = vmul.u32 %v759_v35, %v750_v59  ;;  %v769_v10 = vadd.s32 1, %v4427_v60 }
  0xad   :  { %v678_v21 = vsel %vm3487_vm11, 0, %v3486_v61  ;;  %v815_v29 = vand.u32 2147483647, %v4303_v49  ;;  %vm595_vm12 = vweird.f32 %v4026_v13  ;;  %vm598_vm9 = vcmp.lt.s32.totalorder %v597_v0, 2 }
  0xae   :  { %v679_v25 = vsub.s32 32, %v678_v21  ;;  %v680_v34 = vshll.u32 %v4399_v27, %v678_v21  ;;  %v683_v46 = vsub.s32 4294967266, %v678_v21  ;;  %v825_v11 = vadd.s32 1, %v3492_v23 }
  0xaf   :  { %v700_v18 = vadd.s32 3, %v696_v12  ;;  %vm768_vm13 = vc.u32 %v4438_v20, %v4426_v58  ;;  %vm599_vm15 = vcmp.eq.s32.totalorder %v597_v0, 0  ;;  %v822_v28 = vand.u32 8388607, %v815_v29 }
  0xb0   :  { %v681_v14 = vshrl.u32 %v663_v63, %v679_v25  ;;  %v684_v16 = vadd.s32 127, %v683_v46  ;;  %v770_v15 = vsel %vm768_vm13, %v769_v10, %v4427_v60  ;;  %vm826_vm14 = vcmp.gt.s32.totalorder %v825_v11, 0 }
  0xb1   :  { %v771_v33 = vadd.s32 %v770_v15, %v766_v48  ;;  %v827_v3 = vsel %vm826_vm14, %v825_v11, 0  ;;  %v922_v41 = vand.u32 2139095040, %v4418_v24  ;;  %vm602_vm0 = vcmp.eq.s32.totalorder %v597_v0, 2 }
  0xb2   :  { %v682_v27 = vor.u32 %v681_v14, %v680_v34  ;;  %v685_v35 = vshll.u32 %v684_v16, 23  ;;  %v829_v39 = vand.u32 31, %v827_v3  ;;  %v4453_v5 = vand.u32 3, %v700_v18 }
  0xb3   :  { %v3747_v8 = vpop.eup %3746  ;;  %v772_v51 = vadd.s32 536870912, %v771_v33  ;;  %v919_v1 = vand.u32 2147483647, %v4418_v24  ;;  %v4457_v30 = vadd.s32 %v4426_v58, %v4438_v20  ;;  %v823_v54 = vor.u32 8388608, %v822_v28 }
  0xb4   :  { %v3749_v22 = vpop.eup %3748  ;;  %v603_v32 = vxor.u32 2147483648, %v3747_v8  ;;  %v686_v31 = vor.u32 4788187, %v685_v35  ;;  %v689_v43 = vcvt.s32.f32 %v682_v27  ;;  %v830_v26 = vsub.s32 32, %v829_v39 }
  0xb5   :  { %v600_v45 = vxor.u32 2147483648, %v3749_v22  ;;  %v4459_v47 = vshrl.u32 %v772_v51, 30  ;;  %v832_v2 = vshll.u32 %v3905_v36, %v829_v39  ;;  %v923_v56 = vshrl.u32 %v922_v41, 23 }
  0xb6   :  { %v604_v19 = vsel %vm602_vm0, %v603_v32, %v3749_v22  ;;  %v687_v55 = vand.u32 2147483647, %v686_v31  ;;  %v833_v60 = vshrl.u32 %v3906_v38, %v830_v26  ;;  %v835_v61 = vshll.u32 %v3906_v38, %v829_v39 }
  0xb7   :  { %v601_v4 = vsel %vm599_vm15, %v3747_v8, %v600_v45  ;;  %v774_v37 = vshll.u32 %v4459_v47, 30  ;;  %v836_v57 = vshrl.u32 %v3907_v40, %v830_v26  ;;  %v838_v53 = vshll.u32 %v3907_v40, %v829_v39 }
  0xb8   :  { %v605_v59 = vsel %vm598_vm9, %v601_v4, %v604_v19  ;;  %v690_v58 = vmul.f32 %v689_v43, %v687_v55  ;;  %v828_v63 = vshrl.u32 %v827_v3, 5  ;;  %v4473_v12 = vshll.u32 %v823_v54, 8 }
  0xb9   :  { %v606_v6 = vsel %vm595_vm12, nan, %v605_v59  ;;  %v4471_v20 = vsub.s32 %v771_v33, %v774_v37  ;;  %v839_v21 = vshrl.u32 %v3908_v42, %v830_v26  ;;  %v841_v48 = vshll.u32 %v3908_v42, %v829_v39 }
  0xba   :  { %v691_v23 = vxor.u32 2147483648, %v690_v58  ;;  %v3496_v0 = vadd.s32 4294967169, %v923_v56  ;;  %3419 = vst [vmem:[#allocation5 + $0x20] sm:$0xff] %v606_v6  ;;  %v834_v25 = vor.u32 %v833_v60, %v832_v2  ;;  %v842_v34 = vshrl.u32 %v3909_v44, %v830_v26 }
  0xbb   :  { %v777_v10 = vsub.s32 0, %v4471_v20  ;;  %v844_v13 = vshll.u32 %v3909_v44, %v829_v39  ;;  %v837_v11 = vor.u32 %v836_v57, %v835_v61  ;;  %v840_v18 = vor.u32 %v839_v21, %v838_v53 }
  0xbc   :  { %v692_v46 = vsel %vm609_vm8, %v691_v23, %v690_v58  ;;  %v845_v14 = vshrl.u32 %v3910_v52, %v830_v26  ;;  %v843_v33 = vor.u32 %v842_v34, %v841_v48  ;;  %vm847_vm1 = vcmp.lt.s32.totalorder %v828_v63, 1 }
  0xbd   :  { %v695_v16 = vsel %vm4433_vm10, %v4029_v17, %v692_v46  ;;  %v3489_v15 = vmin.u32 %v777_v10, %v4471_v20  ;;  %vm713_vm2 = vcmp.lt.s32.totalorder %v4301_v7, 0  ;;  %v831_v28 = vshrl.u32 %v3905_v36, %v830_v26 }
  0xbe   :  { %3750 = vcosq.f32 %v695_v16  ;;  %v846_v3 = vor.u32 %v845_v14, %v844_v13  ;;  %v926_v27 = vand.u32 8388607, %v919_v1  ;;  %vm849_vm3 = vcmp.lt.s32.totalorder %v828_v63, 3 }
  0xbf   :  { %3752 = vsinq.f32 %v695_v16  ;;  %v779_v35 = vclz %v3489_v15  ;;  %v929_v39 = vadd.s32 1, %v3496_v0  ;;  %v797_v62 = vsub.s32 4, %v4459_v47 }
  0xc0   :  { %vm848_vm4 = vcmp.lt.s32.totalorder %v828_v63, 2  ;;  %vm850_vm5 = vcmp.lt.s32.totalorder %v828_v63, 4  ;;  %v855_v41 = vsel %vm847_vm1, %v834_v25, %v837_v11  ;;  %v859_v32 = vsel %vm847_vm1, %v837_v11, %v840_v18 }
  0xc1   :  { %v3490_v8 = vadd.s32 4294967294, %v779_v35  ;;  %v852_v51 = vsel %vm850_vm5, %v840_v18, 2102212464  ;;  %v856_v22 = vsel %vm850_vm5, %v843_v33, 920167782  ;;  %v851_v31 = vsel %vm847_vm1, %v831_v28, %v834_v25 }
  0xc2   :  { %v853_v43 = vsel %vm849_vm3, %v837_v11, %v852_v51  ;;  %v857_v26 = vsel %vm849_vm3, %v840_v18, %v856_v22  ;;  %v860_v45 = vsel %vm850_vm5, %v846_v3, 1326507024  ;;  %vm930_vm7 = vcmp.gt.s32.totalorder %v929_v39, 0 }
  0xc3   :  { %vm3491_vm6 = vcmp.lt.s32.totalorder %v3490_v8, 0  ;;  %v858_v54 = vsel %vm848_vm4, %v855_v41, %v857_v26  ;;  %v861_v19 = vsel %vm849_vm3, %v843_v33, %v860_v45  ;;  %v854_v59 = vsel %vm848_vm4, %v851_v31, %v853_v43 }
  0xc4   :  { %v782_v55 = vsel %vm3491_vm6, 0, %v3490_v8  ;;  %v862_v2 = vsel %vm848_vm4, %v859_v32, %v861_v19  ;;  %v4501_v56 = vmul.u32.u64.low %v4473_v12, %v858_v54  ;;  %v4502_v4 = vmul.u32.u64.high %v4473_v12, %v858_v54, %v4501_v56 }
  0xc5   :  { %v783_v37 = vsub.s32 32, %v782_v55  ;;  %v784_v60 = vshll.u32 %v4471_v20, %v782_v55  ;;  %v787_v61 = vsub.s32 4294967266, %v782_v55  ;;  %vm699_vm8 = vweird.f32 %v4029_v17 }
  0xc6   :  { %v4509_v58 = vmul.u32.u64.low %v4473_v12, %v862_v2  ;;  %v4510_v57 = vmul.u32.u64.high %v4473_v12, %v862_v2, %v4509_v58  ;;  %v927_v53 = vor.u32 8388608, %v926_v27  ;;  %v931_v6 = vsel %vm930_vm7, %v929_v39, 0 }
  0xc7   :  { %v785_v23 = vshrl.u32 %v4457_v30, %v783_v37  ;;  %v788_v21 = vadd.s32 127, %v787_v61  ;;  %v4516_v48 = vsel %vm713_vm2, %v797_v62, %v4459_v47  ;;  %v933_v20 = vand.u32 31, %v931_v6 }
  0xc8   :  { %vm702_vm10 = vcmp.lt.s32.totalorder %v4453_v5, 2  ;;  %vm4521_vm11 = vcmp.le.f32.partialorder %v711_v9, 0.7853982  ;;  %v870_v0 = vmul.u32 %v4473_v12, %v854_v59  ;;  %v873_v10 = vadd.s32 1, %v4502_v4 }
  0xc9   :  { %vm703_vm12 = vcmp.eq.s32.totalorder %v4453_v5, 0  ;;  %v786_v30 = vor.u32 %v785_v23, %v784_v60  ;;  %v789_v25 = vshll.u32 %v788_v21, 23  ;;  %v934_v34 = vsub.s32 32, %v933_v20 }
  0xca   :  { %vm706_vm9 = vcmp.eq.s32.totalorder %v4453_v5, 2  ;;  %v800_v47 = vsel %vm4521_vm11, 0, %v4516_v48  ;;  %vm872_vm13 = vc.u32 %v4510_v57, %v4501_v56  ;;  %v4534_v9 = vshll.u32 %v927_v53, 8 }
  0xcb   :  { %v3751_v13 = vpop.eup %3750  ;;  %v790_v12 = vor.u32 4788187, %v789_v25  ;;  %v793_v46 = vcvt.s32.f32 %v786_v30  ;;  %v874_v11 = vsel %vm872_vm13, %v873_v10, %v4502_v4  ;;  %v936_v18 = vshll.u32 %v3905_v36, %v933_v20 }
  0xcc   :  { %v3753_v14 = vpop.eup %3752  ;;  %v707_v16 = vxor.u32 2147483648, %v3751_v13  ;;  %v875_v15 = vadd.s32 %v874_v11, %v870_v0  ;;  %v939_v33 = vshll.u32 %v3906_v38, %v933_v20  ;;  %v942_v28 = vshll.u32 %v3907_v40, %v933_v20 }
  0xcd   :  { %v704_v3 = vxor.u32 2147483648, %v3753_v14  ;;  %v791_v27 = vand.u32 2147483647, %v790_v12  ;;  %v937_v35 = vshrl.u32 %v3906_v38, %v934_v34  ;;  %v940_v39 = vshrl.u32 %v3907_v40, %v934_v34 }
  0xce   :  { %v708_v62 = vsel %vm706_vm9, %v707_v16, %v3753_v14  ;;  %v876_v41 = vadd.s32 536870912, %v875_v15  ;;  %v943_v8 = vshrl.u32 %v3908_v42, %v934_v34  ;;  %v945_v51 = vshll.u32 %v3908_v42, %v933_v20  ;;  %v33_v14 = vld [vmem:[#allocation2 + $0x50] sm:$0xff]  ;;  %v34_v16 = vld [vmem:[#allocation2 + $0x58] sm:$0xff] }
  0xcf   :  { %v705_v22 = vsel %vm703_vm12, %v3751_v13, %v704_v3  ;;  %v794_v32 = vmul.f32 %v793_v46, %v791_v27  ;;  %v932_v31 = vshrl.u32 %v931_v6, 5  ;;  %v946_v43 = vshrl.u32 %v3909_v44, %v934_v34  ;;  %v35_v27 = vld [vmem:[#allocation2 + $0x60] sm:$0xff] }
  0xd0   :  { %v709_v26 = vsel %vm702_vm10, %v705_v22, %v708_v62  ;;  %v877_v45 = vshrl.u32 %v876_v41, 30  ;;  %v948_v54 = vshll.u32 %v3909_v44, %v933_v20  ;;  %v949_v19 = vshrl.u32 %v3910_v52, %v934_v34 }
  0xd1   :  { %v710_v55 = vsel %vm699_vm8, nan, %v709_v26  ;;  %v795_v2 = vxor.u32 2147483648, %v794_v32  ;;  %v935_v4 = vshrl.u32 %v3905_v36, %v934_v34  ;;  %v938_v37 = vor.u32 %v937_v35, %v936_v18 }
  0xd2   :  { %v878_v60 = vshll.u32 %v877_v45, 30  ;;  %v941_v61 = vor.u32 %v940_v39, %v939_v33  ;;  %v944_v59 = vor.u32 %v943_v8, %v942_v28  ;;  %v947_v58 = vor.u32 %v946_v43, %v945_v51  ;;  %3420 = vst [vmem:[#allocation5 + $0x28] sm:$0xff] %v710_v55 }
  0xd3   :  { %v796_v5 = vsel %vm713_vm2, %v795_v2, %v794_v32  ;;  %v950_v53 = vor.u32 %v949_v19, %v948_v54  ;;  %vm951_vm14 = vcmp.lt.s32.totalorder %v932_v31, 1  ;;  %vm954_vm15 = vcmp.lt.s32.totalorder %v932_v31, 4 }
  0xd4   :  { %v799_v17 = vsel %vm4521_vm11, %v4301_v7, %v796_v5  ;;  %v4561_v6 = vsub.s32 %v875_v15, %v878_v60  ;;  %v956_v23 = vsel %vm954_vm15, %v944_v59, 2102212464  ;;  %v1026_v21 = vand.u32 2139095040, %v4420_v50 }
  0xd5   :  { %3754 = vcosq.f32 %v799_v17  ;;  %v901_v20 = vsub.s32 4, %v877_v45  ;;  %vm952_vm0 = vcmp.lt.s32.totalorder %v932_v31, 2  ;;  %vm953_vm1 = vcmp.lt.s32.totalorder %v932_v31, 3 }
  0xd6   :  { %3756 = vsinq.f32 %v799_v17  ;;  %v881_v0 = vsub.s32 0, %v4561_v6  ;;  %v955_v10 = vsel %vm951_vm14, %v935_v4, %v938_v37  ;;  %v959_v30 = vsel %vm951_vm14, %v938_v37, %v941_v61 }
  0xd7   :  { %v957_v25 = vsel %vm953_vm1, %v941_v61, %v956_v23  ;;  %v960_v34 = vsel %vm954_vm15, %v947_v58, 920167782  ;;  %v963_v13 = vsel %vm951_vm14, %v941_v61, %v944_v59  ;;  %v964_v12 = vsel %vm954_vm15, %v950_v53, 1326507024 }
  0xd8   :  { %vm817_vm2 = vcmp.lt.s32.totalorder %v4303_v49, 0  ;;  %v3493_v46 = vmin.u32 %v881_v0, %v4561_v6  ;;  %v961_v11 = vsel %vm953_vm1, %v944_v59, %v960_v34  ;;  %v965_v18 = vsel %vm953_vm1, %v947_v58, %v964_v12 }
  0xd9   :  { %v804_v15 = vadd.s32 3, %v800_v47  ;;  %v962_v33 = vsel %vm952_vm0, %v959_v30, %v961_v11  ;;  %v966_v28 = vsel %vm952_vm0, %v963_v13, %v965_v18  ;;  %v1027_v3 = vshrl.u32 %v1026_v21, 23 }
  0xda   :  { %v883_v35 = vclz %v3493_v46  ;;  %v902_v39 = vsel %vm817_vm2, %v901_v20, %v877_v45  ;;  %v958_v62 = vsel %vm952_vm0, %v955_v10, %v957_v25  ;;  %v4591_v47 = vmul.f32 30.0, %v33_v14 }
  0xdb   :  { %v4583_v41 = vmul.u32.u64.low %v4534_v9, %v966_v28  ;;  %v4584_v8 = vmul.u32.u64.high %v4534_v9, %v966_v28, %v4583_v41  ;;  %v4587_v63 = vmul.u32.u64.low %v4534_v9, %v962_v33  ;;  %v4588_v48 = vmul.u32.u64.high %v4534_v9, %v962_v33, %v4587_v63 }
  0xdc   :  { %v4593_v51 = vmul.f32 30.0, %v34_v16  ;;  %v3494_v22 = vadd.s32 4294967294, %v883_v35  ;;  %v3500_v32 = vadd.s32 4294967169, %v1027_v3  ;;  %v4595_v43 = vmul.f32 30.0, %v35_v27 }
  0xdd   :  { %v805_v26 = vand.u32 3, %v804_v15  ;;  %vm4599_vm3 = vcmp.le.f32.partialorder %v815_v29, 0.7853982  ;;  %v871_v45 = vadd.s32 %v4501_v56, %v4510_v57  ;;  %v974_v19 = vmul.u32 %v4534_v9, %v958_v62 }
  0xde   :  { %vm3495_vm4 = vcmp.lt.s32.totalorder %v3494_v22, 0  ;;  %v904_v54 = vsel %vm4599_vm3, 0, %v902_v39  ;;  %v1033_v55 = vadd.s32 1, %v3500_v32  ;;  %vm803_vm5 = vweird.f32 %v4301_v7 }
  0xdf   :  { %v886_v2 = vsel %vm3495_vm4, 0, %v3494_v22  ;;  %vm976_vm6 = vc.u32 %v4584_v8, %v4587_v63  ;;  %v977_v29 = vadd.s32 1, %v4588_v48  ;;  %v908_v56 = vadd.s32 3, %v904_v54 }
  0xe0   :  { %v887_v4 = vsub.s32 32, %v886_v2  ;;  %v888_v37 = vshll.u32 %v4561_v6, %v886_v2  ;;  %v891_v60 = vsub.s32 4294967266, %v886_v2  ;;  %vm1034_vm7 = vcmp.gt.s32.totalorder %v1033_v55, 0 }
  0xe1   :  { %v978_v57 = vsel %vm976_vm6, %v977_v29, %v4588_v48  ;;  %v1023_v61 = vand.u32 2147483647, %v4420_v50  ;;  %v1035_v9 = vsel %vm1034_vm7, %v1033_v55, 0  ;;  %vm810_vm8 = vcmp.eq.s32.totalorder %v805_v26, 2 }
  0xe2   :  { %v3755_v59 = vpop.eup %3754  ;;  %v889_v58 = vshrl.u32 %v871_v45, %v887_v4  ;;  %v892_v5 = vadd.s32 127, %v891_v60  ;;  %v979_v53 = vadd.s32 %v978_v57, %v974_v19  ;;  %vm806_vm10 = vcmp.lt.s32.totalorder %v805_v26, 2 }
  0xe3   :  { %v3757_v17 = vpop.eup %3756  ;;  %vm807_vm11 = vcmp.eq.s32.totalorder %v805_v26, 0  ;;  %v811_v23 = vxor.u32 2147483648, %v3755_v59  ;;  %v1037_v21 = vand.u32 31, %v1035_v9  ;;  %v4615_v25 = vand.u32 3, %v908_v56 }
  0xe4   :  { %v808_v20 = vxor.u32 2147483648, %v3757_v17  ;;  %v890_v6 = vor.u32 %v889_v58, %v888_v37  ;;  %v893_v0 = vshll.u32 %v892_v5, 23  ;;  %v980_v10 = vadd.s32 536870912, %v979_v53 }
  0xe5   :  { %v812_v30 = vsel %vm810_vm8, %v811_v23, %v3757_v17  ;;  %v1030_v34 = vand.u32 8388607, %v1023_v61  ;;  %v1038_v13 = vsub.s32 32, %v1037_v21  ;;  %v1040_v16 = vshll.u32 %v3905_v36, %v1037_v21 }
  0xe6   :  { %v809_v12 = vsel %vm807_vm11, %v3755_v59, %v808_v20  ;;  %v894_v46 = vor.u32 4788187, %v893_v0  ;;  %v897_v11 = vcvt.s32.f32 %v890_v6  ;;  %v4619_v18 = vshrl.u32 %v980_v10, 30 }
  0xe7   :  { %v813_v14 = vsel %vm806_vm10, %v809_v12, %v812_v30  ;;  %v1041_v15 = vshrl.u32 %v3906_v38, %v1038_v13  ;;  %v1043_v33 = vshll.u32 %v3906_v38, %v1037_v21  ;;  %v1044_v35 = vshrl.u32 %v3907_v40, %v1038_v13 }
  0xe8   :  { %v814_v28 = vsel %vm803_vm5, nan, %v813_v14  ;;  %v895_v3 = vand.u32 2147483647, %v894_v46  ;;  %v982_v27 = vshll.u32 %v4619_v18, 30  ;;  %v1031_v39 = vor.u32 8388608, %v1030_v34 }
  0xe9   :  { %v1036_v62 = vshrl.u32 %v1035_v9, 5  ;;  %v1046_v41 = vshll.u32 %v3907_v40, %v1037_v21  ;;  %v1130_v48 = vand.u32 2139095040, %v4591_v47  ;;  %3421 = vst [vmem:[#allocation5 + $0x30] sm:$0xff] %v814_v28  ;;  %v1047_v26 = vshrl.u32 %v3908_v42, %v1038_v13 }
  0xea   :  { %v898_v22 = vmul.f32 %v897_v11, %v895_v3  ;;  %v4631_v32 = vsub.s32 %v979_v53, %v982_v27  ;;  %v1049_v7 = vshll.u32 %v3908_v42, %v1037_v21  ;;  %v1042_v45 = vor.u32 %v1041_v15, %v1040_v16 }
  0xeb   :  { %v1050_v54 = vshrl.u32 %v3909_v44, %v1038_v13  ;;  %v1052_v19 = vshll.u32 %v3909_v44, %v1037_v21  ;;  %v1127_v55 = vand.u32 2147483647, %v4591_v47  ;;  %v1045_v4 = vor.u32 %v1044_v35, %v1043_v33 }
  0xec   :  { %v899_v2 = vxor.u32 2147483648, %v898_v22  ;;  %v985_v29 = vsub.s32 0, %v4631_v32  ;;  %v1053_v37 = vshrl.u32 %v3910_v52, %v1038_v13  ;;  %v1039_v60 = vshrl.u32 %v3905_v36, %v1038_v13 }
  0xed   :  { %v1051_v56 = vor.u32 %v1050_v54, %v1049_v7  ;;  %vm1055_vm12 = vcmp.lt.s32.totalorder %v1036_v62, 1  ;;  %v4641_v57 = vshll.u32 %v1031_v39, 8  ;;  %v1048_v58 = vor.u32 %v1047_v26, %v1046_v41 }
  0xee   :  { %v900_v9 = vsel %vm817_vm2, %v899_v2, %v898_v22  ;;  %v3497_v59 = vmin.u32 %v985_v29, %v4631_v32  ;;  %v1131_v5 = vshrl.u32 %v1130_v48, 23  ;;  %v1054_v17 = vor.u32 %v1053_v37, %v1052_v19 }
  0xef   :  { %v903_v53 = vsel %vm4599_vm3, %v4303_v49, %v900_v9  ;;  %vm1057_vm9 = vcmp.lt.s32.totalorder %v1036_v62, 3  ;;  %vm1058_vm13 = vcmp.lt.s32.totalorder %v1036_v62, 4  ;;  %vm921_vm14 = vcmp.lt.s32.totalorder %v4418_v24, 0 }
  0xf0   :  { %3758 = vcosq.f32 %v903_v53  ;;  %v987_v23 = vclz %v3497_v59  ;;  %vm1056_vm15 = vcmp.lt.s32.totalorder %v1036_v62, 2  ;;  %v1063_v21 = vsel %vm1055_vm12, %v1042_v45, %v1045_v4 }
  0xf1   :  { %3760 = vsinq.f32 %v903_v53  ;;  %v1059_v20 = vsel %vm1055_vm12, %v1039_v60, %v1042_v45  ;;  %v1060_v6 = vsel %vm1058_vm13, %v1048_v58, 2102212464  ;;  %v1064_v0 = vsel %vm1058_vm13, %v1051_v56, 920167782 }
  0xf2   :  { %v3498_v10 = vadd.s32 4294967294, %v987_v23  ;;  %v1061_v31 = vsel %vm1057_vm9, %v1045_v4, %v1060_v6  ;;  %v1065_v30 = vsel %vm1057_vm9, %v1048_v58, %v1064_v0  ;;  %v1067_v34 = vsel %vm1055_vm12, %v1045_v4, %v1048_v58 }
  0xf3   :  { %v975_v13 = vadd.s32 %v4587_v63, %v4584_v8  ;;  %v1066_v12 = vsel %vm1056_vm15, %v1063_v21, %v1065_v30  ;;  %v1068_v46 = vsel %vm1058_vm13, %v1054_v17, 1326507024  ;;  %v3504_v11 = vadd.s32 4294967169, %v1131_v5 }
  0xf4   :  { %vm3499_vm0 = vcmp.lt.s32.totalorder %v3498_v10, 0  ;;  %v1069_v14 = vsel %vm1057_vm9, %v1051_v56, %v1068_v46  ;;  %v4663_v16 = vmul.u32.u64.low %v4641_v57, %v1066_v12  ;;  %v4664_v15 = vmul.u32.u64.high %v4641_v57, %v1066_v12, %v4663_v16 }
  0xf5   :  { %v990_v33 = vsel %vm3499_vm0, 0, %v3498_v10  ;;  %v1005_v28 = vsub.s32 4, %v4619_v18  ;;  %v1062_v3 = vsel %vm1056_vm15, %v1059_v20, %v1061_v31  ;;  %v1070_v8 = vsel %vm1056_vm15, %v1067_v34, %v1069_v14 }
  0xf6   :  { %v991_v63 = vsub.s32 32, %v990_v33  ;;  %v992_v27 = vshll.u32 %v4631_v32, %v990_v33  ;;  %v995_v35 = vsub.s32 4294967266, %v990_v33  ;;  %v1137_v39 = vadd.s32 1, %v3504_v11 }
  0xf7   :  { %vm910_vm1 = vcmp.lt.s32.totalorder %v4615_v25, 2  ;;  %vm4674_vm2 = vcmp.le.f32.partialorder %v919_v1, 0.7853982  ;;  %v4679_v48 = vmul.u32.u64.low %v4641_v57, %v1070_v8  ;;  %v4680_v22 = vmul.u32.u64.high %v4641_v57, %v1070_v8, %v4679_v48 }
  0xf8   :  { %vm907_vm3 = vweird.f32 %v4303_v49  ;;  %v993_v62 = vshrl.u32 %v975_v13, %v991_v63  ;;  %v996_v26 = vadd.s32 127, %v995_v35  ;;  %v1081_v32 = vadd.s32 1, %v4664_v15 }
  0xf9   :  { %vm1138_vm4 = vcmp.gt.s32.totalorder %v1137_v39, 0  ;;  %v1006_v7 = vsel %vm921_vm14, %v1005_v28, %v4619_v18  ;;  %v1078_v1 = vmul.u32 %v4641_v57, %v1062_v3  ;;  %v4690_v45 = vand.u32 8388607, %v1127_v55 }
  0xfa   :  { %v1139_v54 = vsel %vm1138_vm4, %v1137_v39, 0  ;;  %v994_v19 = vor.u32 %v993_v62, %v992_v27  ;;  %v997_v2 = vshll.u32 %v996_v26, 23  ;;  %v1234_v4 = vand.u32 2139095040, %v4593_v51 }
  0xfb   :  { %v1141_v29 = vand.u32 31, %v1139_v54  ;;  %vm911_vm5 = vcmp.eq.s32.totalorder %v4615_v25, 0  ;;  %vm914_vm6 = vcmp.eq.s32.totalorder %v4615_v25, 2  ;;  %vm1080_vm7 = vc.u32 %v4680_v22, %v4663_v16 }
  0xfc   :  { %v1231_v18 = vand.u32 2147483647, %v4593_v51  ;;  %v998_v37 = vor.u32 4788187, %v997_v2  ;;  %v1001_v60 = vcvt.s32.f32 %v994_v19  ;;  %v1082_v56 = vsel %vm1080_vm7, %v1081_v32, %v4664_v15 }
  0xfd   :  { %v1142_v57 = vsub.s32 32, %v1141_v29  ;;  %v3759_v9 = vpop.eup %3758  ;;  %v1008_v59 = vsel %vm4674_vm2, 0, %v1006_v7  ;;  %v1083_v58 = vadd.s32 %v1082_v56, %v1078_v1  ;;  %v1135_v5 = vor.u32 8388608, %v4690_v45 }
  0xfe   :  { %v4702_v53 = vshrl.u32 %v1139_v54, 5  ;;  %v3761_v17 = vpop.eup %3760  ;;  %v915_v23 = vxor.u32 2147483648, %v3759_v9  ;;  %v999_v21 = vand.u32 2147483647, %v998_v37  ;;  %v1144_v20 = vshll.u32 %v3905_v36, %v1141_v29 }
  0xff   :  { %v1235_v6 = vshrl.u32 %v1234_v4, 23  ;;  %v912_v0 = vxor.u32 2147483648, %v3761_v17  ;;  %v1084_v10 = vadd.s32 536870912, %v1083_v58  ;;  %v1145_v31 = vshrl.u32 %v3906_v38, %v1142_v57 }
 0x100   :  { %v1147_v30 = vshll.u32 %v3906_v38, %v1141_v29  ;;  %v916_v34 = vsel %vm914_vm6, %v915_v23, %v3761_v17  ;;  %v1002_v13 = vmul.f32 %v1001_v60, %v999_v21  ;;  %v1148_v12 = vshrl.u32 %v3907_v40, %v1142_v57 }
 0x101   :  { %v1153_v46 = vshll.u32 %v3908_v42, %v1141_v29  ;;  %v913_v11 = vsel %vm911_vm5, %v3759_v9, %v912_v0  ;;  %v1085_v14 = vshrl.u32 %v1084_v10, 30  ;;  %v1150_v15 = vshll.u32 %v3907_v40, %v1141_v29 }
 0x102   :  { %v1151_v33 = vshrl.u32 %v3908_v42, %v1142_v57  ;;  %v917_v28 = vsel %vm910_vm1, %v913_v11, %v916_v34  ;;  %v1003_v3 = vxor.u32 2147483648, %v1002_v13  ;;  %v1154_v8 = vshrl.u32 %v3909_v44, %v1142_v57 }
 0x103   :  { %v1156_v63 = vshll.u32 %v3909_v44, %v1141_v29  ;;  %v918_v27 = vsel %vm907_vm3, nan, %v917_v28  ;;  %v1086_v35 = vshll.u32 %v1085_v14, 30  ;;  %v1143_v39 = vshrl.u32 %v3905_v36, %v1142_v57 }
 0x104   :  { %v1157_v48 = vshrl.u32 %v3910_v52, %v1142_v57  ;;  %v1004_v62 = vsel %vm921_vm14, %v1003_v3, %v1002_v13  ;;  %v1146_v26 = vor.u32 %v1145_v31, %v1144_v20  ;;  %v1149_v32 = vor.u32 %v1148_v12, %v1147_v30  ;;  %3422 = vst [vmem:[#allocation5 + $0x38] sm:$0xff] %v918_v27 }
 0x105   :  { %v1155_v25 = vor.u32 %v1154_v8, %v1153_v46  ;;  %v1007_v7 = vsel %vm4674_vm2, %v4418_v24, %v1004_v62  ;;  %v4728_v1 = vsub.s32 %v1083_v58, %v1086_v35  ;;  %v1152_v49 = vor.u32 %v1151_v33, %v1150_v15 }
 0x106   :  { %vm1159_vm8 = vcmp.lt.s32.totalorder %v4702_v53, 1  ;;  %3762 = vcosq.f32 %v1007_v7  ;;  %v1158_v45 = vor.u32 %v1157_v48, %v1156_v63  ;;  %vm1161_vm10 = vcmp.lt.s32.totalorder %v4702_v53, 3 }
 0x107   :  { %vm1162_vm11 = vcmp.lt.s32.totalorder %v4702_v53, 4  ;;  %3764 = vsinq.f32 %v1007_v7  ;;  %v1012_v54 = vadd.s32 3, %v1008_v59  ;;  %v1089_v19 = vsub.s32 0, %v4728_v1 }
 0x108   :  { %vm1160_vm12 = vcmp.lt.s32.totalorder %v4702_v53, 2  ;;  %v1164_v2 = vsel %vm1162_vm11, %v1152_v49, 2102212464  ;;  %v1167_v41 = vsel %vm1159_vm8, %v1146_v26, %v1149_v32  ;;  %v1168_v29 = vsel %vm1162_vm11, %v1155_v25, 920167782 }
 0x109   :  { %v1175_v4 = vshll.u32 %v1135_v5, 8  ;;  %v3501_v37 = vmin.u32 %v1089_v19, %v4728_v1  ;;  %v1163_v60 = vsel %vm1159_vm8, %v1143_v39, %v1146_v26  ;;  %v1169_v56 = vsel %vm1161_vm10, %v1152_v49, %v1168_v29 }
 0x10a   :  { %v1171_v57 = vsel %vm1159_vm8, %v1149_v32, %v1152_v49  ;;  %v1165_v9 = vsel %vm1161_vm10, %v1149_v32, %v1164_v2  ;;  %v1170_v59 = vsel %vm1160_vm12, %v1167_v41, %v1169_v56  ;;  %v1172_v58 = vsel %vm1162_vm11, %v1158_v45, 1326507024 }
 0x10b   :  { %v3508_v17 = vadd.s32 4294967169, %v1235_v6  ;;  %vm1025_vm9 = vcmp.lt.s32.totalorder %v4420_v50, 0  ;;  %v1091_v5 = vclz %v3501_v37  ;;  %v1109_v23 = vsub.s32 4, %v1085_v14 }
 0x10c   :  { %v1238_v21 = vand.u32 8388607, %v1231_v18  ;;  %v1013_v20 = vand.u32 3, %v1012_v54  ;;  %v1173_v0 = vsel %vm1161_vm10, %v1155_v25, %v1172_v58  ;;  %v1166_v34 = vsel %vm1160_vm12, %v1163_v60, %v1165_v9 }
 0x10d   :  { %v4753_v10 = vmul.u32.u64.low %v1175_v4, %v1170_v59  ;;  %v4754_v31 = vmul.u32.u64.high %v1175_v4, %v1170_v59, %v4753_v10  ;;  %v3502_v30 = vadd.s32 4294967294, %v1091_v5  ;;  %v1174_v6 = vsel %vm1160_vm12, %v1171_v57, %v1173_v0 }
 0x10e   :  { %v1241_v13 = vadd.s32 1, %v3508_v17  ;;  %vm1011_vm13 = vweird.f32 %v4418_v24  ;;  %vm4764_vm14 = vcmp.le.f32.partialorder %v1023_v61, 0.7853982  ;;  %v1079_v46 = vadd.s32 %v4663_v16, %v4680_v22 }
 0x10f   :  { %v4770_v11 = vmul.u32.u64.low %v1175_v4, %v1174_v6  ;;  %v4771_v15 = vmul.u32.u64.high %v1175_v4, %v1174_v6, %v4770_v11  ;;  %vm3503_vm15 = vcmp.lt.s32.totalorder %v3502_v30, 0  ;;  %v4775_v53 = vsel %vm1025_vm9, %v1109_v23, %v1085_v14 }
 0x110   :  { %v1239_v33 = vor.u32 8388608, %v1238_v21  ;;  %vm1242_vm0 = vcmp.gt.s32.totalorder %v1241_v13, 0  ;;  %v1094_v28 = vsel %vm3503_vm15, 0, %v3502_v30  ;;  %v1182_v3 = vmul.u32 %v1175_v4, %v1166_v34 }
 0x111   :  { %v1185_v61 = vadd.s32 1, %v4754_v31  ;;  %v1243_v8 = vsel %vm1242_vm0, %v1241_v13, 0  ;;  %vm1014_vm1 = vcmp.lt.s32.totalorder %v1013_v20, 2  ;;  %v1095_v63 = vsub.s32 32, %v1094_v28 }
 0x112   :  { %v1096_v27 = vshll.u32 %v4728_v1, %v1094_v28  ;;  %v1099_v16 = vsub.s32 4294967266, %v1094_v28  ;;  %vm1015_vm2 = vcmp.eq.s32.totalorder %v1013_v20, 0  ;;  %vm1018_vm3 = vcmp.eq.s32.totalorder %v1013_v20, 2 }
 0x113   :  { %vm1184_vm4 = vc.u32 %v4771_v15, %v4753_v10  ;;  %v1245_v22 = vand.u32 31, %v1243_v8  ;;  %v3763_v14 = vpop.eup %3762  ;;  %v1097_v35 = vshrl.u32 %v1079_v46, %v1095_v63  ;;  %v1112_v48 = vsel %vm4764_vm14, 0, %v4775_v53 }
 0x114   :  { %v1100_v39 = vadd.s32 127, %v1099_v16  ;;  %v1186_v62 = vsel %vm1184_vm4, %v1185_v61, %v4754_v31  ;;  %v3765_v26 = vpop.eup %3764  ;;  %v1019_v32 = vxor.u32 2147483648, %v3763_v14  ;;  %v4785_v1 = vshll.u32 %v1239_v33, 8 }
 0x115   :  { %v1187_v25 = vadd.s32 %v1186_v62, %v1182_v3  ;;  %v1246_v7 = vsub.s32 32, %v1245_v22  ;;  %v1016_v49 = vxor.u32 2147483648, %v3765_v26  ;;  %v1098_v45 = vor.u32 %v1097_v35, %v1096_v27 }
 0x116   :  { %v1101_v54 = vshll.u32 %v1100_v39, 23  ;;  %v1338_v19 = vand.u32 2139095040, %v4595_v43  ;;  %v1020_v2 = vsel %vm1018_vm3, %v1019_v32, %v3765_v26  ;;  %v4789_v29 = vshrl.u32 %v1243_v8, 5 }
 0x117   :  { %v1188_v41 = vadd.s32 536870912, %v1187_v25  ;;  %v1248_v4 = vshll.u32 %v3905_v36, %v1245_v22  ;;  %v1017_v37 = vsel %vm1015_vm2, %v3763_v14, %v1016_v49  ;;  %v1105_v56 = vcvt.s32.f32 %v1098_v45 }
 0x118   :  { %v1102_v60 = vor.u32 4788187, %v1101_v54  ;;  %v1251_v57 = vshll.u32 %v3906_v38, %v1245_v22  ;;  %v1021_v9 = vsel %vm1014_vm1, %v1017_v37, %v1020_v2  ;;  %v1249_v58 = vshrl.u32 %v3906_v38, %v1246_v7 }
 0x119   :  { %v1189_v59 = vshrl.u32 %v1188_v41, 30  ;;  %v1252_v17 = vshrl.u32 %v3907_v40, %v1246_v7  ;;  %v1022_v5 = vsel %vm1011_vm13, nan, %v1021_v9  ;;  %v1254_v21 = vshll.u32 %v3907_v40, %v1245_v22 }
 0x11a   :  { %v1103_v23 = vand.u32 2147483647, %v1102_v60  ;;  %v1255_v0 = vshrl.u32 %v3908_v42, %v1246_v7  ;;  %vm1129_vm5 = vcmp.lt.s32.totalorder %v4591_v47, 0  ;;  %v1257_v30 = vshll.u32 %v3908_v42, %v1245_v22  ;;  %3423 = vst [vmem:[#allocation5 + $0x40] sm:$0xff] %v1022_v5 }
 0x11b   :  { %v1190_v31 = vshll.u32 %v1189_v59, 30  ;;  %v1258_v20 = vshrl.u32 %v3909_v44, %v1246_v7  ;;  %vm1263_vm6 = vcmp.lt.s32.totalorder %v4789_v29, 1  ;;  %v1247_v6 = vshrl.u32 %v3905_v36, %v1246_v7 }
 0x11c   :  { %v1106_v34 = vmul.f32 %v1105_v56, %v1103_v23  ;;  %v1260_v24 = vshll.u32 %v3909_v44, %v1245_v22  ;;  %v1261_v13 = vshrl.u32 %v3910_v52, %v1246_v7  ;;  %v1250_v11 = vor.u32 %v1249_v58, %v1248_v4  ;;  %v36_v58 = vld [vmem:[#allocation2 + $0x68] sm:$0xff] }
 0x11d   :  { %v4808_v46 = vsub.s32 %v1187_v25, %v1190_v31  ;;  %v1253_v53 = vor.u32 %v1252_v17, %v1251_v57  ;;  %v1259_v33 = vor.u32 %v1258_v20, %v1257_v30  ;;  %vm4812_vm7 = vcmp.le.f32.partialorder %v1127_v55, 0.7853982  ;;  %v37_v17 = vld [vmem:[#allocation2 + $0x70] sm:$0xff] }
 0x11e   :  { %v1107_v28 = vxor.u32 2147483648, %v1106_v34  ;;  %v1213_v61 = vsub.s32 4, %v1189_v59  ;;  %v1256_v8 = vor.u32 %v1255_v0, %v1254_v21  ;;  %vm1264_vm8 = vcmp.lt.s32.totalorder %v4789_v29, 2  ;;  %v38_v0 = vld [vmem:[#allocation2 + $0x78] sm:$0xff] }
 0x11f   :  { %v1193_v63 = vsub.s32 0, %v4808_v46  ;;  %v1262_v27 = vor.u32 %v1261_v13, %v1260_v24  ;;  %vm1265_vm10 = vcmp.lt.s32.totalorder %v4789_v29, 3  ;;  %vm1266_vm11 = vcmp.lt.s32.totalorder %v4789_v29, 4 }
 0x120   :  { %v1108_v16 = vsel %vm1025_vm9, %v1107_v28, %v1106_v34  ;;  %v1267_v55 = vsel %vm1263_vm6, %v1247_v6, %v1250_v11  ;;  %v1268_v22 = vsel %vm1266_vm11, %v1256_v8, 2102212464  ;;  %v1272_v14 = vsel %vm1266_vm11, %v1259_v33, 920167782 }
 0x121   :  { %v1111_v35 = vsel %vm4764_vm14, %v4420_v50, %v1108_v16  ;;  %v3505_v39 = vmin.u32 %v1193_v63, %v4808_v46  ;;  %v1269_v62 = vsel %vm1265_vm10, %v1253_v53, %v1268_v22  ;;  %v1271_v26 = vsel %vm1263_vm6, %v1250_v11, %v1253_v53 }
 0x122   :  { %3766 = vcosq.f32 %v1111_v35  ;;  %v1116_v32 = vadd.s32 3, %v1112_v48  ;;  %v1273_v25 = vsel %vm1265_vm10, %v1256_v8, %v1272_v14  ;;  %v1339_v7 = vshrl.u32 %v1338_v19, 23 }
 0x123   :  { %3768 = vsinq.f32 %v1111_v35  ;;  %v1195_v49 = vclz %v3505_v39  ;;  %v1275_v12 = vsel %vm1263_vm6, %v1253_v53, %v1256_v8  ;;  %v1335_v45 = vand.u32 2147483647, %v4595_v43 }
 0x124   :  { %v1214_v54 = vsel %vm1129_vm5, %v1213_v61, %v1189_v59  ;;  %v1270_v2 = vsel %vm1264_vm8, %v1267_v55, %v1269_v62  ;;  %v1274_v48 = vsel %vm1264_vm8, %v1271_v26, %v1273_v25  ;;  %v1276_v41 = vsel %vm1266_vm11, %v1262_v27, 1326507024 }
 0x125   :  { %v3506_v19 = vadd.s32 4294967294, %v1195_v49  ;;  %v1277_v4 = vsel %vm1265_vm10, %v1259_v33, %v1276_v41  ;;  %v4852_v37 = vmul.u32.u64.low %v4785_v1, %v1274_v48  ;;  %v4853_v60 = vmul.u32.u64.high %v4785_v1, %v1274_v48, %v4852_v37 }
 0x126   :  { %v4855_v56 = vand.u32 3, %v1116_v32  ;;  %v1183_v57 = vadd.s32 %v4753_v10, %v4771_v15  ;;  %v1278_v9 = vsel %vm1264_vm8, %v1275_v12, %v1277_v4  ;;  %v3512_v59 = vadd.s32 4294967169, %v1339_v7 }
 0x127   :  { %vm3507_vm12 = vcmp.lt.s32.totalorder %v3506_v19, 0  ;;  %v1216_v5 = vsel %vm4812_vm7, 0, %v1214_v54  ;;  %v4864_v23 = vmul.u32.u64.low %v4785_v1, %v1278_v9  ;;  %v4865_v21 = vmul.u32.u64.high %v4785_v1, %v1278_v9, %v4864_v23 }
 0x128   :  { %v1198_v31 = vsel %vm3507_vm12, 0, %v3506_v19  ;;  %v1286_v30 = vmul.u32 %v4785_v1, %v1270_v2  ;;  %v1342_v10 = vand.u32 8388607, %v1335_v45  ;;  %v1345_v15 = vadd.s32 1, %v3512_v59 }
 0x129   :  { %v1199_v29 = vsub.s32 32, %v1198_v31  ;;  %v1200_v20 = vshll.u32 %v4808_v46, %v1198_v31  ;;  %v1203_v34 = vsub.s32 4294967266, %v1198_v31  ;;  %v1289_v6 = vadd.s32 1, %v4853_v60 }
 0x12a   :  { %v4872_v24 = vmul.f32 30.0, %v36_v58  ;;  %v4874_v13 = vmul.f32 30.0, %v37_v17  ;;  %v1220_v11 = vadd.s32 3, %v1216_v5  ;;  %vm1346_vm9 = vcmp.gt.s32.totalorder %v1345_v15, 0 }
 0x12b   :  { %v4876_v53 = vmul.f32 30.0, %v38_v0  ;;  %v1201_v33 = vshrl.u32 %v1183_v57, %v1199_v29  ;;  %v1204_v1 = vadd.s32 127, %v1203_v34  ;;  %vm1288_vm13 = vc.u32 %v4865_v21, %v4852_v37 }
 0x12c   :  { %vm1115_vm14 = vweird.f32 %v4420_v50  ;;  %v1290_v28 = vsel %vm1288_vm13, %v1289_v6, %v4853_v60  ;;  %v1343_v46 = vor.u32 8388608, %v1342_v10  ;;  %v1347_v61 = vsel %vm1346_vm9, %v1345_v15, 0 }
 0x12d   :  { %vm1118_vm15 = vcmp.lt.s32.totalorder %v4855_v56, 2  ;;  %v1202_v8 = vor.u32 %v1201_v33, %v1200_v20  ;;  %v1205_v63 = vshll.u32 %v1204_v1, 23  ;;  %v1291_v27 = vadd.s32 %v1290_v28, %v1286_v30 }
 0x12e   :  { %vm1119_vm0 = vcmp.eq.s32.totalorder %v4855_v56, 0  ;;  %vm1122_vm1 = vcmp.eq.s32.totalorder %v4855_v56, 2  ;;  %v4884_v16 = vand.u32 3, %v1220_v11  ;;  %v1349_v55 = vand.u32 31, %v1347_v61 }
 0x12f   :  { %v3767_v22 = vpop.eup %3766  ;;  %v1206_v14 = vor.u32 4788187, %v1205_v63  ;;  %v1209_v35 = vcvt.s32.f32 %v1202_v8  ;;  %v1292_v39 = vadd.s32 536870912, %v1291_v27  ;;  %v1439_v62 = vand.u32 2147483647, %v4872_v24 }
 0x130   :  { %v3769_v26 = vpop.eup %3768  ;;  %v1123_v32 = vxor.u32 2147483648, %v3767_v22  ;;  %v1350_v25 = vsub.s32 32, %v1349_v55  ;;  %v4887_v7 = vshll.u32 %v1343_v46, 8  ;;  %v1442_v49 = vand.u32 2139095040, %v4872_v24 }
 0x131   :  { %v1120_v12 = vxor.u32 2147483648, %v3769_v26  ;;  %v1207_v54 = vand.u32 2147483647, %v1206_v14  ;;  %v4891_v2 = vadd.s32 %v4852_v37, %v4865_v21  ;;  %v4893_v48 = vshrl.u32 %v1292_v39, 30 }
 0x132   :  { %v1124_v41 = vsel %vm1122_vm1, %v1123_v32, %v3769_v26  ;;  %v1352_v19 = vshll.u32 %v3905_v36, %v1349_v55  ;;  %v1353_v4 = vshrl.u32 %v3906_v38, %v1350_v25  ;;  %v1355_v60 = vshll.u32 %v3906_v38, %v1349_v55 }
 0x133   :  { %v1121_v57 = vsel %vm1119_vm0, %v3767_v22, %v1120_v12  ;;  %v1210_v9 = vmul.f32 %v1209_v35, %v1207_v54  ;;  %v1294_v59 = vshll.u32 %v4893_v48, 30  ;;  %v1356_v37 = vshrl.u32 %v3907_v40, %v1350_v25 }
 0x134   :  { %v1125_v58 = vsel %vm1118_vm15, %v1121_v57, %v1124_v41  ;;  %v1358_v17 = vshll.u32 %v3907_v40, %v1349_v55  ;;  %v1359_v5 = vshrl.u32 %v3908_v42, %v1350_v25  ;;  %v1443_v23 = vshrl.u32 %v1442_v49, 23 }
 0x135   :  { %v1126_v21 = vsel %vm1115_vm14, nan, %v1125_v58  ;;  %v1211_v0 = vxor.u32 2147483648, %v1210_v9  ;;  %v4910_v31 = vsub.s32 %v1291_v27, %v1294_v59  ;;  %v1348_v30 = vshrl.u32 %v1347_v61, 5 }
 0x136   :  { %v1351_v10 = vshrl.u32 %v3905_v36, %v1350_v25  ;;  %v1354_v15 = vor.u32 %v1353_v4, %v1352_v19  ;;  %v1361_v29 = vshll.u32 %v3908_v42, %v1349_v55  ;;  %v1362_v56 = vshrl.u32 %v3909_v44, %v1350_v25  ;;  %3424 = vst [vmem:[#allocation5 + $0x48] sm:$0xff] %v1126_v21 }
 0x137   :  { %v1212_v20 = vsel %vm1129_vm5, %v1211_v0, %v1210_v9  ;;  %v1297_v34 = vsub.s32 0, %v4910_v31  ;;  %v1357_v6 = vor.u32 %v1356_v37, %v1355_v60  ;;  %v1364_v50 = vshll.u32 %v3909_v44, %v1349_v55 }
 0x138   :  { %v1215_v11 = vsel %vm4812_vm7, %v4591_v47, %v1212_v20  ;;  %v1360_v33 = vor.u32 %v1359_v5, %v1358_v17  ;;  %v1363_v1 = vor.u32 %v1362_v56, %v1361_v29  ;;  %v1365_v28 = vshrl.u32 %v3910_v52, %v1350_v25 }
 0x139   :  { %3770 = vcosq.f32 %v1215_v11  ;;  %v3509_v46 = vmin.u32 %v1297_v34, %v4910_v31  ;;  %vm1367_vm2 = vcmp.lt.s32.totalorder %v1348_v30, 1  ;;  %v3516_v61 = vadd.s32 4294967169, %v1443_v23 }
 0x13a   :  { %3772 = vsinq.f32 %v1215_v11  ;;  %v1366_v8 = vor.u32 %v1365_v28, %v1364_v50  ;;  %vm1369_vm3 = vcmp.lt.s32.totalorder %v1348_v30, 3  ;;  %vm1370_vm4 = vcmp.lt.s32.totalorder %v1348_v30, 4 }
 0x13b   :  { %v1299_v63 = vclz %v3509_v46  ;;  %v1317_v27 = vsub.s32 4, %v4893_v48  ;;  %vm1368_vm5 = vcmp.lt.s32.totalorder %v1348_v30, 2  ;;  %v1371_v55 = vsel %vm1367_vm2, %v1351_v10, %v1354_v15 }
 0x13c   :  { %v1372_v3 = vsel %vm1370_vm4, %v1360_v33, 2102212464  ;;  %v1375_v22 = vsel %vm1367_vm2, %v1354_v15, %v1357_v6  ;;  %v1376_v14 = vsel %vm1370_vm4, %v1363_v1, 920167782  ;;  %v1379_v35 = vsel %vm1367_vm2, %v1357_v6, %v1360_v33 }
 0x13d   :  { %vm4927_vm6 = vcmp.le.f32.partialorder %v1231_v18, 0.7853982  ;;  %v3510_v26 = vadd.s32 4294967294, %v1299_v63  ;;  %v1373_v32 = vsel %vm1369_vm3, %v1357_v6, %v1372_v3  ;;  %v1377_v25 = vsel %vm1369_vm3, %v1360_v33, %v1376_v14 }
 0x13e   :  { %v1380_v49 = vsel %vm1370_vm4, %v1366_v8, 1326507024  ;;  %v1374_v12 = vsel %vm1368_vm5, %v1371_v55, %v1373_v32  ;;  %v1378_v54 = vsel %vm1368_vm5, %v1375_v22, %v1377_v25  ;;  %v1449_v19 = vadd.s32 1, %v3516_v61 }
 0x13f   :  { %v1381_v41 = vsel %vm1369_vm3, %v1363_v1, %v1380_v49  ;;  %vm3511_vm7 = vcmp.lt.s32.totalorder %v3510_v26, 0  ;;  %v4938_v18 = vmul.u32.u64.low %v4887_v7, %v1378_v54  ;;  %v4939_v60 = vmul.u32.u64.high %v4887_v7, %v1378_v54, %v4938_v18 }
 0x140   :  { %v1382_v4 = vsel %vm1368_vm5, %v1379_v35, %v1381_v41  ;;  %v1302_v57 = vsel %vm3511_vm7, 0, %v3510_v26  ;;  %v1446_v37 = vand.u32 8388607, %v1439_v62  ;;  %vm1219_vm8 = vweird.f32 %v4591_v47 }
 0x141   :  { %v4943_v9 = vmul.u32.u64.low %v4887_v7, %v1382_v4  ;;  %v4944_v59 = vmul.u32.u64.high %v4887_v7, %v1382_v4, %v4943_v9  ;;  %v1303_v58 = vsub.s32 32, %v1302_v57  ;;  %v1304_v17 = vshll.u32 %v4910_v31, %v1302_v57 }
 0x142   :  { %v1307_v5 = vsub.s32 4294967266, %v1302_v57  ;;  %vm1450_vm10 = vcmp.gt.s32.totalorder %v1449_v19, 0  ;;  %vm1222_vm11 = vcmp.lt.s32.totalorder %v4884_v16, 2  ;;  %vm1233_vm12 = vcmp.lt.s32.totalorder %v4593_v51, 0 }
 0x143   :  { %v1390_v23 = vmul.u32 %v4887_v7, %v1374_v12  ;;  %v1451_v21 = vsel %vm1450_vm10, %v1449_v19, 0  ;;  %v1305_v0 = vshrl.u32 %v4891_v2, %v1303_v58  ;;  %v4957_v10 = vsel %vm1233_vm12, %v1317_v27, %v4893_v48 }
 0x144   :  { %v1308_v30 = vadd.s32 127, %v1307_v5  ;;  %v1393_v15 = vadd.s32 1, %v4939_v60  ;;  %vm1223_vm9 = vcmp.eq.s32.totalorder %v4884_v16, 0  ;;  %vm1226_vm13 = vcmp.eq.s32.totalorder %v4884_v16, 2 }
 0x145   :  { %vm1392_vm14 = vc.u32 %v4944_v59, %v4938_v18  ;;  %v1453_v31 = vand.u32 31, %v1451_v21  ;;  %v1306_v7 = vor.u32 %v1305_v0, %v1304_v17  ;;  %v1447_v56 = vor.u32 8388608, %v1446_v37 }
 0x146   :  { %v1309_v29 = vshll.u32 %v1308_v30, 23  ;;  %v1394_v2 = vsel %vm1392_vm14, %v1393_v15, %v4939_v60  ;;  %v3771_v20 = vpop.eup %3770  ;;  %v1320_v48 = vsel %vm4927_vm6, 0, %v4957_v10  ;;  %v4968_v6 = vshrl.u32 %v1451_v21, 5  ;;  %v39_v15 = vld [vmem:[#allocation2 + $0x80] sm:$0xff] }
 0x147   :  { %v1395_v34 = vadd.s32 %v1394_v2, %v1390_v23  ;;  %v1454_v50 = vsub.s32 32, %v1453_v31  ;;  %v3773_v11 = vpop.eup %3772  ;;  %v1227_v33 = vxor.u32 2147483648, %v3771_v20  ;;  %v1313_v28 = vcvt.s32.f32 %v1306_v7 }
 0x148   :  { %v1310_v1 = vor.u32 4788187, %v1309_v29  ;;  %v1456_v46 = vshll.u32 %v3905_v36, %v1453_v31  ;;  %v1224_v61 = vxor.u32 2147483648, %v3773_v11  ;;  %v1459_v63 = vshll.u32 %v3906_v38, %v1453_v31 }
 0x149   :  { %v1396_v8 = vadd.s32 536870912, %v1395_v34  ;;  %v1462_v27 = vshll.u32 %v3907_v40, %v1453_v31  ;;  %v1228_v55 = vsel %vm1226_vm13, %v1227_v33, %v3773_v11  ;;  %v1457_v22 = vshrl.u32 %v3906_v38, %v1454_v50  ;;  %v40_v11 = vld [vmem:[#allocation2 + $0x88] sm:$0xff] }
 0x14a   :  { %v1311_v3 = vand.u32 2147483647, %v1310_v1  ;;  %v1460_v14 = vshrl.u32 %v3907_v40, %v1454_v50  ;;  %v1225_v35 = vsel %vm1223_vm9, %v3771_v20, %v1224_v61  ;;  %v1463_v32 = vshrl.u32 %v3908_v42, %v1454_v50 }
 0x14b   :  { %v1397_v26 = vshrl.u32 %v1396_v8, 30  ;;  %v1465_v25 = vshll.u32 %v3908_v42, %v1453_v31  ;;  %v1229_v49 = vsel %vm1222_vm11, %v1225_v35, %v1228_v55  ;;  %vm1471_vm15 = vcmp.lt.s32.totalorder %v4968_v6, 1 }
 0x14c   :  { %v1314_v12 = vmul.f32 %v1313_v28, %v1311_v3  ;;  %v4984_v54 = vshll.u32 %v1447_v56, 8  ;;  %v1230_v41 = vsel %vm1219_vm8, nan, %v1229_v49  ;;  %v1455_v4 = vshrl.u32 %v3905_v36, %v1454_v50 }
 0x14d   :  { %v1398_v19 = vshll.u32 %v1397_v26, 30  ;;  %v1466_v60 = vshrl.u32 %v3909_v44, %v1454_v50  ;;  %v1458_v9 = vor.u32 %v1457_v22, %v1456_v46  ;;  %v1468_v37 = vshll.u32 %v3909_v44, %v1453_v31  ;;  %3425 = vst [vmem:[#allocation5 + $0x50] sm:$0xff] %v1230_v41 }
 0x14e   :  { %v1315_v57 = vxor.u32 2147483648, %v1314_v12  ;;  %v1469_v16 = vshrl.u32 %v3910_v52, %v1454_v50  ;;  %v1461_v17 = vor.u32 %v1460_v14, %v1459_v63  ;;  %v1464_v5 = vor.u32 %v1463_v32, %v1462_v27 }
 0x14f   :  { %v4992_v58 = vsub.s32 %v1395_v34, %v1398_v19  ;;  %v1467_v23 = vor.u32 %v1466_v60, %v1465_v25  ;;  %v1421_v21 = vsub.s32 4, %v1397_v26  ;;  %vm1474_vm0 = vcmp.lt.s32.totalorder %v4968_v6, 4  ;;  %v41_v25 = vld [vmem:[#allocation2 + $0x90] sm:$0xff] }
 0x150   :  { %v1316_v47 = vsel %vm1233_vm12, %v1315_v57, %v1314_v12  ;;  %v1470_v0 = vor.u32 %v1469_v16, %v1468_v37  ;;  %vm1472_vm1 = vcmp.lt.s32.totalorder %v4968_v6, 2  ;;  %vm1473_vm2 = vcmp.lt.s32.totalorder %v4968_v6, 3 }
 0x151   :  { %v1319_v30 = vsel %vm4927_vm6, %v4593_v51, %v1316_v47  ;;  %v1401_v10 = vsub.s32 0, %v4992_v58  ;;  %v1475_v31 = vsel %vm1471_vm15, %v1455_v4, %v1458_v9  ;;  %v1476_v7 = vsel %vm1474_vm0, %v1464_v5, 2102212464 }
 0x152   :  { %3774 = vcosq.f32 %v1319_v30  ;;  %v1480_v29 = vsel %vm1474_vm0, %v1467_v23, 920167782  ;;  %v1477_v2 = vsel %vm1473_vm2, %v1461_v17, %v1476_v7  ;;  %v1479_v56 = vsel %vm1471_vm15, %v1458_v9, %v1461_v17 }
 0x153   :  { %3776 = vsinq.f32 %v1319_v30  ;;  %v3513_v39 = vmin.u32 %v1401_v10, %v4992_v58  ;;  %vm1337_vm3 = vcmp.lt.s32.totalorder %v4595_v43, 0  ;;  %v1481_v20 = vsel %vm1473_vm2, %v1464_v5, %v1480_v29 }
 0x154   :  { %v1483_v34 = vsel %vm1471_vm15, %v1461_v17, %v1464_v5  ;;  %v1484_v50 = vsel %vm1474_vm0, %v1470_v0, 1326507024  ;;  %v5021_v33 = vmul.f32 30.0, %v39_v15  ;;  %v1324_v1 = vadd.s32 3, %v1320_v48 }
 0x155   :  { %v1403_v28 = vclz %v3513_v39  ;;  %v1422_v46 = vsel %vm1337_vm3, %v1421_v21, %v1397_v26  ;;  %v1478_v61 = vsel %vm1472_vm1, %v1475_v31, %v1477_v2  ;;  %v1482_v8 = vsel %vm1472_vm1, %v1479_v56, %v1481_v20 }
 0x156   :  { %v1485_v63 = vsel %vm1473_vm2, %v1467_v23, %v1484_v50  ;;  %v1546_v27 = vand.u32 2139095040, %v4874_v13  ;;  %v5035_v48 = vmul.u32.u64.low %v4984_v54, %v1482_v8  ;;  %v5036_v22 = vmul.u32.u64.high %v4984_v54, %v1482_v8, %v5035_v48 }
 0x157   :  { %v3514_v55 = vadd.s32 4294967294, %v1403_v28  ;;  %v1486_v3 = vsel %vm1472_vm1, %v1483_v34, %v1485_v63  ;;  %v5039_v14 = vmul.f32 30.0, %v40_v11  ;;  %v1325_v49 = vand.u32 3, %v1324_v1 }
 0x158   :  { %v5042_v35 = vmul.u32.u64.low %v4984_v54, %v1486_v3  ;;  %v5043_v26 = vmul.u32.u64.high %v4984_v54, %v1486_v3, %v5042_v35  ;;  %v1547_v32 = vshrl.u32 %v1546_v27, 23  ;;  %vm5047_vm4 = vcmp.le.f32.partialorder %v1335_v45, 0.7853982 }
 0x159   :  { %v1391_v6 = vadd.s32 %v4938_v18, %v4944_v59  ;;  %vm3515_vm5 = vcmp.lt.s32.totalorder %v3514_v55, 0  ;;  %v1424_v19 = vsel %vm5047_vm4, 0, %v1422_v46  ;;  %v1494_v4 = vmul.u32 %v4984_v54, %v1478_v61 }
 0x15a   :  { %v1406_v41 = vsel %vm3515_vm5, 0, %v3514_v55  ;;  %v3520_v60 = vadd.s32 4294967169, %v1547_v32  ;;  %v1497_v45 = vadd.s32 1, %v5036_v22  ;;  %v5058_v16 = vmul.f32 30.0, %v41_v25 }
 0x15b   :  { %v1407_v57 = vsub.s32 32, %v1406_v41  ;;  %v1408_v9 = vshll.u32 %v4992_v58, %v1406_v41  ;;  %v1411_v37 = vsub.s32 4294967266, %v1406_v41  ;;  %vm1323_vm6 = vweird.f32 %v4593_v51 }
 0x15c   :  { %vm1496_vm7 = vc.u32 %v5043_v26, %v5035_v48  ;;  %v1553_v18 = vadd.s32 1, %v3520_v60  ;;  %v1428_v5 = vadd.s32 3, %v1424_v19  ;;  %vm1326_vm8 = vcmp.lt.s32.totalorder %v1325_v49, 2 }
 0x15d   :  { %v1409_v59 = vshrl.u32 %v1391_v6, %v1407_v57  ;;  %v1412_v17 = vadd.s32 127, %v1411_v37  ;;  %v1498_v54 = vsel %vm1496_vm7, %v1497_v45, %v5036_v22  ;;  %v1543_v58 = vand.u32 2147483647, %v4874_v13 }
 0x15e   :  { %v1499_v23 = vadd.s32 %v1498_v54, %v1494_v4  ;;  %vm1554_vm10 = vcmp.gt.s32.totalorder %v1553_v18, 0  ;;  %vm1330_vm11 = vcmp.eq.s32.totalorder %v1325_v49, 2  ;;  %vm1327_vm12 = vcmp.eq.s32.totalorder %v1325_v49, 0 }
 0x15f   :  { %v3775_v47 = vpop.eup %3774  ;;  %v1410_v21 = vor.u32 %v1409_v59, %v1408_v9  ;;  %v1413_v0 = vshll.u32 %v1412_v17, 23  ;;  %v1555_v30 = vsel %vm1554_vm10, %v1553_v18, 0  ;;  %v5065_v56 = vand.u32 3, %v1428_v5 }
 0x160   :  { %v3777_v10 = vpop.eup %3776  ;;  %v1331_v15 = vxor.u32 2147483648, %v3775_v47  ;;  %v1500_v31 = vadd.s32 536870912, %v1499_v23  ;;  %v1557_v7 = vand.u32 31, %v1555_v30  ;;  %v1550_v50 = vand.u32 8388607, %v1543_v58 }
 0x161   :  { %v1328_v29 = vxor.u32 2147483648, %v3777_v10  ;;  %v1414_v39 = vor.u32 4788187, %v1413_v0  ;;  %v1417_v2 = vcvt.s32.f32 %v1410_v21  ;;  %v1650_v61 = vand.u32 2139095040, %v4876_v53 }
 0x162   :  { %v1332_v20 = vsel %vm1330_vm11, %v1331_v15, %v3777_v10  ;;  %v5067_v34 = vshrl.u32 %v1500_v31, 30  ;;  %v1558_v11 = vsub.s32 32, %v1557_v7  ;;  %v1560_v46 = vshll.u32 %v3905_v36, %v1557_v7 }
 0x163   :  { %v1329_v1 = vsel %vm1327_vm12, %v3775_v47, %v1328_v29  ;;  %v1415_v28 = vand.u32 2147483647, %v1414_v39  ;;  %v1563_v27 = vshll.u32 %v3906_v38, %v1557_v7  ;;  %v1566_v55 = vshll.u32 %v3907_v40, %v1557_v7 }
 0x164   :  { %v1333_v8 = vsel %vm1326_vm8, %v1329_v1, %v1332_v20  ;;  %v1502_v63 = vshll.u32 %v5067_v34, 30  ;;  %v1561_v35 = vshrl.u32 %v3906_v38, %v1558_v11  ;;  %v1564_v32 = vshrl.u32 %v3907_v40, %v1558_v11 }
 0x165   :  { %v1334_v3 = vsel %vm1323_vm6, nan, %v1333_v8  ;;  %v1418_v22 = vmul.f32 %v1417_v2, %v1415_v28  ;;  %v1556_v6 = vshrl.u32 %v1555_v30, 5  ;;  %v1567_v49 = vshrl.u32 %v3908_v42, %v1558_v11 }
 0x166   :  { %v5081_v25 = vsub.s32 %v1499_v23, %v1502_v63  ;;  %v1569_v41 = vshll.u32 %v3908_v42, %v1557_v7  ;;  %3426 = vst [vmem:[#allocation5 + $0x58] sm:$0xff] %v1334_v3  ;;  %v1551_v4 = vor.u32 8388608, %v1550_v50  ;;  %v1647_v60 = vand.u32 2147483647, %v4876_v53 }
 0x167   :  { %v1419_v19 = vxor.u32 2147483648, %v1418_v22  ;;  %v1651_v57 = vshrl.u32 %v1650_v61, 23  ;;  %v1562_v9 = vor.u32 %v1561_v35, %v1560_v46  ;;  %v1565_v37 = vor.u32 %v1564_v32, %v1563_v27 }
 0x168   :  { %v1505_v51 = vsub.s32 0, %v5081_v25  ;;  %v1570_v45 = vshrl.u32 %v3909_v44, %v1558_v11  ;;  %v1568_v59 = vor.u32 %v1567_v49, %v1566_v55  ;;  %v1572_v17 = vshll.u32 %v3909_v44, %v1557_v7 }
 0x169   :  { %v1420_v18 = vsel %vm1337_vm3, %v1419_v19, %v1418_v22  ;;  %v1573_v5 = vshrl.u32 %v3910_v52, %v1558_v11  ;;  %vm1575_vm9 = vcmp.lt.s32.totalorder %v1556_v6, 1  ;;  %v1495_v21 = vadd.s32 %v5035_v48, %v5043_v26 }
 0x16a   :  { %v1423_v54 = vsel %vm5047_vm4, %v4595_v43, %v1420_v18  ;;  %v3517_v23 = vmin.u32 %v1505_v51, %v5081_v25  ;;  %v1571_v47 = vor.u32 %v1570_v45, %v1569_v41  ;;  %v1559_v0 = vshrl.u32 %v3905_v36, %v1558_v11 }
 0x16b   :  { %3778 = vcosq.f32 %v1423_v54  ;;  %v1574_v30 = vor.u32 %v1573_v5, %v1572_v17  ;;  %vm1577_vm13 = vcmp.lt.s32.totalorder %v1556_v6, 3  ;;  %v1591_v15 = vshll.u32 %v1551_v4, 8 }
 0x16c   :  { %3780 = vsinq.f32 %v1423_v54  ;;  %v1507_v10 = vclz %v3517_v23  ;;  %vm1576_vm14 = vcmp.lt.s32.totalorder %v1556_v6, 2  ;;  %vm1578_vm15 = vcmp.lt.s32.totalorder %v1556_v6, 4 }
 0x16d   :  { %v1583_v12 = vsel %vm1575_vm9, %v1562_v9, %v1565_v37  ;;  %v3524_v31 = vadd.s32 4294967169, %v1651_v57  ;;  %v1580_v29 = vsel %vm1578_vm15, %v1568_v59, 2102212464  ;;  %v1584_v39 = vsel %vm1578_vm15, %v1571_v47, 920167782 }
 0x16e   :  { %v3518_v7 = vadd.s32 4294967294, %v1507_v10  ;;  %v1587_v2 = vsel %vm1575_vm9, %v1565_v37, %v1568_v59  ;;  %v1579_v20 = vsel %vm1575_vm9, %v1559_v0, %v1562_v9  ;;  %v1581_v48 = vsel %vm1577_vm13, %v1565_v37, %v1580_v29 }
 0x16f   :  { %v1585_v26 = vsel %vm1577_vm13, %v1568_v59, %v1584_v39  ;;  %v1588_v50 = vsel %vm1578_vm15, %v1574_v30, 1326507024  ;;  %v1525_v11 = vsub.s32 4, %v5067_v34  ;;  %v1582_v22 = vsel %vm1576_vm14, %v1579_v20, %v1581_v48 }
 0x170   :  { %vm3519_vm0 = vcmp.lt.s32.totalorder %v3518_v7, 0  ;;  %v1586_v1 = vsel %vm1576_vm14, %v1583_v12, %v1585_v26  ;;  %v1589_v28 = vsel %vm1577_vm13, %v1571_v47, %v1588_v50  ;;  %vm1427_vm1 = vweird.f32 %v4595_v43 }
 0x171   :  { %v1510_v46 = vsel %vm3519_vm0, 0, %v3518_v7  ;;  %v1590_v61 = vsel %vm1576_vm14, %v1587_v2, %v1589_v28  ;;  %v5108_v8 = vmul.u32.u64.low %v1591_v15, %v1586_v1  ;;  %v5109_v63 = vmul.u32.u64.high %v1591_v15, %v1586_v1, %v5108_v8 }
 0x172   :  { %v1511_v27 = vsub.s32 32, %v1510_v46  ;;  %v1512_v55 = vshll.u32 %v5081_v25, %v1510_v46  ;;  %v1515_v3 = vsub.s32 4294967266, %v1510_v46  ;;  %vm1441_vm2 = vcmp.lt.s32.totalorder %v4872_v24, 0 }
 0x173   :  { %v5116_v35 = vmul.u32.u64.low %v1591_v15, %v1590_v61  ;;  %v5117_v32 = vmul.u32.u64.high %v1591_v15, %v1590_v61, %v5116_v35  ;;  %v1657_v49 = vadd.s32 1, %v3524_v31  ;;  %vm5121_vm3 = vcmp.le.f32.partialorder %v1439_v62, 0.7853982 }
 0x174   :  { %v1513_v19 = vshrl.u32 %v1495_v21, %v1511_v27  ;;  %v1516_v4 = vadd.s32 127, %v1515_v3  ;;  %v5127_v25 = vand.u32 8388607, %v1647_v60  ;;  %v1526_v6 = vsel %vm1441_vm2, %v1525_v11, %v5067_v34 }
 0x175   :  { %v1598_v57 = vmul.u32 %v1591_v15, %v1582_v22  ;;  %v1601_v51 = vadd.s32 1, %v5109_v63  ;;  %vm1658_vm4 = vcmp.gt.s32.totalorder %v1657_v49, 0  ;;  %vm1430_vm5 = vcmp.lt.s32.totalorder %v5065_v56, 2 }
 0x176   :  { %v1514_v62 = vor.u32 %v1513_v19, %v1512_v55  ;;  %v1517_v9 = vshll.u32 %v1516_v4, 23  ;;  %v1659_v37 = vsel %vm1658_vm4, %v1657_v49, 0  ;;  %vm1431_vm6 = vcmp.eq.s32.totalorder %v5065_v56, 0 }
 0x177   :  { %vm1434_vm7 = vcmp.eq.s32.totalorder %v5065_v56, 2  ;;  %vm1600_vm8 = vc.u32 %v5117_v32, %v5108_v8  ;;  %v1661_v45 = vand.u32 31, %v1659_v37  ;;  %v1528_v17 = vsel %vm5121_vm3, 0, %v1526_v6 }
 0x178   :  { %v3779_v18 = vpop.eup %3778  ;;  %v1518_v59 = vor.u32 4788187, %v1517_v9  ;;  %v1521_v34 = vcvt.s32.f32 %v1514_v62  ;;  %v1602_v5 = vsel %vm1600_vm8, %v1601_v51, %v5109_v63  ;;  %v1655_v21 = vor.u32 8388608, %v5127_v25  ;;  %v42_v9 = vld [vmem:[#allocation2 + $0x98] sm:$0xff] }
 0x179   :  { %v3781_v54 = vpop.eup %3780  ;;  %v1435_v23 = vxor.u32 2147483648, %v3779_v18  ;;  %v1603_v47 = vadd.s32 %v1602_v5, %v1598_v57  ;;  %v1662_v0 = vsub.s32 32, %v1661_v45  ;;  %v1664_v15 = vshll.u32 %v3905_v36, %v1661_v45 }
 0x17a   :  { %v1432_v30 = vxor.u32 2147483648, %v3781_v54  ;;  %v1519_v10 = vand.u32 2147483647, %v1518_v59  ;;  %v1667_v12 = vshll.u32 %v3906_v38, %v1661_v45  ;;  %v1670_v39 = vshll.u32 %v3907_v40, %v1661_v45 }
 0x17b   :  { %v1436_v31 = vsel %vm1434_vm7, %v1435_v23, %v3781_v54  ;;  %v1604_v7 = vadd.s32 536870912, %v1603_v47  ;;  %v1665_v29 = vshrl.u32 %v3906_v38, %v1662_v0  ;;  %v1668_v48 = vshrl.u32 %v3907_v40, %v1662_v0 }
 0x17c   :  { %v1433_v2 = vsel %vm1431_vm6, %v3779_v18, %v1432_v30  ;;  %v1522_v20 = vmul.f32 %v1521_v34, %v1519_v10  ;;  %v1671_v26 = vshrl.u32 %v3908_v42, %v1662_v0  ;;  %v1660_v1 = vshrl.u32 %v1659_v37, 5 }
 0x17d   :  { %v1437_v50 = vsel %vm1430_vm5, %v1433_v2, %v1436_v31  ;;  %v1605_v11 = vshrl.u32 %v1604_v7, 30  ;;  %v1673_v28 = vshll.u32 %v3908_v42, %v1661_v45  ;;  %v1663_v63 = vshrl.u32 %v3905_v36, %v1662_v0 }
 0x17e   :  { %v1438_v46 = vsel %vm1427_vm1, nan, %v1437_v50  ;;  %v1523_v61 = vxor.u32 2147483648, %v1522_v20  ;;  %v1754_v27 = vand.u32 2139095040, %v5021_v33  ;;  %v1666_v3 = vor.u32 %v1665_v29, %v1664_v15 }
 0x17f   :  { %v1606_v55 = vshll.u32 %v1605_v11, 30  ;;  %v1674_v22 = vshrl.u32 %v3909_v44, %v1662_v0  ;;  %v1676_v35 = vshll.u32 %v3909_v44, %v1661_v45  ;;  %3427 = vst [vmem:[#allocation5 + $0x60] sm:$0xff] %v1438_v46  ;;  %v1669_v49 = vor.u32 %v1668_v48, %v1667_v12 }
 0x180   :  { %v1524_v56 = vsel %vm1441_vm2, %v1523_v61, %v1522_v20  ;;  %v1672_v19 = vor.u32 %v1671_v26, %v1670_v39  ;;  %v1677_v43 = vshrl.u32 %v3910_v52, %v1662_v0  ;;  %vm1679_vm10 = vcmp.lt.s32.totalorder %v1660_v1, 1 }
 0x181   :  { %v1527_v4 = vsel %vm5121_vm3, %v4872_v24, %v1524_v56  ;;  %v5167_v25 = vsub.s32 %v1603_v47, %v1606_v55  ;;  %v1675_v6 = vor.u32 %v1674_v22, %v1673_v28  ;;  %v1532_v57 = vadd.s32 3, %v1528_v17 }
 0x182   :  { %3782 = vcosq.f32 %v1527_v4  ;;  %v1678_v51 = vor.u32 %v1677_v43, %v1676_v35  ;;  %vm1681_vm11 = vcmp.lt.s32.totalorder %v1660_v1, 3  ;;  %vm1680_vm12 = vcmp.lt.s32.totalorder %v1660_v1, 2 }
 0x183   :  { %3784 = vsinq.f32 %v1527_v4  ;;  %v1609_v62 = vsub.s32 0, %v5167_v25  ;;  %vm1682_vm9 = vcmp.lt.s32.totalorder %v1660_v1, 4  ;;  %v1687_v45 = vsel %vm1679_vm10, %v1666_v3, %v1669_v49 }
 0x184   :  { %v1684_v37 = vsel %vm1682_vm9, %v1672_v19, 2102212464  ;;  %v1688_v18 = vsel %vm1682_vm9, %v1675_v6, 920167782  ;;  %v1695_v41 = vshll.u32 %v1655_v21, 8  ;;  %v1683_v34 = vsel %vm1679_vm10, %v1663_v63, %v1666_v3 }
 0x185   :  { %v3521_v59 = vmin.u32 %v1609_v62, %v5167_v25  ;;  %v1689_v5 = vsel %vm1681_vm11, %v1672_v19, %v1688_v18  ;;  %v1755_v17 = vshrl.u32 %v1754_v27, 23  ;;  %v1685_v54 = vsel %vm1681_vm11, %v1669_v49, %v1684_v37 }
 0x186   :  { %v1690_v23 = vsel %vm1680_vm12, %v1687_v45, %v1689_v5  ;;  %v1691_v47 = vsel %vm1679_vm10, %v1669_v49, %v1672_v19  ;;  %v1692_v0 = vsel %vm1682_vm9, %v1678_v51, 1326507024  ;;  %v5177_v30 = vmul.f32 30.0, %v42_v9 }
 0x187   :  { %vm1545_vm13 = vcmp.lt.s32.totalorder %v4874_v13, 0  ;;  %v1611_v10 = vclz %v3521_v59  ;;  %v1629_v21 = vsub.s32 4, %v1605_v11  ;;  %v1533_v15 = vand.u32 3, %v1532_v57 }
 0x188   :  { %v1693_v12 = vsel %vm1681_vm11, %v1675_v6, %v1692_v0  ;;  %v5181_v31 = vmul.u32.u64.low %v1695_v41, %v1690_v23  ;;  %v5182_v7 = vmul.u32.u64.high %v1695_v41, %v1690_v23, %v5181_v31  ;;  %v1686_v39 = vsel %vm1680_vm12, %v1683_v34, %v1685_v54 }
 0x189   :  { %v3522_v29 = vadd.s32 4294967294, %v1611_v10  ;;  %v1694_v2 = vsel %vm1680_vm12, %v1691_v47, %v1693_v12  ;;  %v3528_v20 = vadd.s32 4294967169, %v1755_v17  ;;  %vm1531_vm14 = vweird.f32 %v4872_v24 }
 0x18a   :  { %vm5190_vm15 = vcmp.le.f32.partialorder %v1543_v58, 0.7853982  ;;  %v5194_v26 = vmul.u32.u64.low %v1695_v41, %v1694_v2  ;;  %v5195_v50 = vmul.u32.u64.high %v1695_v41, %v1694_v2, %v5194_v26  ;;  %v1751_v28 = vand.u32 2147483647, %v5021_v33 }
 0x18b   :  { %v1599_v46 = vadd.s32 %v5108_v8, %v5117_v32  ;;  %vm3523_vm0 = vcmp.lt.s32.totalorder %v3522_v29, 0  ;;  %v1630_v1 = vsel %vm1545_vm13, %v1629_v21, %v1605_v11  ;;  %v1761_v61 = vadd.s32 1, %v3528_v20 }
 0x18c   :  { %vm1534_vm1 = vcmp.lt.s32.totalorder %v1533_v15, 2  ;;  %v1614_v63 = vsel %vm3523_vm0, 0, %v3522_v29  ;;  %v1702_v27 = vmul.u32 %v1695_v41, %v1686_v39  ;;  %v1705_v58 = vadd.s32 1, %v5182_v7 }
 0x18d   :  { %v1615_v55 = vsub.s32 32, %v1614_v63  ;;  %v1616_v3 = vshll.u32 %v5167_v25, %v1614_v63  ;;  %v1619_v22 = vsub.s32 4294967266, %v1614_v63  ;;  %vm1762_vm2 = vcmp.gt.s32.totalorder %v1761_v61, 0 }
 0x18e   :  { %v1632_v35 = vsel %vm5190_vm15, 0, %v1630_v1  ;;  %vm1704_vm3 = vc.u32 %v5195_v50, %v5181_v31  ;;  %v1758_v8 = vand.u32 8388607, %v1751_v28  ;;  %v1763_v32 = vsel %vm1762_vm2, %v1761_v61, 0 }
 0x18f   :  { %v3783_v11 = vpop.eup %3782  ;;  %vm1538_vm4 = vcmp.eq.s32.totalorder %v1533_v15, 2  ;;  %v1617_v56 = vshrl.u32 %v1599_v46, %v1615_v55  ;;  %v1620_v49 = vadd.s32 127, %v1619_v22  ;;  %v1706_v19 = vsel %vm1704_vm3, %v1705_v58, %v5182_v7 }
 0x190   :  { %v3785_v43 = vpop.eup %3784  ;;  %vm1535_vm5 = vcmp.eq.s32.totalorder %v1533_v15, 0  ;;  %v1539_v4 = vxor.u32 2147483648, %v3783_v11  ;;  %v1707_v25 = vadd.s32 %v1706_v19, %v1702_v27  ;;  %v1765_v6 = vand.u32 31, %v1763_v32 }
 0x191   :  { %v1536_v57 = vxor.u32 2147483648, %v3785_v43  ;;  %v1618_v51 = vor.u32 %v1617_v56, %v1616_v3  ;;  %v1621_v62 = vshll.u32 %v1620_v49, 23  ;;  %v1636_v9 = vadd.s32 3, %v1632_v35 }
 0x192   :  { %v1540_v37 = vsel %vm1538_vm4, %v1539_v4, %v3785_v43  ;;  %v1708_v45 = vadd.s32 536870912, %v1707_v25  ;;  %v1759_v18 = vor.u32 8388608, %v1758_v8  ;;  %v1766_v41 = vsub.s32 32, %v1765_v6 }
 0x193   :  { %v1537_v59 = vsel %vm1535_vm5, %v3783_v11, %v1536_v57  ;;  %v1622_v34 = vor.u32 4788187, %v1621_v62  ;;  %v1625_v5 = vcvt.s32.f32 %v1618_v51  ;;  %v1858_v17 = vand.u32 2139095040, %v5039_v14 }
 0x194   :  { %v1541_v54 = vsel %vm1534_vm1, %v1537_v59, %v1540_v37  ;;  %v5213_v23 = vshrl.u32 %v1708_v45, 30  ;;  %v1768_v47 = vshll.u32 %v3905_v36, %v1765_v6  ;;  %v1769_v0 = vshrl.u32 %v3906_v38, %v1766_v41 }
 0x195   :  { %v1542_v10 = vsel %vm1531_vm14, nan, %v1541_v54  ;;  %v1623_v21 = vand.u32 2147483647, %v1622_v34  ;;  %v1771_v12 = vshll.u32 %v3906_v38, %v1765_v6  ;;  %v1772_v7 = vshrl.u32 %v3907_v40, %v1766_v41 }
 0x196   :  { %v1710_v29 = vshll.u32 %v5213_v23, 30  ;;  %v1764_v39 = vshrl.u32 %v1763_v32, 5  ;;  %v1774_v15 = vshll.u32 %v3907_v40, %v1765_v6  ;;  %v1775_v2 = vshrl.u32 %v3908_v42, %v1766_v41  ;;  %3428 = vst [vmem:[#allocation5 + $0x68] sm:$0xff] %v1542_v10 }
 0x197   :  { %v1626_v20 = vmul.f32 %v1625_v5, %v1623_v21  ;;  %v1777_v26 = vshll.u32 %v3908_v42, %v1765_v6  ;;  %v1778_v46 = vshrl.u32 %v3909_v44, %v1766_v41  ;;  %v1855_v24 = vand.u32 2147483647, %v5039_v14 }
 0x198   :  { %v5227_v1 = vsub.s32 %v1707_v25, %v1710_v29  ;;  %v1770_v61 = vor.u32 %v1769_v0, %v1768_v47  ;;  %v1780_v63 = vshll.u32 %v3909_v44, %v1765_v6  ;;  %v5230_v27 = vshll.u32 %v1759_v18, 8 }
 0x199   :  { %v1627_v58 = vxor.u32 2147483648, %v1626_v20  ;;  %v1773_v55 = vor.u32 %v1772_v7, %v1771_v12  ;;  %v1779_v3 = vor.u32 %v1778_v46, %v1777_v26  ;;  %v1781_v22 = vshrl.u32 %v3910_v52, %v1766_v41 }
 0x19a   :  { %v1713_v35 = vsub.s32 0, %v5227_v1  ;;  %v1776_v8 = vor.u32 %v1775_v2, %v1774_v15  ;;  %vm1783_vm6 = vcmp.lt.s32.totalorder %v1764_v39, 1  ;;  %v1859_v32 = vshrl.u32 %v1858_v17, 23 }
 0x19b   :  { %v1628_v11 = vsel %vm1545_vm13, %v1627_v58, %v1626_v20  ;;  %v1767_v56 = vshrl.u32 %v3905_v36, %v1766_v41  ;;  %vm1785_vm7 = vcmp.lt.s32.totalorder %v1764_v39, 3  ;;  %vm1786_vm8 = vcmp.lt.s32.totalorder %v1764_v39, 4 }
 0x19c   :  { %v1631_v49 = vsel %vm5190_vm15, %v4874_v13, %v1628_v11  ;;  %v3525_v19 = vmin.u32 %v1713_v35, %v5227_v1  ;;  %v1782_v43 = vor.u32 %v1781_v22, %v1780_v63  ;;  %v1788_v4 = vsel %vm1786_vm8, %v1776_v8, 2102212464 }
 0x19d   :  { %3786 = vcosq.f32 %v1631_v49  ;;  %vm1784_vm10 = vcmp.lt.s32.totalorder %v1764_v39, 2  ;;  %v1791_v25 = vsel %vm1783_vm6, %v1770_v61, %v1773_v55  ;;  %v1792_v6 = vsel %vm1786_vm8, %v1779_v3, 920167782 }
 0x19e   :  { %3788 = vsinq.f32 %v1631_v49  ;;  %v5244_v57 = vand.u32 3, %v1636_v9  ;;  %v1715_v51 = vclz %v3525_v19  ;;  %v1862_v62 = vand.u32 8388607, %v1855_v24 }
 0x19f   :  { %v1787_v48 = vsel %vm1783_vm6, %v1767_v56, %v1770_v61  ;;  %v1789_v37 = vsel %vm1785_vm7, %v1773_v55, %v1788_v4  ;;  %v1793_v45 = vsel %vm1785_vm7, %v1776_v8, %v1792_v6  ;;  %v1795_v18 = vsel %vm1783_vm6, %v1773_v55, %v1776_v8 }
 0x1a0   :  { %v3526_v41 = vadd.s32 4294967294, %v1715_v51  ;;  %v1733_v59 = vsub.s32 4, %v5213_v23  ;;  %v1794_v34 = vsel %vm1784_vm10, %v1791_v25, %v1793_v45  ;;  %v1796_v9 = vsel %vm1786_vm8, %v1782_v43, 1326507024 }
 0x1a1   :  { %v1797_v5 = vsel %vm1785_vm7, %v1779_v3, %v1796_v9  ;;  %v5257_v17 = vmul.u32.u64.low %v5230_v27, %v1794_v34  ;;  %v5258_v54 = vmul.u32.u64.high %v5230_v27, %v1794_v34, %v5257_v17  ;;  %v3532_v47 = vadd.s32 4294967169, %v1859_v32 }
 0x1a2   :  { %v1703_v0 = vadd.s32 %v5181_v31, %v5195_v50  ;;  %vm3527_vm11 = vcmp.lt.s32.totalorder %v3526_v41, 0  ;;  %v1790_v10 = vsel %vm1784_vm10, %v1787_v48, %v1789_v37  ;;  %v1798_v21 = vsel %vm1784_vm10, %v1795_v18, %v1797_v5 }
 0x1a3   :  { %v1718_v12 = vsel %vm3527_vm11, 0, %v3526_v41  ;;  %v5266_v7 = vmul.u32.u64.low %v5230_v27, %v1798_v21  ;;  %v5267_v29 = vmul.u32.u64.high %v5230_v27, %v1798_v21, %v5266_v7  ;;  %v1865_v15 = vadd.s32 1, %v3532_v47 }
 0x1a4   :  { %vm1649_vm12 = vcmp.lt.s32.totalorder %v4876_v53, 0  ;;  %v1719_v2 = vsub.s32 32, %v1718_v12  ;;  %v1720_v20 = vshll.u32 %v5227_v1, %v1718_v12  ;;  %v1723_v26 = vsub.s32 4294967266, %v1718_v12 }
 0x1a5   :  { %vm1635_vm9 = vweird.f32 %v4874_v13  ;;  %v5275_v31 = vsel %vm1649_vm12, %v1733_v59, %v5213_v23  ;;  %v1806_v50 = vmul.u32 %v5230_v27, %v1790_v10  ;;  %v1809_v39 = vadd.s32 1, %v5258_v54 }
 0x1a6   :  { %vm1866_vm13 = vcmp.gt.s32.totalorder %v1865_v15, 0  ;;  %v1721_v46 = vshrl.u32 %v1703_v0, %v1719_v2  ;;  %v1724_v61 = vadd.s32 127, %v1723_v26  ;;  %v1863_v63 = vor.u32 8388608, %v1862_v62 }
 0x1a7   :  { %v1867_v58 = vsel %vm1866_vm13, %v1865_v15, 0  ;;  %vm1638_vm14 = vcmp.lt.s32.totalorder %v5244_v57, 2  ;;  %vm5282_vm15 = vcmp.le.f32.partialorder %v1647_v60, 0.7853982  ;;  %vm1808_vm0 = vc.u32 %v5267_v29, %v5257_v17 }
 0x1a8   :  { %v1869_v23 = vand.u32 31, %v1867_v58  ;;  %vm1639_vm1 = vcmp.eq.s32.totalorder %v5244_v57, 0  ;;  %v1722_v27 = vor.u32 %v1721_v46, %v1720_v20  ;;  %v1725_v55 = vshll.u32 %v1724_v61, 23 }
 0x1a9   :  { %v1810_v3 = vsel %vm1808_vm0, %v1809_v39, %v5258_v54  ;;  %vm1642_vm2 = vcmp.eq.s32.totalorder %v5244_v57, 2  ;;  %v1736_v22 = vsel %vm5282_vm15, 0, %v5275_v31  ;;  %v5294_v56 = vshrl.u32 %v1867_v58, 5 }
 0x1aa   :  { %v1811_v60 = vadd.s32 %v1810_v3, %v1806_v50  ;;  %v1870_v35 = vsub.s32 32, %v1869_v23  ;;  %v3787_v8 = vpop.eup %3786  ;;  %v1726_v32 = vor.u32 4788187, %v1725_v55  ;;  %v1729_v11 = vcvt.s32.f32 %v1722_v27 }
 0x1ab   :  { %v5296_v49 = vshll.u32 %v1863_v63, 8  ;;  %v3789_v19 = vpop.eup %3788  ;;  %v1643_v43 = vxor.u32 2147483648, %v3787_v8  ;;  %v1872_v25 = vshll.u32 %v3905_v36, %v1869_v23  ;;  %v1875_v6 = vshll.u32 %v3906_v38, %v1869_v23 }
 0x1ac   :  { %v1812_v4 = vadd.s32 536870912, %v1811_v60  ;;  %v1640_v51 = vxor.u32 2147483648, %v3789_v19  ;;  %v1727_v62 = vand.u32 2147483647, %v1726_v32  ;;  %v1873_v48 = vshrl.u32 %v3906_v38, %v1870_v35 }
 0x1ad   :  { %v1878_v37 = vshll.u32 %v3907_v40, %v1869_v23  ;;  %v1644_v45 = vsel %vm1642_vm2, %v1643_v43, %v3789_v19  ;;  %v1876_v41 = vshrl.u32 %v3907_v40, %v1870_v35  ;;  %v1879_v59 = vshrl.u32 %v3908_v42, %v1870_v35 }
 0x1ae   :  { %v1813_v18 = vshrl.u32 %v1812_v4, 30  ;;  %v1641_v34 = vsel %vm1639_vm1, %v3787_v8, %v1640_v51  ;;  %v1730_v9 = vmul.f32 %v1729_v11, %v1727_v62  ;;  %v1881_v5 = vshll.u32 %v3908_v42, %v1869_v23 }
 0x1af   :  { %v1882_v54 = vshrl.u32 %v3909_v44, %v1870_v35  ;;  %v1645_v47 = vsel %vm1638_vm14, %v1641_v34, %v1644_v45  ;;  %v1871_v10 = vshrl.u32 %v3905_v36, %v1870_v35  ;;  %v1962_v21 = vand.u32 2139095040, %v5058_v16 }
 0x1b0   :  { %v1814_v0 = vshll.u32 %v1813_v18, 30  ;;  %v1646_v12 = vsel %vm1635_vm9, nan, %v1645_v47  ;;  %v1731_v7 = vxor.u32 2147483648, %v1730_v9  ;;  %v1884_v15 = vshll.u32 %v3909_v44, %v1869_v23 }
 0x1b1   :  { %v1885_v2 = vshrl.u32 %v3910_v52, %v1870_v35  ;;  %v1874_v26 = vor.u32 %v1873_v48, %v1872_v25  ;;  %v1877_v31 = vor.u32 %v1876_v41, %v1875_v6  ;;  %v1880_v50 = vor.u32 %v1879_v59, %v1878_v37  ;;  %3429 = vst [vmem:[#allocation5 + $0x70] sm:$0xff] %v1646_v12 }
 0x1b2   :  { %v5318_v20 = vsub.s32 %v1811_v60, %v1814_v0  ;;  %v1732_v57 = vsel %vm1649_vm12, %v1731_v7, %v1730_v9  ;;  %v1883_v39 = vor.u32 %v1882_v54, %v1881_v5  ;;  %vm1887_vm3 = vcmp.lt.s32.totalorder %v5294_v56, 1 }
 0x1b3   :  { %v1886_v46 = vor.u32 %v1885_v2, %v1884_v15  ;;  %v1735_v13 = vsel %vm5282_vm15, %v4876_v53, %v1732_v57  ;;  %v1837_v63 = vsub.s32 4, %v1813_v18  ;;  %vm1890_vm4 = vcmp.lt.s32.totalorder %v5294_v56, 4 }
 0x1b4   :  { %v1817_v61 = vsub.s32 0, %v5318_v20  ;;  %3790 = vcosq.f32 %v1735_v13  ;;  %vm1888_vm5 = vcmp.lt.s32.totalorder %v5294_v56, 2  ;;  %vm1889_vm6 = vcmp.lt.s32.totalorder %v5294_v56, 3 }
 0x1b5   :  { %v1892_v58 = vsel %vm1890_vm4, %v1880_v50, 2102212464  ;;  %3792 = vsinq.f32 %v1735_v13  ;;  %v1891_v27 = vsel %vm1887_vm3, %v1871_v10, %v1874_v26  ;;  %v1895_v55 = vsel %vm1887_vm3, %v1874_v26, %v1877_v31 }
 0x1b6   :  { %v3529_v23 = vmin.u32 %v1817_v61, %v5318_v20  ;;  %v1893_v1 = vsel %vm1889_vm6, %v1877_v31, %v1892_v58  ;;  %v1896_v3 = vsel %vm1890_vm4, %v1883_v39, 920167782  ;;  %v1899_v60 = vsel %vm1887_vm3, %v1877_v31, %v1880_v50 }
 0x1b7   :  { %v1900_v35 = vsel %vm1890_vm4, %v1886_v46, 1326507024  ;;  %v1740_v8 = vadd.s32 3, %v1736_v22  ;;  %vm5335_vm7 = vcmp.le.f32.partialorder %v1751_v28, 0.7853982  ;;  %vm1753_vm8 = vcmp.lt.s32.totalorder %v5021_v33, 0 }
 0x1b8   :  { %v1819_v11 = vclz %v3529_v23  ;;  %v1838_v19 = vsel %vm1753_vm8, %v1837_v63, %v1813_v18  ;;  %v1897_v43 = vsel %vm1889_vm6, %v1880_v50, %v1896_v3  ;;  %v1901_v4 = vsel %vm1889_vm6, %v1883_v39, %v1900_v35  ;;  %v43_v18 = vld [vmem:[#allocation2 + $0xa0] sm:$0xff] }
 0x1b9   :  { %v1963_v25 = vshrl.u32 %v1962_v21, 23  ;;  %v1894_v28 = vsel %vm1888_vm5, %v1891_v27, %v1893_v1  ;;  %v1898_v6 = vsel %vm1888_vm5, %v1895_v55, %v1897_v43  ;;  %v1902_v51 = vsel %vm1888_vm5, %v1899_v60, %v1901_v4 }
 0x1ba   :  { %v3530_v22 = vadd.s32 4294967294, %v1819_v11  ;;  %v5353_v62 = vmul.u32.u64.low %v5296_v49, %v1902_v51  ;;  %v5354_v48 = vmul.u32.u64.high %v5296_v49, %v1902_v51, %v5353_v62  ;;  %v1807_v41 = vadd.s32 %v5257_v17, %v5267_v29 }
 0x1bb   :  { %v5357_v37 = vmul.u32.u64.low %v5296_v49, %v1898_v6  ;;  %v5358_v45 = vmul.u32.u64.high %v5296_v49, %v1898_v6, %v5357_v37  ;;  %v1840_v59 = vsel %vm5335_vm7, 0, %v1838_v19  ;;  %v3536_v34 = vadd.s32 4294967169, %v1963_v25 }
 0x1bc   :  { %vm3531_vm10 = vcmp.lt.s32.totalorder %v3530_v22, 0  ;;  %v1741_v56 = vand.u32 3, %v1740_v8  ;;  %v1910_v5 = vmul.u32 %v5296_v49, %v1894_v28  ;;  %v1959_v54 = vand.u32 2147483647, %v5058_v16 }
 0x1bd   :  { %v1822_v9 = vsel %vm3531_vm10, 0, %v3530_v22  ;;  %v1969_v21 = vadd.s32 1, %v3536_v34  ;;  %v5368_v12 = vmul.f32 30.0, %v43_v18  ;;  %v1844_v7 = vadd.s32 3, %v1840_v59 }
 0x1be   :  { %v1823_v47 = vsub.s32 32, %v1822_v9  ;;  %v1824_v0 = vshll.u32 %v5318_v20, %v1822_v9  ;;  %v1827_v10 = vsub.s32 4294967266, %v1822_v9  ;;  %vm1912_vm11 = vc.u32 %v5354_v48, %v5357_v37 }
 0x1bf   :  { %v1913_v17 = vadd.s32 1, %v5358_v45  ;;  %vm1739_vm12 = vweird.f32 %v4876_v53  ;;  %vm1970_vm9 = vcmp.gt.s32.totalorder %v1969_v21, 0  ;;  %vm1742_vm13 = vcmp.lt.s32.totalorder %v1741_v56, 2 }
 0x1c0   :  { %v1825_v29 = vshrl.u32 %v1807_v41, %v1823_v47  ;;  %v1828_v15 = vadd.s32 127, %v1827_v10  ;;  %v1966_v2 = vand.u32 8388607, %v1959_v54  ;;  %v1971_v20 = vsel %vm1970_vm9, %v1969_v21, 0 }
 0x1c1   :  { %v1914_v49 = vsel %vm1912_vm11, %v1913_v17, %v5358_v45  ;;  %v3791_v26 = vpop.eup %3790  ;;  %vm1746_vm14 = vcmp.eq.s32.totalorder %v1741_v56, 2  ;;  %vm1743_vm15 = vcmp.eq.s32.totalorder %v1741_v56, 0  ;;  %v5377_v13 = vand.u32 3, %v1844_v7 }
 0x1c2   :  { %v1826_v31 = vor.u32 %v1825_v29, %v1824_v0  ;;  %v1829_v50 = vshll.u32 %v1828_v15, 23  ;;  %v1915_v57 = vadd.s32 %v1914_v49, %v1910_v5  ;;  %v3793_v39 = vpop.eup %3792  ;;  %v1747_v46 = vxor.u32 2147483648, %v3791_v26 }
 0x1c3   :  { %v1973_v61 = vand.u32 31, %v1971_v20  ;;  %v1744_v63 = vxor.u32 2147483648, %v3793_v39  ;;  %v1967_v1 = vor.u32 8388608, %v1966_v2  ;;  %v2066_v60 = vand.u32 2139095040, %v5177_v30 }
 0x1c4   :  { %v1830_v58 = vor.u32 4788187, %v1829_v50  ;;  %v1833_v23 = vcvt.s32.f32 %v1826_v31  ;;  %v1916_v27 = vadd.s32 536870912, %v1915_v57  ;;  %v1748_v55 = vsel %vm1746_vm14, %v1747_v46, %v3793_v39 }
 0x1c5   :  { %v1974_v3 = vsub.s32 32, %v1973_v61  ;;  %v1745_v35 = vsel %vm1743_vm15, %v3791_v26, %v1744_v63  ;;  %v1976_v19 = vshll.u32 %v3905_v36, %v1973_v61  ;;  %v1979_v25 = vshll.u32 %v3906_v38, %v1973_v61 }
 0x1c6   :  { %v1831_v8 = vand.u32 2147483647, %v1830_v58  ;;  %v5380_v11 = vshrl.u32 %v1916_v27, 30  ;;  %v1749_v43 = vsel %vm1742_vm13, %v1745_v35, %v1748_v55  ;;  %v1982_v22 = vshll.u32 %v3907_v40, %v1973_v61 }
 0x1c7   :  { %v1977_v4 = vshrl.u32 %v3906_v38, %v1974_v3  ;;  %v1750_v28 = vsel %vm1739_vm12, nan, %v1749_v43  ;;  %v1980_v62 = vshrl.u32 %v3907_v40, %v1974_v3  ;;  %v1972_v45 = vshrl.u32 %v1971_v20, 5 }
 0x1c8   :  { %v1834_v6 = vmul.f32 %v1833_v23, %v1831_v8  ;;  %v1918_v51 = vshll.u32 %v5380_v11, 30  ;;  %v1983_v18 = vshrl.u32 %v3908_v42, %v1974_v3  ;;  %v1985_v41 = vshll.u32 %v3908_v42, %v1973_v61  ;;  %3430 = vst [vmem:[#allocation5 + $0x78] sm:$0xff] %v1750_v28 }
 0x1c9   :  { %v2063_v59 = vand.u32 2147483647, %v5177_v30  ;;  %v1986_v9 = vshrl.u32 %v3909_v44, %v1974_v3  ;;  %v2067_v53 = vshrl.u32 %v2066_v60, 23  ;;  %v1975_v5 = vshrl.u32 %v3905_v36, %v1974_v3 }
 0x1ca   :  { %v1835_v34 = vxor.u32 2147483648, %v1834_v6  ;;  %v5394_v56 = vsub.s32 %v1915_v57, %v1918_v51  ;;  %v1978_v47 = vor.u32 %v1977_v4, %v1976_v19  ;;  %v1988_v0 = vshll.u32 %v3909_v44, %v1973_v61 }
 0x1cb   :  { %v1989_v10 = vshrl.u32 %v3910_v52, %v1974_v3  ;;  %v1981_v17 = vor.u32 %v1980_v62, %v1979_v25  ;;  %v1984_v29 = vor.u32 %v1983_v18, %v1982_v22  ;;  %v1987_v49 = vor.u32 %v1986_v9, %v1985_v41 }
 0x1cc   :  { %v1836_v21 = vsel %vm1753_vm8, %v1835_v34, %v1834_v6  ;;  %v1921_v7 = vsub.s32 0, %v5394_v56  ;;  %vm1991_vm0 = vcmp.lt.s32.totalorder %v1972_v45, 1  ;;  %v1911_v20 = vadd.s32 %v5357_v37, %v5354_v48 }
 0x1cd   :  { %v1839_v15 = vsel %vm5335_vm7, %v5021_v33, %v1836_v21  ;;  %v1990_v2 = vor.u32 %v1989_v10, %v1988_v0  ;;  %v2007_v31 = vshll.u32 %v1967_v1, 8  ;;  %vm1993_vm1 = vcmp.lt.s32.totalorder %v1972_v45, 3 }
 0x1ce   :  { %3794 = vcosq.f32 %v1839_v15  ;;  %v3533_v26 = vmin.u32 %v1921_v7, %v5394_v56  ;;  %vm1994_vm2 = vcmp.lt.s32.totalorder %v1972_v45, 4  ;;  %v3540_v50 = vadd.s32 4294967169, %v2067_v53 }
 0x1cf   :  { %3796 = vsinq.f32 %v1839_v15  ;;  %vm1992_vm3 = vcmp.lt.s32.totalorder %v1972_v45, 2  ;;  %v1995_v39 = vsel %vm1991_vm0, %v1975_v5, %v1978_v47  ;;  %v1999_v46 = vsel %vm1991_vm0, %v1978_v47, %v1981_v17 }
 0x1d0   :  { %v1923_v57 = vclz %v3533_v26  ;;  %v1996_v32 = vsel %vm1994_vm2, %v1984_v29, 2102212464  ;;  %v2000_v61 = vsel %vm1994_vm2, %v1987_v49, 920167782  ;;  %v2003_v63 = vsel %vm1991_vm0, %v1981_v17, %v1984_v29 }
 0x1d1   :  { %v2004_v58 = vsel %vm1994_vm2, %v1990_v2, 1326507024  ;;  %v1997_v27 = vsel %vm1993_vm1, %v1981_v17, %v1996_v32  ;;  %v2001_v55 = vsel %vm1993_vm1, %v1984_v29, %v2000_v61  ;;  %v5413_v1 = vand.u32 8388607, %v2063_v59 }
 0x1d2   :  { %v3534_v23 = vadd.s32 4294967294, %v1923_v57  ;;  %v2005_v3 = vsel %vm1993_vm1, %v1987_v49, %v2004_v58  ;;  %v2002_v48 = vsel %vm1992_vm3, %v1999_v46, %v2001_v55  ;;  %v2073_v60 = vadd.s32 1, %v3540_v50 }
 0x1d3   :  { %v2006_v37 = vsel %vm1992_vm3, %v2003_v63, %v2005_v3  ;;  %v1998_v35 = vsel %vm1992_vm3, %v1995_v39, %v1997_v27  ;;  %v5419_v4 = vmul.u32.u64.low %v2007_v31, %v2002_v48  ;;  %v5420_v25 = vmul.u32.u64.high %v2007_v31, %v2002_v48, %v5419_v4 }
 0x1d4   :  { %vm3535_vm4 = vcmp.lt.s32.totalorder %v3534_v23, 0  ;;  %v5416_v8 = vmul.u32.u64.low %v2007_v31, %v2006_v37  ;;  %v5417_v19 = vmul.u32.u64.high %v2007_v31, %v2006_v37, %v5416_v8  ;;  %vm2074_vm5 = vcmp.gt.s32.totalorder %v2073_v60, 0 }
 0x1d5   :  { %v1926_v43 = vsel %vm3535_vm4, 0, %v3534_v23  ;;  %vm1843_vm6 = vweird.f32 %v5021_v33  ;;  %vm1857_vm7 = vcmp.lt.s32.totalorder %v5039_v14, 0  ;;  %v2075_v51 = vsel %vm2074_vm5, %v2073_v60, 0 }
 0x1d6   :  { %v1927_v22 = vsub.s32 32, %v1926_v43  ;;  %v1928_v28 = vshll.u32 %v5394_v56, %v1926_v43  ;;  %v1931_v6 = vsub.s32 4294967266, %v1926_v43  ;;  %vm1846_vm8 = vcmp.lt.s32.totalorder %v5377_v13, 2 }
 0x1d7   :  { %vm1847_vm10 = vcmp.eq.s32.totalorder %v5377_v13, 0  ;;  %vm1850_vm11 = vcmp.eq.s32.totalorder %v5377_v13, 2  ;;  %v2077_v62 = vand.u32 31, %v2075_v51  ;;  %v2014_v41 = vmul.u32 %v2007_v31, %v1998_v35 }
 0x1d8   :  { %v1929_v45 = vshrl.u32 %v1911_v20, %v1927_v22  ;;  %v1932_v18 = vadd.s32 127, %v1931_v6  ;;  %vm2016_vm12 = vc.u32 %v5417_v19, %v5419_v4  ;;  %v1941_v34 = vsub.s32 4, %v5380_v11 }
 0x1d9   :  { %v2017_v9 = vadd.s32 1, %v5420_v25  ;;  %v2071_v56 = vor.u32 8388608, %v5413_v1  ;;  %v2078_v53 = vsub.s32 32, %v2077_v62  ;;  %vm5436_vm9 = vcmp.le.f32.partialorder %v1855_v24, 0.7853982 }
 0x1da   :  { %v1930_v47 = vor.u32 %v1929_v45, %v1928_v28  ;;  %v1933_v0 = vshll.u32 %v1932_v18, 23  ;;  %v5440_v10 = vshrl.u32 %v2075_v51, 5  ;;  %v2080_v21 = vshll.u32 %v3905_v36, %v2077_v62 }
 0x1db   :  { %v3795_v7 = vpop.eup %3794  ;;  %v2018_v17 = vsel %vm2016_vm12, %v2017_v9, %v5420_v25  ;;  %v2083_v29 = vshll.u32 %v3906_v38, %v2077_v62  ;;  %v2086_v15 = vshll.u32 %v3907_v40, %v2077_v62  ;;  %v2089_v49 = vshll.u32 %v3908_v42, %v2077_v62  ;;  %v44_v9 = vld [vmem:[#allocation2 + $0xa8] sm:$0xff] }
 0x1dc   :  { %v3797_v2 = vpop.eup %3796  ;;  %v1851_v24 = vxor.u32 2147483648, %v3795_v7  ;;  %v1934_v20 = vor.u32 4788187, %v1933_v0  ;;  %v1937_v26 = vcvt.s32.f32 %v1930_v47  ;;  %v2019_v31 = vadd.s32 %v2018_v17, %v2014_v41 }
 0x1dd   :  { %v1848_v50 = vxor.u32 2147483648, %v3797_v2  ;;  %v2081_v57 = vshrl.u32 %v3906_v38, %v2078_v53  ;;  %v2084_v39 = vshrl.u32 %v3907_v40, %v2078_v53  ;;  %v2087_v46 = vshrl.u32 %v3908_v42, %v2078_v53 }
 0x1de   :  { %v1852_v32 = vsel %vm1850_vm11, %v1851_v24, %v3797_v2  ;;  %v1935_v61 = vand.u32 2147483647, %v1934_v20  ;;  %v2020_v63 = vadd.s32 536870912, %v2019_v31  ;;  %v2090_v58 = vshrl.u32 %v3909_v44, %v2078_v53 }
 0x1df   :  { %v1849_v23 = vsel %vm1847_vm10, %v3795_v7, %v1848_v50  ;;  %v1942_v27 = vsel %vm1857_vm7, %v1941_v34, %v5380_v11  ;;  %v2092_v55 = vshll.u32 %v3909_v44, %v2077_v62  ;;  %v2093_v3 = vshrl.u32 %v3910_v52, %v2078_v53 }
 0x1e0   :  { %v1853_v48 = vsel %vm1846_vm8, %v1849_v23, %v1852_v32  ;;  %v1938_v37 = vmul.f32 %v1937_v26, %v1935_v61  ;;  %v2021_v1 = vshrl.u32 %v2020_v63, 30  ;;  %v2079_v60 = vshrl.u32 %v3905_v36, %v2078_v53 }
 0x1e1   :  { %v1854_v35 = vsel %vm1843_vm6, nan, %v1853_v48  ;;  %v2082_v8 = vor.u32 %v2081_v57, %v2080_v21  ;;  %v2085_v43 = vor.u32 %v2084_v39, %v2083_v29  ;;  %v2091_v25 = vor.u32 %v2090_v58, %v2089_v49  ;;  %v45_v49 = vld [vmem:[#allocation2 + $0xb0] sm:$0xff] }
 0x1e2   :  { %v1939_v22 = vxor.u32 2147483648, %v1938_v37  ;;  %v2022_v28 = vshll.u32 %v2021_v1, 30  ;;  %v2088_v11 = vor.u32 %v2087_v46, %v2086_v15  ;;  %vm2095_vm13 = vcmp.lt.s32.totalorder %v5440_v10, 1  ;;  %3431 = vst [vmem:[#allocation5 + $0x80] sm:$0xff] %v1854_v35 }
 0x1e3   :  { %v1944_v13 = vsel %vm5436_vm9, 0, %v1942_v27  ;;  %v2094_v6 = vor.u32 %v2093_v3, %v2092_v55  ;;  %vm2098_vm14 = vcmp.lt.s32.totalorder %v5440_v10, 4  ;;  %v2111_v51 = vshll.u32 %v2071_v56, 8 }
 0x1e4   :  { %v1940_v33 = vsel %vm1857_vm7, %v1939_v22, %v1938_v37  ;;  %v5471_v62 = vsub.s32 %v2019_v31, %v2022_v28  ;;  %vm2097_vm15 = vcmp.lt.s32.totalorder %v5440_v10, 3  ;;  %v2100_v45 = vsel %vm2098_vm14, %v2088_v11, 2102212464 }
 0x1e5   :  { %v1943_v18 = vsel %vm5436_vm9, %v5039_v14, %v1940_v33  ;;  %vm2096_vm0 = vcmp.lt.s32.totalorder %v5440_v10, 2  ;;  %v2103_v41 = vsel %vm2095_vm13, %v2082_v8, %v2085_v43  ;;  %v2104_v34 = vsel %vm2098_vm14, %v2091_v25, 920167782 }
 0x1e6   :  { %3798 = vcosq.f32 %v1943_v18  ;;  %v2025_v56 = vsub.s32 0, %v5471_v62  ;;  %v2099_v53 = vsel %vm2095_vm13, %v2079_v60, %v2082_v8  ;;  %v2107_v47 = vsel %vm2095_vm13, %v2085_v43, %v2088_v11 }
 0x1e7   :  { %3800 = vsinq.f32 %v1943_v18  ;;  %v2101_v5 = vsel %vm2097_vm15, %v2085_v43, %v2100_v45  ;;  %v2105_v0 = vsel %vm2097_vm15, %v2088_v11, %v2104_v34  ;;  %v2108_v21 = vsel %vm2098_vm14, %v2094_v6, 1326507024 }
 0x1e8   :  { %v3537_v7 = vmin.u32 %v2025_v56, %v5471_v62  ;;  %v2045_v17 = vsub.s32 4, %v2021_v1  ;;  %v2106_v29 = vsel %vm2096_vm0, %v2103_v41, %v2105_v0  ;;  %v2109_v15 = vsel %vm2097_vm15, %v2091_v25, %v2108_v21 }
 0x1e9   :  { %v5500_v2 = vmul.f32 30.0, %v44_v9  ;;  %v2110_v24 = vsel %vm2096_vm0, %v2107_v47, %v2109_v15  ;;  %v5504_v20 = vmul.u32.u64.low %v2111_v51, %v2106_v29  ;;  %v5505_v26 = vmul.u32.u64.high %v2111_v51, %v2106_v29, %v5504_v20 }
 0x1ea   :  { %v1948_v31 = vadd.s32 3, %v1944_v13  ;;  %v2027_v50 = vclz %v3537_v7  ;;  %v2102_v57 = vsel %vm2096_vm0, %v2099_v53, %v2101_v5  ;;  %vm1961_vm1 = vcmp.lt.s32.totalorder %v5058_v16, 0 }
 0x1eb   :  { %v5510_v39 = vmul.u32.u64.low %v2111_v51, %v2110_v24  ;;  %v5511_v46 = vmul.u32.u64.high %v2111_v51, %v2110_v24, %v5510_v39  ;;  %v2167_v32 = vand.u32 2147483647, %v5368_v12  ;;  %v5514_v61 = vmul.f32 30.0, %v45_v49 }
 0x1ec   :  { %v3538_v63 = vadd.s32 4294967294, %v2027_v50  ;;  %v2046_v58 = vsel %vm1961_vm1, %v2045_v17, %v2021_v1  ;;  %v2170_v23 = vand.u32 2139095040, %v5368_v12  ;;  %vm5521_vm2 = vcmp.le.f32.partialorder %v1959_v54, 0.7853982 }
 0x1ed   :  { %v2118_v27 = vmul.u32 %v2111_v51, %v2102_v57  ;;  %v2121_v55 = vadd.s32 1, %v5505_v26  ;;  %v2274_v3 = vand.u32 2139095040, %v5500_v2  ;;  %v1949_v48 = vand.u32 3, %v1948_v31 }
 0x1ee   :  { %v2015_v37 = vadd.s32 %v5419_v4, %v5417_v19  ;;  %vm3539_vm3 = vcmp.lt.s32.totalorder %v3538_v63, 0  ;;  %v2171_v60 = vshrl.u32 %v2170_v23, 23  ;;  %v2048_v35 = vsel %vm5521_vm2, 0, %v2046_v58 }
 0x1ef   :  { %v2030_v1 = vsel %vm3539_vm3, 0, %v3538_v63  ;;  %vm2120_vm4 = vc.u32 %v5511_v46, %v5504_v20  ;;  %v2174_v54 = vand.u32 8388607, %v2167_v32  ;;  %vm1947_vm5 = vweird.f32 %v5039_v14 }
 0x1f0   :  { %v2031_v8 = vsub.s32 32, %v2030_v1  ;;  %v2032_v43 = vshll.u32 %v5471_v62, %v2030_v1  ;;  %v2035_v25 = vsub.s32 4294967266, %v2030_v1  ;;  %v2122_v22 = vsel %vm2120_vm4, %v2121_v55, %v5505_v26 }
 0x1f1   :  { %v2123_v19 = vadd.s32 %v2122_v22, %v2118_v27  ;;  %v3544_v4 = vadd.s32 4294967169, %v2171_v60  ;;  %v2275_v28 = vshrl.u32 %v2274_v3, 23  ;;  %vm1950_vm6 = vcmp.lt.s32.totalorder %v1949_v48, 2 }
 0x1f2   :  { %vm1951_vm7 = vcmp.eq.s32.totalorder %v1949_v48, 0  ;;  %v2033_v11 = vshrl.u32 %v2015_v37, %v2031_v8  ;;  %v2036_v13 = vadd.s32 127, %v2035_v25  ;;  %vm1954_vm8 = vcmp.eq.s32.totalorder %v1949_v48, 2 }
 0x1f3   :  { %v3799_v6 = vpop.eup %3798  ;;  %v2052_v51 = vadd.s32 3, %v2048_v35  ;;  %v2124_v33 = vadd.s32 536870912, %v2123_v19  ;;  %v2177_v45 = vadd.s32 1, %v3544_v4  ;;  %v2175_v9 = vor.u32 8388608, %v2174_v54 }
 0x1f4   :  { %v3801_v18 = vpop.eup %3800  ;;  %v1955_v41 = vxor.u32 2147483648, %v3799_v6  ;;  %v2034_v62 = vor.u32 %v2033_v11, %v2032_v43  ;;  %v2037_v34 = vshll.u32 %v2036_v13, 23  ;;  %vm2065_vm10 = vcmp.lt.s32.totalorder %v5177_v30, 0 }
 0x1f5   :  { %v1952_v56 = vxor.u32 2147483648, %v3801_v18  ;;  %v2125_v53 = vshrl.u32 %v2124_v33, 30  ;;  %vm2178_vm11 = vcmp.gt.s32.totalorder %v2177_v45, 0  ;;  %v3548_v47 = vadd.s32 4294967169, %v2275_v28 }
 0x1f6   :  { %v1956_v5 = vsel %vm1954_vm8, %v1955_v41, %v3801_v18  ;;  %v2038_v0 = vor.u32 4788187, %v2037_v34  ;;  %v2041_v21 = vcvt.s32.f32 %v2034_v62  ;;  %v2179_v7 = vsel %vm2178_vm11, %v2177_v45, 0 }
 0x1f7   :  { %v1953_v17 = vsel %vm1951_vm7, %v3799_v6, %v1952_v56  ;;  %v5539_v29 = vand.u32 3, %v2052_v51  ;;  %v2126_v15 = vshll.u32 %v2125_v53, 30  ;;  %v2271_v49 = vand.u32 2147483647, %v5500_v2 }
 0x1f8   :  { %v1957_v24 = vsel %vm1950_vm6, %v1953_v17, %v1956_v5  ;;  %v2039_v26 = vand.u32 2147483647, %v2038_v0  ;;  %v2119_v31 = vadd.s32 %v5504_v20, %v5511_v46  ;;  %v2181_v50 = vand.u32 31, %v2179_v7 }
 0x1f9   :  { %v1958_v57 = vsel %vm1947_vm5, nan, %v1957_v24  ;;  %vm5548_vm12 = vcmp.le.f32.partialorder %v2063_v59, 0.7853982  ;;  %v5552_v63 = vsub.s32 %v2123_v19, %v2126_v15  ;;  %v5554_v58 = vshll.u32 %v2175_v9, 8 }
 0x1fa   :  { %v2281_v23 = vadd.s32 1, %v3548_v47  ;;  %v2042_v27 = vmul.f32 %v2041_v21, %v2039_v26  ;;  %v2149_v55 = vsub.s32 4, %v2125_v53  ;;  %v2180_v3 = vshrl.u32 %v2179_v7, 5  ;;  %3432 = vst [vmem:[#allocation5 + $0x88] sm:$0xff] %v1958_v57 }
 0x1fb   :  { %v2182_v48 = vsub.s32 32, %v2181_v50  ;;  %v2129_v20 = vsub.s32 0, %v5552_v63  ;;  %v2184_v14 = vshll.u32 %v3905_v36, %v2181_v50  ;;  %v2187_v46 = vshll.u32 %v3906_v38, %v2181_v50 }
 0x1fc   :  { %v5561_v59 = vand.u32 8388607, %v2271_v49  ;;  %v2043_v37 = vxor.u32 2147483648, %v2042_v27  ;;  %v2190_v35 = vshll.u32 %v3907_v40, %v2181_v50  ;;  %v2193_v43 = vshll.u32 %v3908_v42, %v2181_v50 }
 0x1fd   :  { %v2185_v60 = vshrl.u32 %v3906_v38, %v2182_v48  ;;  %v2188_v1 = vshrl.u32 %v3907_v40, %v2182_v48  ;;  %v3541_v54 = vmin.u32 %v2129_v20, %v5552_v63  ;;  %v2191_v8 = vshrl.u32 %v3908_v42, %v2182_v48 }
 0x1fe   :  { %vm2282_vm9 = vcmp.gt.s32.totalorder %v2281_v23, 0  ;;  %v2044_v25 = vsel %vm1961_vm1, %v2043_v37, %v2042_v27  ;;  %v2150_v22 = vsel %vm2065_vm10, %v2149_v55, %v2125_v53  ;;  %v2194_v19 = vshrl.u32 %v3909_v44, %v2182_v48 }
 0x1ff   :  { %vm2199_vm13 = vcmp.lt.s32.totalorder %v2180_v3, 1  ;;  %v2047_v4 = vsel %vm5521_vm2, %v5058_v16, %v2044_v25  ;;  %v2131_v28 = vclz %v3541_v54  ;;  %v2183_v11 = vshrl.u32 %v3905_v36, %v2182_v48 }
 0x200   :  { %v2186_v13 = vor.u32 %v2185_v60, %v2184_v14  ;;  %3802 = vcosq.f32 %v2047_v4  ;;  %v2189_v6 = vor.u32 %v2188_v1, %v2187_v46  ;;  %v2192_v51 = vor.u32 %v2191_v8, %v2190_v35 }
 0x201   :  { %v2195_v33 = vor.u32 %v2194_v19, %v2193_v43  ;;  %3804 = vsinq.f32 %v2047_v4  ;;  %v3542_v45 = vadd.s32 4294967294, %v2131_v28  ;;  %v2196_v18 = vshll.u32 %v3909_v44, %v2181_v50 }
 0x202   :  { %v2197_v41 = vshrl.u32 %v3910_v52, %v2182_v48  ;;  %v2152_v62 = vsel %vm5548_vm12, 0, %v2150_v22  ;;  %vm2200_vm14 = vcmp.lt.s32.totalorder %v2180_v3, 2  ;;  %vm2201_vm15 = vcmp.lt.s32.totalorder %v2180_v3, 3 }
 0x203   :  { %vm2202_vm0 = vcmp.lt.s32.totalorder %v2180_v3, 4  ;;  %vm3543_vm1 = vcmp.lt.s32.totalorder %v3542_v45, 0  ;;  %v2203_v34 = vsel %vm2199_vm13, %v2183_v11, %v2186_v13  ;;  %v2207_v47 = vsel %vm2199_vm13, %v2186_v13, %v2189_v6 }
 0x204   :  { %v2198_v10 = vor.u32 %v2197_v41, %v2196_v18  ;;  %v2204_v9 = vsel %vm2202_vm0, %v2192_v51, 2102212464  ;;  %v2134_v56 = vsel %vm3543_vm1, 0, %v3542_v45  ;;  %v2208_v5 = vsel %vm2202_vm0, %v2195_v33, 920167782 }
 0x205   :  { %v2205_v53 = vsel %vm2201_vm15, %v2189_v6, %v2204_v9  ;;  %v2135_v0 = vsub.s32 32, %v2134_v56  ;;  %v2136_v21 = vshll.u32 %v5552_v63, %v2134_v56  ;;  %v2139_v7 = vsub.s32 4294967266, %v2134_v56 }
 0x206   :  { %v2211_v17 = vsel %vm2199_vm13, %v2189_v6, %v2192_v51  ;;  %vm2055_vm2 = vcmp.eq.s32.totalorder %v5539_v29, 0  ;;  %v2206_v15 = vsel %vm2200_vm14, %v2203_v34, %v2205_v53  ;;  %v2209_v24 = vsel %vm2201_vm15, %v2192_v51, %v2208_v5 }
 0x207   :  { %v2212_v26 = vsel %vm2202_vm0, %v2198_v10, 1326507024  ;;  %v2283_v50 = vsel %vm2282_vm9, %v2281_v23, 0  ;;  %vm2054_vm3 = vcmp.lt.s32.totalorder %v5539_v29, 2  ;;  %v2137_v57 = vshrl.u32 %v2119_v31, %v2135_v0 }
 0x208   :  { %v2140_v27 = vadd.s32 127, %v2139_v7  ;;  %v2210_v55 = vsel %vm2200_vm14, %v2207_v47, %v2209_v24  ;;  %v2213_v63 = vsel %vm2201_vm15, %v2195_v33, %v2212_v26  ;;  %vm2051_vm4 = vweird.f32 %v5058_v16 }
 0x209   :  { %v2214_v48 = vsel %vm2200_vm14, %v2211_v17, %v2213_v63  ;;  %v5600_v20 = vmul.u32.u64.low %v5554_v58, %v2210_v55  ;;  %v5601_v14 = vmul.u32.u64.high %v5554_v58, %v2210_v55, %v5600_v20  ;;  %v5604_v46 = vshrl.u32 %v2283_v50, 5 }
 0x20a   :  { %v2138_v23 = vor.u32 %v2137_v57, %v2136_v21  ;;  %v2141_v37 = vshll.u32 %v2140_v27, 23  ;;  %v5607_v31 = vmul.u32.u64.low %v5554_v58, %v2214_v48  ;;  %v5608_v60 = vmul.u32.u64.high %v5554_v58, %v2214_v48, %v5607_v31 }
 0x20b   :  { %vm2058_vm5 = vcmp.eq.s32.totalorder %v5539_v29, 2  ;;  %v5611_v1 = vadd.s32 3, %v2152_v62  ;;  %v2279_v3 = vor.u32 8388608, %v5561_v59  ;;  %v2285_v35 = vand.u32 31, %v2283_v50 }
 0x20c   :  { %v2142_v54 = vor.u32 4788187, %v2141_v37  ;;  %v2145_v8 = vcvt.s32.f32 %v2138_v23  ;;  %v2222_v43 = vmul.u32 %v5554_v58, %v2206_v15  ;;  %vm2303_vm6 = vcmp.lt.s32.totalorder %v5604_v46, 1 }
 0x20d   :  { %v2225_v25 = vadd.s32 1, %v5601_v14  ;;  %v2286_v22 = vsub.s32 32, %v2285_v35  ;;  %v2288_v19 = vshll.u32 %v3905_v36, %v2285_v35  ;;  %vm2306_vm7 = vcmp.lt.s32.totalorder %v5604_v46, 4  ;;  %v3803_v4 = vpop.eup %3802 }
 0x20e   :  { %v2143_v28 = vand.u32 2147483647, %v2142_v54  ;;  %vm2224_vm8 = vc.u32 %v5608_v60, %v5600_v20  ;;  %v2291_v59 = vshll.u32 %v3906_v38, %v2285_v35  ;;  %v2294_v11 = vshll.u32 %v3907_v40, %v2285_v35  ;;  %v3805_v13 = vpop.eup %3804 }
 0x20f   :  { %v2059_v58 = vxor.u32 2147483648, %v3803_v4  ;;  %v2226_v6 = vsel %vm2224_vm8, %v2225_v25, %v5601_v14  ;;  %v2287_v51 = vshrl.u32 %v3905_v36, %v2286_v22  ;;  %v2289_v33 = vshrl.u32 %v3906_v38, %v2286_v22 }
 0x210   :  { %v2056_v45 = vxor.u32 2147483648, %v3805_v13  ;;  %v2146_v18 = vmul.f32 %v2145_v8, %v2143_v28  ;;  %v2227_v41 = vadd.s32 %v2226_v6, %v2222_v43  ;;  %v2292_v62 = vshrl.u32 %v3907_v40, %v2286_v22 }
 0x211   :  { %v2060_v10 = vsel %vm2058_vm5, %v2059_v58, %v3805_v13  ;;  %v2290_v34 = vor.u32 %v2289_v33, %v2288_v19  ;;  %v2295_v9 = vshrl.u32 %v3908_v42, %v2286_v22  ;;  %v2297_v56 = vshll.u32 %v3908_v42, %v2285_v35  ;;  %v46_v19 = vld [vmem:[#allocation2 + $0xb8] sm:$0xff] }
 0x212   :  { %v2057_v53 = vsel %vm2055_vm2, %v3803_v4, %v2056_v45  ;;  %v2147_v47 = vxor.u32 2147483648, %v2146_v18  ;;  %v2228_v5 = vadd.s32 536870912, %v2227_v41  ;;  %v2293_v0 = vor.u32 %v2292_v62, %v2291_v59 }
 0x213   :  { %v2061_v21 = vsel %vm2054_vm3, %v2057_v53, %v2060_v10  ;;  %v2296_v7 = vor.u32 %v2295_v9, %v2294_v11  ;;  %v2298_v17 = vshrl.u32 %v3909_v44, %v2286_v22  ;;  %v2300_v15 = vshll.u32 %v3909_v44, %v2285_v35 }
 0x214   :  { %v2062_v24 = vsel %vm2051_vm4, nan, %v2061_v21  ;;  %v2148_v26 = vsel %vm2065_vm10, %v2147_v47, %v2146_v18  ;;  %v2229_v50 = vshrl.u32 %v2228_v5, 30  ;;  %v2301_v57 = vshrl.u32 %v3910_v52, %v2286_v22 }
 0x215   :  { %v2151_v27 = vsel %vm5548_vm12, %v5177_v30, %v2148_v26  ;;  %v2299_v29 = vor.u32 %v2298_v17, %v2297_v56  ;;  %vm2305_vm11 = vcmp.lt.s32.totalorder %v5604_v46, 3  ;;  %v2308_v55 = vsel %vm2306_vm7, %v2296_v7, 2102212464  ;;  %3433 = vst [vmem:[#allocation5 + $0x90] sm:$0xff] %v2062_v24  ;;  %v47_v26 = vld [vmem:[#allocation2 + $0xc0] sm:$0xff] }
 0x216   :  { %3806 = vcosq.f32 %v2151_v27  ;;  %v2230_v16 = vshll.u32 %v2229_v50, 30  ;;  %v2302_v63 = vor.u32 %v2301_v57, %v2300_v15  ;;  %vm2304_vm9 = vcmp.lt.s32.totalorder %v5604_v46, 2 }
 0x217   :  { %3808 = vsinq.f32 %v2151_v27  ;;  %v2311_v48 = vsel %vm2303_vm6, %v2290_v34, %v2293_v0  ;;  %v2312_v39 = vsel %vm2306_vm7, %v2299_v29, 920167782  ;;  %v2319_v14 = vshll.u32 %v2279_v3, 8 }
 0x218   :  { %v5653_v23 = vsub.s32 %v2227_v41, %v2230_v16  ;;  %v2307_v37 = vsel %vm2303_vm6, %v2287_v51, %v2290_v34  ;;  %v2309_v31 = vsel %vm2305_vm11, %v2293_v0, %v2308_v55  ;;  %v2313_v35 = vsel %vm2305_vm11, %v2296_v7, %v2312_v39 }
 0x219   :  { %v2253_v54 = vsub.s32 4, %v2229_v50  ;;  %v2314_v8 = vsel %vm2304_vm9, %v2311_v48, %v2313_v35  ;;  %v2315_v43 = vsel %vm2303_vm6, %v2293_v0, %v2296_v7  ;;  %v2316_v3 = vsel %vm2306_vm7, %v2302_v63, 1326507024 }
 0x21a   :  { %v2233_v25 = vsub.s32 0, %v5653_v23  ;;  %v2317_v22 = vsel %vm2305_vm11, %v2299_v29, %v2316_v3  ;;  %v2310_v4 = vsel %vm2304_vm9, %v2307_v37, %v2309_v31  ;;  %vm2169_vm10 = vcmp.lt.s32.totalorder %v5368_v12, 0 }
 0x21b   :  { %v2318_v28 = vsel %vm2304_vm9, %v2315_v43, %v2317_v22  ;;  %v5674_v59 = vmul.u32.u64.low %v2319_v14, %v2314_v8  ;;  %v5675_v11 = vmul.u32.u64.high %v2319_v14, %v2314_v8, %v5674_v59  ;;  %v2157_v51 = vand.u32 3, %v5611_v1 }
 0x21c   :  { %v3545_v13 = vmin.u32 %v2233_v25, %v5653_v23  ;;  %v5680_v58 = vmul.u32.u64.low %v2319_v14, %v2318_v28  ;;  %v5681_v6 = vmul.u32.u64.high %v2319_v14, %v2318_v28, %v5680_v58  ;;  %v2254_v33 = vsel %vm2169_vm10, %v2253_v54, %v2229_v50 }
 0x21d   :  { %v2378_v45 = vand.u32 2139095040, %v5514_v61  ;;  %v5687_v46 = vmul.f32 30.0, %v46_v19  ;;  %v2326_v41 = vmul.u32 %v2319_v14, %v2310_v4  ;;  %vm5691_vm12 = vcmp.le.f32.partialorder %v2167_v32, 0.7853982 }
 0x21e   :  { %v2235_v18 = vclz %v3545_v13  ;;  %v2329_v10 = vadd.s32 1, %v5675_v11  ;;  %v2375_v34 = vand.u32 2147483647, %v5514_v61  ;;  %vm2155_vm13 = vweird.f32 %v5177_v30 }
 0x21f   :  { %v2379_v1 = vshrl.u32 %v2378_v45, 23  ;;  %v2256_v56 = vsel %vm5691_vm12, 0, %v2254_v33  ;;  %vm2328_vm14 = vc.u32 %v5681_v6, %v5674_v59  ;;  %vm2158_vm15 = vcmp.lt.s32.totalorder %v2157_v51, 2 }
 0x220   :  { %v3546_v9 = vadd.s32 4294967294, %v2235_v18  ;;  %vm2159_vm0 = vcmp.eq.s32.totalorder %v2157_v51, 0  ;;  %v2330_v32 = vsel %vm2328_vm14, %v2329_v10, %v5675_v11  ;;  %vm2162_vm1 = vcmp.eq.s32.totalorder %v2157_v51, 2 }
 0x221   :  { %v3552_v53 = vadd.s32 4294967169, %v2379_v1  ;;  %v2223_v47 = vadd.s32 %v5600_v20, %v5608_v60  ;;  %v2331_v5 = vadd.s32 %v2330_v32, %v2326_v41  ;;  %v2260_v7 = vadd.s32 3, %v2256_v56 }
 0x222   :  { %vm3547_vm2 = vcmp.lt.s32.totalorder %v3546_v9, 0  ;;  %v2382_v17 = vand.u32 8388607, %v2375_v34  ;;  %v2482_v20 = vand.u32 2139095040, %v5687_v46  ;;  %v5710_v14 = vmul.f32 30.0, %v47_v26 }
 0x223   :  { %v3807_v0 = vpop.eup %3806  ;;  %v2238_v21 = vsel %vm3547_vm2, 0, %v3546_v9  ;;  %v2385_v15 = vadd.s32 1, %v3552_v53  ;;  %v2332_v16 = vadd.s32 536870912, %v2331_v5  ;;  %v5716_v25 = vand.u32 3, %v2260_v7 }
 0x224   :  { %v3809_v24 = vpop.eup %3808  ;;  %v2163_v50 = vxor.u32 2147483648, %v3807_v0  ;;  %v2239_v57 = vsub.s32 32, %v2238_v21  ;;  %v2240_v27 = vshll.u32 %v5653_v23, %v2238_v21  ;;  %v2243_v29 = vsub.s32 4294967266, %v2238_v21 }
 0x225   :  { %v2160_v55 = vxor.u32 2147483648, %v3809_v24  ;;  %vm2386_vm3 = vcmp.gt.s32.totalorder %v2385_v15, 0  ;;  %v2333_v31 = vshrl.u32 %v2332_v16, 30  ;;  %v2383_v43 = vor.u32 8388608, %v2382_v17 }
 0x226   :  { %v2164_v60 = vsel %vm2162_vm1, %v2163_v50, %v3809_v24  ;;  %v2241_v63 = vshrl.u32 %v2223_v47, %v2239_v57  ;;  %v2244_v48 = vadd.s32 127, %v2243_v29  ;;  %v2387_v39 = vsel %vm2386_vm3, %v2385_v15, 0 }
 0x227   :  { %v2161_v37 = vsel %vm2159_vm0, %v3807_v0, %v2160_v55  ;;  %v2389_v35 = vand.u32 31, %v2387_v39  ;;  %v2334_v22 = vshll.u32 %v2333_v31, 30  ;;  %v2479_v11 = vand.u32 2147483647, %v5687_v46 }
 0x228   :  { %v2165_v54 = vsel %vm2158_vm15, %v2161_v37, %v2164_v60  ;;  %v2242_v23 = vor.u32 %v2241_v63, %v2240_v27  ;;  %v2245_v8 = vshll.u32 %v2244_v48, 23  ;;  %v2483_v13 = vshrl.u32 %v2482_v20, 23 }
 0x229   :  { %v2166_v3 = vsel %vm2155_vm13, nan, %v2165_v54  ;;  %v2390_v19 = vsub.s32 32, %v2389_v35  ;;  %v2327_v58 = vadd.s32 %v5674_v59, %v5681_v6  ;;  %v5721_v51 = vsub.s32 %v2331_v5, %v2334_v22 }
 0x22a   :  { %v2246_v4 = vor.u32 4788187, %v2245_v8  ;;  %v2249_v28 = vcvt.s32.f32 %v2242_v23  ;;  %3434 = vst [vmem:[#allocation5 + $0x98] sm:$0xff] %v2166_v3  ;;  %v2392_v33 = vshll.u32 %v3905_v36, %v2389_v35  ;;  %v2395_v18 = vshll.u32 %v3906_v38, %v2389_v35 }
 0x22b   :  { %v2393_v30 = vshrl.u32 %v3906_v38, %v2390_v19  ;;  %v2396_v41 = vshrl.u32 %v3907_v40, %v2390_v19  ;;  %v5727_v10 = vshll.u32 %v2383_v43, 8  ;;  %vm2273_vm4 = vcmp.lt.s32.totalorder %v5500_v2, 0  ;;  %v48_v43 = vld [vmem:[#allocation2 + $0xc8] sm:$0xff] }
 0x22c   :  { %v2247_v45 = vand.u32 2147483647, %v2246_v4  ;;  %v2337_v1 = vsub.s32 0, %v5721_v51  ;;  %v2388_v9 = vshrl.u32 %v2387_v39, 5  ;;  %v2398_v59 = vshll.u32 %v3907_v40, %v2389_v35 }
 0x22d   :  { %v2399_v6 = vshrl.u32 %v3908_v42, %v2390_v19  ;;  %v2401_v32 = vshll.u32 %v3908_v42, %v2389_v35  ;;  %v2402_v53 = vshrl.u32 %v3909_v44, %v2390_v19  ;;  %v3556_v47 = vadd.s32 4294967169, %v2483_v13 }
 0x22e   :  { %v2250_v56 = vmul.f32 %v2249_v28, %v2247_v45  ;;  %v3549_v5 = vmin.u32 %v2337_v1, %v5721_v51  ;;  %v2391_v0 = vshrl.u32 %v3905_v36, %v2390_v19  ;;  %v2394_v21 = vor.u32 %v2393_v30, %v2392_v33 }
 0x22f   :  { %v2404_v7 = vshll.u32 %v3909_v44, %v2389_v35  ;;  %v2397_v15 = vor.u32 %v2396_v41, %v2395_v18  ;;  %v2403_v24 = vor.u32 %v2402_v53, %v2401_v32  ;;  %v2405_v26 = vshrl.u32 %v3910_v52, %v2390_v19 }
 0x230   :  { %v2251_v17 = vxor.u32 2147483648, %v2250_v56  ;;  %v2339_v50 = vclz %v3549_v5  ;;  %v2357_v57 = vsub.s32 4, %v2333_v31  ;;  %v2400_v27 = vor.u32 %v2399_v6, %v2398_v59 }
 0x231   :  { %vm2407_vm5 = vcmp.lt.s32.totalorder %v2388_v9, 1  ;;  %v2406_v55 = vor.u32 %v2405_v26, %v2404_v7  ;;  %vm2408_vm6 = vcmp.lt.s32.totalorder %v2388_v9, 2  ;;  %vm2409_vm7 = vcmp.lt.s32.totalorder %v2388_v9, 3 }
 0x232   :  { %v2252_v29 = vsel %vm2169_vm10, %v2251_v17, %v2250_v56  ;;  %v3550_v20 = vadd.s32 4294967294, %v2339_v50  ;;  %vm2410_vm8 = vcmp.lt.s32.totalorder %v2388_v9, 4  ;;  %v2411_v60 = vsel %vm2407_vm5, %v2391_v0, %v2394_v21 }
 0x233   :  { %v2255_v16 = vsel %vm5691_vm12, %v5368_v12, %v2252_v29  ;;  %v2412_v63 = vsel %vm2410_vm8, %v2400_v27, 2102212464  ;;  %v2415_v48 = vsel %vm2407_vm5, %v2394_v21, %v2397_v15  ;;  %v2416_v39 = vsel %vm2410_vm8, %v2403_v24, 920167782 }
 0x234   :  { %3810 = vcosq.f32 %v2255_v16  ;;  %vm3551_vm11 = vcmp.lt.s32.totalorder %v3550_v20, 0  ;;  %v2413_v37 = vsel %vm2409_vm7, %v2397_v15, %v2412_v63  ;;  %v2417_v35 = vsel %vm2409_vm7, %v2400_v27, %v2416_v39 }
 0x235   :  { %3812 = vsinq.f32 %v2255_v16  ;;  %v2342_v54 = vsel %vm3551_vm11, 0, %v3550_v20  ;;  %v2358_v62 = vsel %vm2273_vm4, %v2357_v57, %v2333_v31  ;;  %v2418_v23 = vsel %vm2408_vm6, %v2415_v48, %v2417_v35 }
 0x236   :  { %v2419_v8 = vsel %vm2407_vm5, %v2397_v15, %v2400_v27  ;;  %v2343_v3 = vsub.s32 32, %v2342_v54  ;;  %v2344_v22 = vshll.u32 %v5721_v51, %v2342_v54  ;;  %v2347_v19 = vsub.s32 4294967266, %v2342_v54 }
 0x237   :  { %v2420_v4 = vsel %vm2410_vm8, %v2406_v55, 1326507024  ;;  %v2414_v28 = vsel %vm2408_vm6, %v2411_v60, %v2413_v37  ;;  %v5759_v33 = vmul.u32.u64.low %v5727_v10, %v2418_v23  ;;  %v5760_v30 = vmul.u32.u64.high %v5727_v10, %v2418_v23, %v5759_v33 }
 0x238   :  { %v2421_v13 = vsel %vm2409_vm7, %v2403_v24, %v2420_v4  ;;  %v2345_v31 = vshrl.u32 %v2327_v58, %v2343_v3  ;;  %v2348_v45 = vadd.s32 127, %v2347_v19  ;;  %v2489_v41 = vadd.s32 1, %v3556_v47 }
 0x239   :  { %v2422_v18 = vsel %vm2408_vm6, %v2419_v8, %v2421_v13  ;;  %v5764_v1 = vmul.f32 30.0, %v48_v43  ;;  %v5772_v6 = vand.u32 8388607, %v2479_v11  ;;  %vm5776_vm9 = vcmp.le.f32.partialorder %v2271_v49, 0.7853982 }
 0x23a   :  { %v5767_v51 = vmul.u32.u64.low %v5727_v10, %v2422_v18  ;;  %v5768_v59 = vmul.u32.u64.high %v5727_v10, %v2422_v18, %v5767_v51  ;;  %v2346_v58 = vor.u32 %v2345_v31, %v2344_v22  ;;  %v2349_v9 = vshll.u32 %v2348_v45, 23 }
 0x23b   :  { %vm2490_vm10 = vcmp.gt.s32.totalorder %v2489_v41, 0  ;;  %vm2259_vm12 = vweird.f32 %v5368_v12  ;;  %v2360_v32 = vsel %vm5776_vm9, 0, %v2358_v62  ;;  %v2430_v53 = vmul.u32 %v5727_v10, %v2414_v28  ;;  %v49_v12 = vld [vmem:[#allocation2 + $0xd0] sm:$0xff] }
 0x23c   :  { %v2433_v47 = vadd.s32 1, %v5760_v30  ;;  %v2491_v5 = vsel %vm2490_vm10, %v2489_v41, 0  ;;  %vm2262_vm13 = vcmp.lt.s32.totalorder %v5716_v25, 2  ;;  %v2350_v0 = vor.u32 4788187, %v2349_v9 }
 0x23d   :  { %v2353_v49 = vcvt.s32.f32 %v2346_v58  ;;  %v2493_v21 = vand.u32 31, %v2491_v5  ;;  %vm2263_vm14 = vcmp.eq.s32.totalorder %v5716_v25, 0  ;;  %vm2266_vm15 = vcmp.eq.s32.totalorder %v5716_v25, 2 }
 0x23e   :  { %vm2432_vm0 = vc.u32 %v5768_v59, %v5759_v33  ;;  %v2487_v7 = vor.u32 8388608, %v5772_v6  ;;  %v2351_v17 = vand.u32 2147483647, %v2350_v0  ;;  %v2364_v15 = vadd.s32 3, %v2360_v32 }
 0x23f   :  { %v2434_v10 = vsel %vm2432_vm0, %v2433_v47, %v5760_v30  ;;  %v2494_v24 = vsub.s32 32, %v2493_v21  ;;  %v2496_v50 = vshll.u32 %v3905_v36, %v2493_v21  ;;  %v2499_v57 = vshll.u32 %v3906_v38, %v2493_v21 }
 0x240   :  { %v2435_v26 = vadd.s32 %v2434_v10, %v2430_v53  ;;  %v2586_v27 = vand.u32 2139095040, %v5710_v14  ;;  %v2354_v55 = vmul.f32 %v2353_v49, %v2351_v17  ;;  %v5795_v16 = vshrl.u32 %v2491_v5, 5  ;;  %v50_v53 = vld [vmem:[#allocation2 + $0xd8] sm:$0xff] }
 0x241   :  { %v3811_v29 = vpop.eup %3810  ;;  %v2497_v20 = vshrl.u32 %v3906_v38, %v2494_v24  ;;  %v2500_v60 = vshrl.u32 %v3907_v40, %v2494_v24  ;;  %v2505_v37 = vshll.u32 %v3908_v42, %v2493_v21  ;;  %v2506_v35 = vshrl.u32 %v3909_v44, %v2494_v24 }
 0x242   :  { %v3813_v63 = vpop.eup %3812  ;;  %v2267_v48 = vxor.u32 2147483648, %v3811_v29  ;;  %v2436_v39 = vadd.s32 536870912, %v2435_v26  ;;  %v2355_v62 = vxor.u32 2147483648, %v2354_v55  ;;  %v2502_v23 = vshll.u32 %v3907_v40, %v2493_v21 }
 0x243   :  { %v2264_v54 = vxor.u32 2147483648, %v3813_v63  ;;  %v2503_v8 = vshrl.u32 %v3908_v42, %v2494_v24  ;;  %v2498_v22 = vor.u32 %v2497_v20, %v2496_v50  ;;  %v2501_v19 = vor.u32 %v2500_v60, %v2499_v57 }
 0x244   :  { %v2268_v43 = vsel %vm2266_vm15, %v2267_v48, %v3813_v63  ;;  %v5805_v3 = vshrl.u32 %v2436_v39, 30  ;;  %v2356_v28 = vsel %vm2273_vm4, %v2355_v62, %v2354_v55  ;;  %v2508_v13 = vshll.u32 %v3909_v44, %v2493_v21 }
 0x245   :  { %v2265_v4 = vsel %vm2263_vm14, %v3811_v29, %v2264_v54  ;;  %v2509_v30 = vshrl.u32 %v3910_v52, %v2494_v24  ;;  %v2359_v45 = vsel %vm5776_vm9, %v5500_v2, %v2356_v28  ;;  %v2507_v41 = vor.u32 %v2506_v35, %v2505_v37 }
 0x246   :  { %v2269_v31 = vsel %vm2262_vm13, %v2265_v4, %v2268_v43  ;;  %v2438_v18 = vshll.u32 %v5805_v3, 30  ;;  %3814 = vcosq.f32 %v2359_v45  ;;  %vm2511_vm1 = vcmp.lt.s32.totalorder %v5795_v16, 1 }
 0x247   :  { %v2270_v51 = vsel %vm2259_vm12, nan, %v2269_v31  ;;  %v2510_v6 = vor.u32 %v2509_v30, %v2508_v13  ;;  %3816 = vsinq.f32 %v2359_v45  ;;  %v2495_v25 = vshrl.u32 %v3905_v36, %v2494_v24 }
 0x248   :  { %v5822_v58 = vsub.s32 %v2435_v26, %v2438_v18  ;;  %v2504_v9 = vor.u32 %v2503_v8, %v2502_v23  ;;  %3435 = vst [vmem:[#allocation5 + $0xa0] sm:$0xff] %v2270_v51  ;;  %vm2513_vm2 = vcmp.lt.s32.totalorder %v5795_v16, 3  ;;  %vm2514_vm3 = vcmp.lt.s32.totalorder %v5795_v16, 4 }
 0x249   :  { %v2583_v56 = vand.u32 2147483647, %v5710_v14  ;;  %v2587_v32 = vshrl.u32 %v2586_v27, 23  ;;  %vm2512_vm4 = vcmp.lt.s32.totalorder %v5795_v16, 2  ;;  %v2519_v0 = vsel %vm2511_vm1, %v2498_v22, %v2501_v19 }
 0x24a   :  { %v2441_v47 = vsub.s32 0, %v5822_v58  ;;  %v2516_v5 = vsel %vm2514_vm3, %v2504_v9, 2102212464  ;;  %v2365_v49 = vand.u32 3, %v2364_v15  ;;  %v2520_v21 = vsel %vm2514_vm3, %v2507_v41, 920167782 }
 0x24b   :  { %v2524_v17 = vsel %vm2514_vm3, %v2510_v6, 1326507024  ;;  %v2527_v10 = vshll.u32 %v2487_v7, 8  ;;  %v2515_v26 = vsel %vm2511_vm1, %v2495_v25, %v2498_v22  ;;  %v2521_v50 = vsel %vm2513_vm2, %v2504_v9, %v2520_v21 }
 0x24c   :  { %v3553_v24 = vmin.u32 %v2441_v47, %v5822_v58  ;;  %v2523_v57 = vsel %vm2511_vm1, %v2501_v19, %v2504_v9  ;;  %v2517_v27 = vsel %vm2513_vm2, %v2501_v19, %v2516_v5  ;;  %v2522_v15 = vsel %vm2512_vm4, %v2519_v0, %v2521_v50 }
 0x24d   :  { %v2525_v7 = vsel %vm2513_vm2, %v2507_v41, %v2524_v17  ;;  %v3560_v29 = vadd.s32 4294967169, %v2587_v32  ;;  %v5845_v55 = vmul.f32 30.0, %v49_v12  ;;  %v5847_v20 = vmul.f32 30.0, %v50_v53 }
 0x24e   :  { %v2443_v60 = vclz %v3553_v24  ;;  %v5851_v63 = vand.u32 8388607, %v2583_v56  ;;  %v2526_v48 = vsel %vm2512_vm4, %v2523_v57, %v2525_v7  ;;  %v2518_v62 = vsel %vm2512_vm4, %v2515_v26, %v2517_v27 }
 0x24f   :  { %v5855_v39 = vmul.u32.u64.low %v2527_v10, %v2522_v15  ;;  %v5856_v37 = vmul.u32.u64.high %v2527_v10, %v2522_v15, %v5855_v39  ;;  %v2593_v35 = vadd.s32 1, %v3560_v29  ;;  %vm2363_vm5 = vweird.f32 %v5500_v2 }
 0x250   :  { %v3554_v54 = vadd.s32 4294967294, %v2443_v60  ;;  %v5861_v23 = vmul.u32.u64.low %v2527_v10, %v2526_v48  ;;  %v5862_v8 = vmul.u32.u64.high %v2527_v10, %v2526_v48, %v5861_v23  ;;  %vm2366_vm6 = vcmp.lt.s32.totalorder %v2365_v49, 2 }
 0x251   :  { %vm2367_vm7 = vcmp.eq.s32.totalorder %v2365_v49, 0  ;;  %vm2594_vm8 = vcmp.gt.s32.totalorder %v2593_v35, 0  ;;  %vm2370_vm11 = vcmp.eq.s32.totalorder %v2365_v49, 2  ;;  %vm2377_vm9 = vcmp.lt.s32.totalorder %v5514_v61, 0 }
 0x252   :  { %v2431_v43 = vadd.s32 %v5759_v33, %v5768_v59  ;;  %vm3555_vm10 = vcmp.lt.s32.totalorder %v3554_v54, 0  ;;  %v2595_v22 = vsel %vm2594_vm8, %v2593_v35, 0  ;;  %v2534_v4 = vmul.u32 %v2527_v10, %v2518_v62 }
 0x253   :  { %v2446_v19 = vsel %vm3555_vm10, 0, %v3554_v54  ;;  %v2537_v16 = vadd.s32 1, %v5856_v37  ;;  %v2597_v28 = vand.u32 31, %v2595_v22  ;;  %v3815_v13 = vpop.eup %3814  ;;  %v2591_v18 = vor.u32 8388608, %v5851_v63 }
 0x254   :  { %v2447_v30 = vsub.s32 32, %v2446_v19  ;;  %v2448_v31 = vshll.u32 %v5822_v58, %v2446_v19  ;;  %v2451_v45 = vsub.s32 4294967266, %v2446_v19  ;;  %v3817_v41 = vpop.eup %3816  ;;  %v2371_v51 = vxor.u32 2147483648, %v3815_v13 }
 0x255   :  { %v2461_v6 = vsub.s32 4, %v5805_v3  ;;  %vm2536_vm12 = vc.u32 %v5862_v8, %v5855_v39  ;;  %v2598_v33 = vsub.s32 32, %v2597_v28  ;;  %v2368_v59 = vxor.u32 2147483648, %v3817_v41 }
 0x256   :  { %vm5876_vm13 = vcmp.le.f32.partialorder %v2375_v34, 0.7853982  ;;  %v2449_v9 = vshrl.u32 %v2431_v43, %v2447_v30  ;;  %v2452_v58 = vadd.s32 127, %v2451_v45  ;;  %v2538_v32 = vsel %vm2536_vm12, %v2537_v16, %v5856_v37 }
 0x257   :  { %v2372_v12 = vsel %vm2370_vm11, %v2371_v51, %v3817_v41  ;;  %v2539_v53 = vadd.s32 %v2538_v32, %v2534_v4  ;;  %v5882_v47 = vshrl.u32 %v2595_v22, 5  ;;  %v2600_v5 = vshll.u32 %v3905_v36, %v2597_v28 }
 0x258   :  { %v2369_v0 = vsel %vm2367_vm7, %v3815_v13, %v2368_v59  ;;  %v2450_v21 = vor.u32 %v2449_v9, %v2448_v31  ;;  %v2453_v17 = vshll.u32 %v2452_v58, 23  ;;  %v2601_v34 = vshrl.u32 %v3906_v38, %v2598_v33 }
 0x259   :  { %v2373_v10 = vsel %vm2366_vm6, %v2369_v0, %v2372_v12  ;;  %v2540_v24 = vadd.s32 536870912, %v2539_v53  ;;  %v2603_v26 = vshll.u32 %v3906_v38, %v2597_v28  ;;  %v2604_v50 = vshrl.u32 %v3907_v40, %v2598_v33 }
 0x25a   :  { %v2374_v57 = vsel %vm2363_vm5, nan, %v2373_v10  ;;  %v2454_v27 = vor.u32 4788187, %v2453_v17  ;;  %v2457_v15 = vcvt.s32.f32 %v2450_v21  ;;  %v2606_v7 = vshll.u32 %v3907_v40, %v2597_v28 }
 0x25b   :  { %v2462_v29 = vsel %vm2377_vm9, %v2461_v6, %v5805_v3  ;;  %v2541_v60 = vshrl.u32 %v2540_v24, 30  ;;  %v2607_v49 = vshrl.u32 %v3908_v42, %v2598_v33  ;;  %v2609_v63 = vshll.u32 %v3908_v42, %v2597_v28  ;;  %3436 = vst [vmem:[#allocation5 + $0xa8] sm:$0xff] %v2374_v57 }
 0x25c   :  { %v2455_v48 = vand.u32 2147483647, %v2454_v27  ;;  %v2610_v37 = vshrl.u32 %v3909_v44, %v2598_v33  ;;  %v2612_v2 = vshll.u32 %v3909_v44, %v2597_v28  ;;  %v2613_v35 = vshrl.u32 %v3910_v52, %v2598_v33 }
 0x25d   :  { %v2542_v54 = vshll.u32 %v2541_v60, 30  ;;  %v2599_v62 = vshrl.u32 %v3905_v36, %v2598_v33  ;;  %v2602_v23 = vor.u32 %v2601_v34, %v2600_v5  ;;  %v2605_v43 = vor.u32 %v2604_v50, %v2603_v26 }
 0x25e   :  { %v2458_v22 = vmul.f32 %v2457_v15, %v2455_v48  ;;  %v2608_v3 = vor.u32 %v2607_v49, %v2606_v7  ;;  %v2611_v19 = vor.u32 %v2610_v37, %v2609_v63  ;;  %vm2615_vm14 = vcmp.lt.s32.totalorder %v5882_v47, 1 }
 0x25f   :  { %v2464_v4 = vsel %vm5876_vm13, 0, %v2462_v29  ;;  %v5905_v16 = vsub.s32 %v2539_v53, %v2542_v54  ;;  %vm2618_vm15 = vcmp.lt.s32.totalorder %v5882_v47, 4  ;;  %v2631_v28 = vshll.u32 %v2591_v18, 8 }
 0x260   :  { %v2459_v13 = vxor.u32 2147483648, %v2458_v22  ;;  %v2614_v30 = vor.u32 %v2613_v35, %v2612_v2  ;;  %vm2617_vm0 = vcmp.lt.s32.totalorder %v5882_v47, 3  ;;  %v2620_v31 = vsel %vm2618_vm15, %v2608_v3, 2102212464 }
 0x261   :  { %v2545_v45 = vsub.s32 0, %v5905_v16  ;;  %vm2616_vm1 = vcmp.lt.s32.totalorder %v5882_v47, 2  ;;  %v2623_v41 = vsel %vm2615_vm14, %v2602_v23, %v2605_v43  ;;  %v2690_v51 = vand.u32 2139095040, %v5764_v1 }
 0x262   :  { %v2460_v6 = vsel %vm2377_vm9, %v2459_v13, %v2458_v22  ;;  %v2565_v18 = vsub.s32 4, %v2541_v60  ;;  %v2619_v33 = vsel %vm2615_vm14, %v2599_v62, %v2602_v23  ;;  %v2624_v59 = vsel %vm2618_vm15, %v2611_v19, 920167782 }
 0x263   :  { %v2463_v9 = vsel %vm5876_vm13, %v5514_v61, %v2460_v6  ;;  %v3557_v58 = vmin.u32 %v2545_v45, %v5905_v16  ;;  %v2621_v32 = vsel %vm2617_vm0, %v2605_v43, %v2620_v31  ;;  %v2625_v12 = vsel %vm2617_vm0, %v2608_v3, %v2624_v59 }
 0x264   :  { %3818 = vcosq.f32 %v2463_v9  ;;  %v2626_v53 = vsel %vm2616_vm1, %v2623_v41, %v2625_v12  ;;  %v2627_v5 = vsel %vm2615_vm14, %v2605_v43, %v2608_v3  ;;  %v2628_v0 = vsel %vm2618_vm15, %v2614_v30, 1326507024 }
 0x265   :  { %3820 = vsinq.f32 %v2463_v9  ;;  %v2468_v25 = vadd.s32 3, %v2464_v4  ;;  %vm2481_vm2 = vcmp.lt.s32.totalorder %v5687_v46, 0  ;;  %v2547_v21 = vclz %v3557_v58 }
 0x266   :  { %v2566_v17 = vsel %vm2481_vm2, %v2565_v18, %v2541_v60  ;;  %v2629_v34 = vsel %vm2617_vm0, %v2611_v19, %v2628_v0  ;;  %v5941_v10 = vmul.u32.u64.low %v2631_v28, %v2626_v53  ;;  %v5942_v24 = vmul.u32.u64.high %v2631_v28, %v2626_v53, %v5941_v10 }
 0x267   :  { %v3558_v26 = vadd.s32 4294967294, %v2547_v21  ;;  %v2622_v50 = vsel %vm2616_vm1, %v2619_v33, %v2621_v32  ;;  %v2630_v57 = vsel %vm2616_vm1, %v2627_v5, %v2629_v34  ;;  %v2691_v27 = vshrl.u32 %v2690_v51, 23 }
 0x268   :  { %vm5950_vm3 = vcmp.le.f32.partialorder %v2479_v11, 0.7853982  ;;  %v5954_v7 = vmul.u32.u64.low %v2631_v28, %v2630_v57  ;;  %v5955_v29 = vmul.u32.u64.high %v2631_v28, %v2630_v57, %v5954_v7  ;;  %v2687_v60 = vand.u32 2147483647, %v5764_v1 }
 0x269   :  { %v2535_v49 = vadd.s32 %v5855_v39, %v5862_v8  ;;  %vm3559_vm4 = vcmp.lt.s32.totalorder %v3558_v26, 0  ;;  %v2568_v47 = vsel %vm5950_vm3, 0, %v2566_v17  ;;  %v3564_v63 = vadd.s32 4294967169, %v2691_v27 }
 0x26a   :  { %v2469_v48 = vand.u32 3, %v2468_v25  ;;  %v2550_v37 = vsel %vm3559_vm4, 0, %v3558_v26  ;;  %v2638_v2 = vmul.u32 %v2631_v28, %v2622_v50  ;;  %v2641_v11 = vadd.s32 1, %v5942_v24 }
 0x26b   :  { %v2551_v35 = vsub.s32 32, %v2550_v37  ;;  %v2552_v54 = vshll.u32 %v5905_v16, %v2550_v37  ;;  %v2555_v62 = vsub.s32 4294967266, %v2550_v37  ;;  %v2697_v23 = vadd.s32 1, %v3564_v63 }
 0x26c   :  { %vm2467_vm5 = vweird.f32 %v5514_v61  ;;  %v2572_v43 = vadd.s32 3, %v2568_v47  ;;  %vm2640_vm6 = vc.u32 %v5955_v29, %v5941_v10  ;;  %v2694_v39 = vand.u32 8388607, %v2687_v60 }
 0x26d   :  { %v2553_v8 = vshrl.u32 %v2535_v49, %v2551_v35  ;;  %v2556_v22 = vadd.s32 127, %v2555_v62  ;;  %v2642_v3 = vsel %vm2640_vm6, %v2641_v11, %v5942_v24  ;;  %vm2698_vm7 = vcmp.gt.s32.totalorder %v2697_v23, 0 }
 0x26e   :  { %vm2470_vm8 = vcmp.lt.s32.totalorder %v2469_v48, 2  ;;  %v2643_v19 = vadd.s32 %v2642_v3, %v2638_v2  ;;  %v2699_v4 = vsel %vm2698_vm7, %v2697_v23, 0  ;;  %v2794_v16 = vand.u32 2139095040, %v5845_v55 }
 0x26f   :  { %vm2471_vm11 = vcmp.eq.s32.totalorder %v2469_v48, 0  ;;  %v2554_v28 = vor.u32 %v2553_v8, %v2552_v54  ;;  %v2557_v13 = vshll.u32 %v2556_v22, 23  ;;  %v2701_v30 = vand.u32 31, %v2699_v4 }
 0x270   :  { %vm2474_vm9 = vcmp.eq.s32.totalorder %v2469_v48, 2  ;;  %v5970_v31 = vand.u32 3, %v2572_v43  ;;  %v2644_v45 = vadd.s32 536870912, %v2643_v19  ;;  %v2791_v41 = vand.u32 2147483647, %v5845_v55 }
 0x271   :  { %v3819_v51 = vpop.eup %3818  ;;  %v2558_v6 = vor.u32 4788187, %v2557_v13  ;;  %v2561_v18 = vcvt.s32.f32 %v2554_v28  ;;  %v2695_v33 = vor.u32 8388608, %v2694_v39  ;;  %v2702_v59 = vsub.s32 32, %v2701_v30 }
 0x272   :  { %v3821_v9 = vpop.eup %3820  ;;  %v2475_v58 = vxor.u32 2147483648, %v3819_v51  ;;  %v5974_v32 = vadd.s32 %v5941_v10, %v5955_v29  ;;  %v5976_v12 = vshrl.u32 %v2644_v45, 30  ;;  %v2795_v53 = vshrl.u32 %v2794_v16, 23 }
 0x273   :  { %v2472_v5 = vxor.u32 2147483648, %v3821_v9  ;;  %v2559_v0 = vand.u32 2147483647, %v2558_v6  ;;  %v2704_v25 = vshll.u32 %v3905_v36, %v2701_v30  ;;  %v2705_v21 = vshrl.u32 %v3906_v38, %v2702_v59 }
 0x274   :  { %v2476_v17 = vsel %vm2474_vm9, %v2475_v58, %v3821_v9  ;;  %v2646_v34 = vshll.u32 %v5976_v12, 30  ;;  %v2707_v24 = vshll.u32 %v3906_v38, %v2701_v30  ;;  %v2708_v26 = vshrl.u32 %v3907_v40, %v2702_v59 }
 0x275   :  { %v2473_v10 = vsel %vm2471_vm11, %v3819_v51, %v2472_v5  ;;  %v2562_v50 = vmul.f32 %v2561_v18, %v2559_v0  ;;  %v2710_v57 = vshll.u32 %v3907_v40, %v2701_v30  ;;  %v2711_v27 = vshrl.u32 %v3908_v42, %v2702_v59 }
 0x276   :  { %v2477_v7 = vsel %vm2470_vm8, %v2473_v10, %v2476_v17  ;;  %v5988_v29 = vsub.s32 %v2643_v19, %v2646_v34  ;;  %v2700_v49 = vshrl.u32 %v2699_v4, 5  ;;  %v5990_v47 = vshll.u32 %v2695_v33, 8 }
 0x277   :  { %v2478_v63 = vsel %vm2467_vm5, nan, %v2477_v7  ;;  %v2563_v37 = vxor.u32 2147483648, %v2562_v50  ;;  %v2706_v2 = vor.u32 %v2705_v21, %v2704_v25  ;;  %v3568_v11 = vadd.s32 4294967169, %v2795_v53 }
 0x278   :  { %v2649_v35 = vsub.s32 0, %v5988_v29  ;;  %v2709_v54 = vor.u32 %v2708_v26, %v2707_v24  ;;  %v2713_v62 = vshll.u32 %v3908_v42, %v2701_v30  ;;  %v2714_v23 = vshrl.u32 %v3909_v44, %v2702_v59  ;;  %3437 = vst [vmem:[#allocation5 + $0xb0] sm:$0xff] %v2478_v63 }
 0x279   :  { %v2564_v48 = vsel %vm2481_vm2, %v2563_v37, %v2562_v50  ;;  %v2712_v43 = vor.u32 %v2711_v27, %v2710_v57  ;;  %v2716_v39 = vshll.u32 %v3909_v44, %v2701_v30  ;;  %v2717_v61 = vshrl.u32 %v3910_v52, %v2702_v59 }
 0x27a   :  { %v2567_v8 = vsel %vm5950_vm3, %v5687_v46, %v2564_v48  ;;  %v3561_v22 = vmin.u32 %v2649_v35, %v5988_v29  ;;  %v2715_v3 = vor.u32 %v2714_v23, %v2713_v62  ;;  %vm2719_vm10 = vcmp.lt.s32.totalorder %v2700_v49, 1 }
 0x27b   :  { %3822 = vcosq.f32 %v2567_v8  ;;  %vm2585_vm12 = vcmp.lt.s32.totalorder %v5710_v14, 0  ;;  %v2703_v19 = vshrl.u32 %v3905_v36, %v2702_v59  ;;  %v2718_v4 = vor.u32 %v2717_v61, %v2716_v39 }
 0x27c   :  { %v2798_v16 = vand.u32 8388607, %v2791_v41  ;;  %3824 = vsinq.f32 %v2567_v8  ;;  %v2651_v28 = vclz %v3561_v22  ;;  %vm2721_vm13 = vcmp.lt.s32.totalorder %v2700_v49, 3 }
 0x27d   :  { %v2801_v13 = vadd.s32 1, %v3568_v11  ;;  %v2669_v15 = vsub.s32 4, %v5976_v12  ;;  %vm2720_vm14 = vcmp.lt.s32.totalorder %v2700_v49, 2  ;;  %vm2722_vm15 = vcmp.lt.s32.totalorder %v2700_v49, 4 }
 0x27e   :  { %v2727_v30 = vsel %vm2719_vm10, %v2706_v2, %v2709_v54  ;;  %v3562_v45 = vadd.s32 4294967294, %v2651_v28  ;;  %v2724_v51 = vsel %vm2722_vm15, %v2712_v43, 2102212464  ;;  %v2728_v6 = vsel %vm2722_vm15, %v2715_v3, 920167782 }
 0x27f   :  { %v2731_v18 = vsel %vm2719_vm10, %v2709_v54, %v2712_v43  ;;  %v2723_v33 = vsel %vm2719_vm10, %v2703_v19, %v2706_v2  ;;  %v2725_v59 = vsel %vm2721_vm13, %v2709_v54, %v2724_v51  ;;  %v2729_v9 = vsel %vm2721_vm13, %v2712_v43, %v2728_v6 }
 0x280   :  { %v2732_v58 = vsel %vm2722_vm15, %v2718_v4, 1326507024  ;;  %vm3563_vm0 = vcmp.lt.s32.totalorder %v3562_v45, 0  ;;  %v2730_v53 = vsel %vm2720_vm14, %v2727_v30, %v2729_v9  ;;  %vm2802_vm1 = vcmp.gt.s32.totalorder %v2801_v13, 0 }
 0x281   :  { %v2733_v5 = vsel %vm2721_vm13, %v2715_v3, %v2732_v58  ;;  %v2654_v0 = vsel %vm3563_vm0, 0, %v3562_v45  ;;  %v6019_v21 = vmul.u32.u64.low %v5990_v47, %v2730_v53  ;;  %v6020_v17 = vmul.u32.u64.high %v5990_v47, %v2730_v53, %v6019_v21 }
 0x282   :  { %v2734_v25 = vsel %vm2720_vm14, %v2731_v18, %v2733_v5  ;;  %v2655_v34 = vsub.s32 32, %v2654_v0  ;;  %v2656_v24 = vshll.u32 %v5988_v29, %v2654_v0  ;;  %v2659_v26 = vsub.s32 4294967266, %v2654_v0 }
 0x283   :  { %v2726_v10 = vsel %vm2720_vm14, %v2723_v33, %v2725_v59  ;;  %vm2571_vm2 = vweird.f32 %v5687_v46  ;;  %v6027_v50 = vmul.u32.u64.low %v5990_v47, %v2734_v25  ;;  %v6028_v57 = vmul.u32.u64.high %v5990_v47, %v2734_v25, %v6027_v50 }
 0x284   :  { %v2799_v27 = vor.u32 8388608, %v2798_v16  ;;  %v2803_v7 = vsel %vm2802_vm1, %v2801_v13, 0  ;;  %v2657_v63 = vshrl.u32 %v5974_v32, %v2655_v34  ;;  %v2660_v37 = vadd.s32 127, %v2659_v26 }
 0x285   :  { %v6034_v2 = vsel %vm2585_vm12, %v2669_v15, %v5976_v12  ;;  %v2805_v29 = vand.u32 31, %v2803_v7  ;;  %vm2574_vm3 = vcmp.lt.s32.totalorder %v5970_v31, 2  ;;  %vm6039_vm4 = vcmp.le.f32.partialorder %v2583_v56, 0.7853982 }
 0x286   :  { %v2742_v11 = vmul.u32 %v5990_v47, %v2726_v10  ;;  %v2745_v35 = vadd.s32 1, %v6020_v17  ;;  %vm2575_vm5 = vcmp.eq.s32.totalorder %v5970_v31, 0  ;;  %v2658_v32 = vor.u32 %v2657_v63, %v2656_v24 }
 0x287   :  { %v2661_v54 = vshll.u32 %v2660_v37, 23  ;;  %v2806_v62 = vsub.s32 32, %v2805_v29  ;;  %vm2578_vm6 = vcmp.eq.s32.totalorder %v5970_v31, 2  ;;  %v2672_v12 = vsel %vm6039_vm4, 0, %v6034_v2 }
 0x288   :  { %vm2744_vm7 = vc.u32 %v6028_v57, %v6019_v21  ;;  %v6052_v56 = vshll.u32 %v2799_v27, 8  ;;  %v3823_v23 = vpop.eup %3822  ;;  %v2665_v48 = vcvt.s32.f32 %v2658_v32  ;;  %v2808_v39 = vshll.u32 %v3905_v36, %v2805_v29 }
 0x289   :  { %v2662_v47 = vor.u32 4788187, %v2661_v54  ;;  %v2746_v43 = vsel %vm2744_vm7, %v2745_v35, %v6020_v17  ;;  %v3825_v61 = vpop.eup %3824  ;;  %v2579_v8 = vxor.u32 2147483648, %v3823_v23  ;;  %v2811_v3 = vshll.u32 %v3906_v38, %v2805_v29 }
 0x28a   :  { %v2747_v22 = vadd.s32 %v2746_v43, %v2742_v11  ;;  %v2814_v19 = vshll.u32 %v3907_v40, %v2805_v29  ;;  %v2576_v4 = vxor.u32 2147483648, %v3825_v61  ;;  %v2809_v28 = vshrl.u32 %v3906_v38, %v2806_v62 }
 0x28b   :  { %v2663_v16 = vand.u32 2147483647, %v2662_v47  ;;  %v2812_v13 = vshrl.u32 %v3907_v40, %v2806_v62  ;;  %v2580_v15 = vsel %vm2578_vm6, %v2579_v8, %v3825_v61  ;;  %v2815_v45 = vshrl.u32 %v3908_v42, %v2806_v62  ;;  %v51_v61 = vld [vmem:[#allocation2 + $0xe0] sm:$0xff]  ;;  %v52_v8 = vld [vmem:[#allocation2 + $0xe8] sm:$0xff] }
 0x28c   :  { %v2748_v30 = vadd.s32 536870912, %v2747_v22  ;;  %v2817_v51 = vshll.u32 %v3908_v42, %v2805_v29  ;;  %v2577_v6 = vsel %vm2575_vm5, %v3823_v23, %v2576_v4  ;;  %v2804_v33 = vshrl.u32 %v2803_v7, 5 }
 0x28d   :  { %v2666_v18 = vmul.f32 %v2665_v48, %v2663_v16  ;;  %v2818_v59 = vshrl.u32 %v3909_v44, %v2806_v62  ;;  %v2581_v9 = vsel %vm2574_vm3, %v2577_v6, %v2580_v15  ;;  %v2820_v53 = vshll.u32 %v3909_v44, %v2805_v29  ;;  %v53_v16 = vld [vmem:[#allocation2 + $0xf0] sm:$0xff] }
 0x28e   :  { %v2749_v58 = vshrl.u32 %v2748_v30, 30  ;;  %v2821_v5 = vshrl.u32 %v3910_v52, %v2806_v62  ;;  %v2582_v0 = vsel %vm2571_vm2, nan, %v2581_v9  ;;  %v2807_v17 = vshrl.u32 %v3905_v36, %v2806_v62 }
 0x28f   :  { %v2667_v25 = vxor.u32 2147483648, %v2666_v18  ;;  %v2810_v34 = vor.u32 %v2809_v28, %v2808_v39  ;;  %v2813_v26 = vor.u32 %v2812_v13, %v2811_v3  ;;  %v2816_v10 = vor.u32 %v2815_v45, %v2814_v19  ;;  %3438 = vst [vmem:[#allocation5 + $0xb8] sm:$0xff] %v2582_v0 }
 0x290   :  { %v2750_v24 = vshll.u32 %v2749_v58, 30  ;;  %v2819_v50 = vor.u32 %v2818_v59, %v2817_v51  ;;  %v2822_v27 = vor.u32 %v2821_v5, %v2820_v53  ;;  %vm2823_vm8 = vcmp.lt.s32.totalorder %v2804_v33, 1 }
 0x291   :  { %v2668_v31 = vsel %vm2585_vm12, %v2667_v25, %v2666_v18  ;;  %vm2826_vm11 = vcmp.lt.s32.totalorder %v2804_v33, 4  ;;  %v2898_v37 = vand.u32 2139095040, %v5847_v20  ;;  %v2773_v29 = vsub.s32 4, %v2749_v58 }
 0x292   :  { %v2671_v46 = vsel %vm6039_vm4, %v5710_v14, %v2668_v31  ;;  %v6079_v7 = vsub.s32 %v2747_v22, %v2750_v24  ;;  %v2828_v63 = vsel %vm2826_vm11, %v2816_v10, 2102212464  ;;  %vm2824_vm9 = vcmp.lt.s32.totalorder %v2804_v33, 2 }
 0x293   :  { %3826 = vcosq.f32 %v2671_v46  ;;  %vm2825_vm10 = vcmp.lt.s32.totalorder %v2804_v33, 3  ;;  %v2827_v35 = vsel %vm2823_vm8, %v2807_v17, %v2810_v34  ;;  %v2831_v32 = vsel %vm2823_vm8, %v2810_v34, %v2813_v26 }
 0x294   :  { %3828 = vsinq.f32 %v2671_v46  ;;  %v2753_v11 = vsub.s32 0, %v6079_v7  ;;  %v2829_v54 = vsel %vm2825_vm10, %v2813_v26, %v2828_v63  ;;  %v2832_v62 = vsel %vm2826_vm11, %v2819_v50, 920167782 }
 0x295   :  { %v2835_v23 = vsel %vm2823_vm8, %v2813_v26, %v2816_v10  ;;  %v2836_v47 = vsel %vm2826_vm11, %v2822_v27, 1326507024  ;;  %vm2689_vm12 = vcmp.lt.s32.totalorder %v5764_v1, 0  ;;  %v2833_v43 = vsel %vm2825_vm10, %v2816_v10, %v2832_v62 }
 0x296   :  { %v3565_v48 = vmin.u32 %v2753_v11, %v6079_v7  ;;  %v2837_v39 = vsel %vm2825_vm10, %v2819_v50, %v2836_v47  ;;  %v2676_v22 = vadd.s32 3, %v2672_v12  ;;  %v2834_v3 = vsel %vm2824_vm9, %v2831_v32, %v2833_v43 }
 0x297   :  { %v2838_v19 = vsel %vm2824_vm9, %v2835_v23, %v2837_v39  ;;  %v2899_v4 = vshrl.u32 %v2898_v37, 23  ;;  %v2774_v13 = vsel %vm2689_vm12, %v2773_v29, %v2749_v58  ;;  %v2830_v15 = vsel %vm2824_vm9, %v2827_v35, %v2829_v54 }
 0x298   :  { %v2755_v28 = vclz %v3565_v48  ;;  %v6101_v30 = vmul.u32.u64.low %v6052_v56, %v2838_v19  ;;  %v6102_v45 = vmul.u32.u64.high %v6052_v56, %v2838_v19, %v6101_v30  ;;  %v6109_v12 = vmul.f32 30.0, %v51_v61 }
 0x299   :  { %v6105_v49 = vmul.u32.u64.low %v6052_v56, %v2834_v3  ;;  %v6106_v2 = vmul.u32.u64.high %v6052_v56, %v2834_v3, %v6105_v49  ;;  %v6111_v51 = vmul.f32 30.0, %v52_v8  ;;  %v3572_v18 = vadd.s32 4294967169, %v2899_v4 }
 0x29a   :  { %v3566_v6 = vadd.s32 4294967294, %v2755_v28  ;;  %v6113_v59 = vmul.f32 30.0, %v53_v16  ;;  %v2677_v9 = vand.u32 3, %v2676_v22  ;;  %vm6117_vm13 = vcmp.le.f32.partialorder %v2687_v60, 0.7853982 }
 0x29b   :  { %v2743_v58 = vadd.s32 %v6019_v21, %v6028_v57  ;;  %v2776_v53 = vsel %vm6117_vm13, 0, %v2774_v13  ;;  %v2846_v5 = vmul.u32 %v6052_v56, %v2830_v15  ;;  %v2905_v0 = vadd.s32 1, %v3572_v18 }
 0x29c   :  { %vm3567_vm14 = vcmp.lt.s32.totalorder %v3566_v6, 0  ;;  %vm2675_vm15 = vweird.f32 %v5710_v14  ;;  %vm2848_vm0 = vc.u32 %v6102_v45, %v6105_v49  ;;  %v2849_v60 = vadd.s32 1, %v6106_v2 }
 0x29d   :  { %v2758_v25 = vsel %vm3567_vm14, 0, %v3566_v6  ;;  %vm2906_vm1 = vcmp.gt.s32.totalorder %v2905_v0, 0  ;;  %v2780_v21 = vadd.s32 3, %v2776_v53  ;;  %v2895_v26 = vand.u32 2147483647, %v5847_v20 }
 0x29e   :  { %v2759_v17 = vsub.s32 32, %v2758_v25  ;;  %v2760_v34 = vshll.u32 %v6079_v7, %v2758_v25  ;;  %v2763_v24 = vsub.s32 4294967266, %v2758_v25  ;;  %v2850_v57 = vsel %vm2848_vm0, %v2849_v60, %v6106_v2 }
 0x29f   :  { %v2907_v56 = vsel %vm2906_vm1, %v2905_v0, 0  ;;  %vm2682_vm2 = vcmp.eq.s32.totalorder %v2677_v9, 2  ;;  %v2851_v27 = vadd.s32 %v2850_v57, %v2846_v5  ;;  %vm2678_vm3 = vcmp.lt.s32.totalorder %v2677_v9, 2 }
 0x2a0   :  { %v3827_v10 = vpop.eup %3826  ;;  %v2761_v50 = vshrl.u32 %v2743_v58, %v2759_v17  ;;  %v2764_v31 = vadd.s32 127, %v2763_v24  ;;  %vm2679_vm4 = vcmp.eq.s32.totalorder %v2677_v9, 0  ;;  %v2909_v37 = vand.u32 31, %v2907_v56 }
 0x2a1   :  { %v3829_v46 = vpop.eup %3828  ;;  %v2683_v63 = vxor.u32 2147483648, %v3827_v10  ;;  %v2852_v35 = vadd.s32 536870912, %v2851_v27  ;;  %v6133_v54 = vand.u32 3, %v2780_v21  ;;  %v2902_v62 = vand.u32 8388607, %v2895_v26 }
 0x2a2   :  { %v2680_v29 = vxor.u32 2147483648, %v3829_v46  ;;  %v2762_v7 = vor.u32 %v2761_v50, %v2760_v34  ;;  %v2765_v11 = vshll.u32 %v2764_v31, 23  ;;  %v2910_v23 = vsub.s32 32, %v2909_v37 }
 0x2a3   :  { %v2684_v32 = vsel %vm2682_vm2, %v2683_v63, %v3829_v46  ;;  %v6137_v39 = vshrl.u32 %v2852_v35, 30  ;;  %v2912_v8 = vshll.u32 %v3905_v36, %v2909_v37  ;;  %v2915_v3 = vshll.u32 %v3906_v38, %v2909_v37 }
 0x2a4   :  { %v2681_v47 = vsel %vm2679_vm4, %v3827_v10, %v2680_v29  ;;  %v2766_v48 = vor.u32 4788187, %v2765_v11  ;;  %v2769_v43 = vcvt.s32.f32 %v2762_v7  ;;  %v2913_v22 = vshrl.u32 %v3906_v38, %v2910_v23 }
 0x2a5   :  { %v2685_v61 = vsel %vm2678_vm3, %v2681_v47, %v2684_v32  ;;  %v2854_v16 = vshll.u32 %v6137_v39, 30  ;;  %v2916_v28 = vshrl.u32 %v3907_v40, %v2910_v23  ;;  %v2903_v13 = vor.u32 8388608, %v2902_v62 }
 0x2a6   :  { %v2686_v19 = vsel %vm2675_vm15, nan, %v2685_v61  ;;  %v2767_v4 = vand.u32 2147483647, %v2766_v48  ;;  %v2908_v15 = vshrl.u32 %v2907_v56, 5  ;;  %v2918_v30 = vshll.u32 %v3907_v40, %v2909_v37 }
 0x2a7   :  { %v3002_v2 = vand.u32 2139095040, %v6109_v12  ;;  %3439 = vst [vmem:[#allocation5 + $0xc0] sm:$0xff] %v2686_v19  ;;  %v6149_v18 = vsub.s32 %v2851_v27, %v2854_v16  ;;  %v2919_v9 = vshrl.u32 %v3908_v42, %v2910_v23  ;;  %v2921_v14 = vshll.u32 %v3908_v42, %v2909_v37 }
 0x2a8   :  { %v2770_v6 = vmul.f32 %v2769_v43, %v2767_v4  ;;  %v2914_v58 = vor.u32 %v2913_v22, %v2912_v8  ;;  %v2922_v53 = vshrl.u32 %v3909_v44, %v2910_v23  ;;  %v2924_v5 = vshll.u32 %v3909_v44, %v2909_v37 }
 0x2a9   :  { %v2999_v0 = vand.u32 2147483647, %v6109_v12  ;;  %v2857_v60 = vsub.s32 0, %v6149_v18  ;;  %v2917_v17 = vor.u32 %v2916_v28, %v2915_v3  ;;  %v2925_v34 = vshrl.u32 %v3910_v52, %v2910_v23 }
 0x2aa   :  { %v2771_v25 = vxor.u32 2147483648, %v2770_v6  ;;  %v2911_v24 = vshrl.u32 %v3905_v36, %v2910_v23  ;;  %v2923_v21 = vor.u32 %v2922_v53, %v2921_v14  ;;  %vm2927_vm5 = vcmp.lt.s32.totalorder %v2908_v15, 1 }
 0x2ab   :  { %v6159_v57 = vshll.u32 %v2903_v13, 8  ;;  %v3569_v10 = vmin.u32 %v2857_v60, %v6149_v18  ;;  %v2920_v50 = vor.u32 %v2919_v9, %v2918_v30  ;;  %v3003_v31 = vshrl.u32 %v3002_v2, 23 }
 0x2ac   :  { %v2772_v56 = vsel %vm2689_vm12, %v2771_v25, %v2770_v6  ;;  %v2926_v46 = vor.u32 %v2925_v34, %v2924_v5  ;;  %vm2929_vm6 = vcmp.lt.s32.totalorder %v2908_v15, 3  ;;  %vm2930_vm7 = vcmp.lt.s32.totalorder %v2908_v15, 4 }
 0x2ad   :  { %v2775_v27 = vsel %vm6117_vm13, %v5764_v1, %v2772_v56  ;;  %vm2793_vm8 = vcmp.lt.s32.totalorder %v5845_v55, 0  ;;  %v2859_v63 = vclz %v3569_v10  ;;  %vm2928_vm11 = vcmp.lt.s32.totalorder %v2908_v15, 2 }
 0x2ae   :  { %3830 = vcosq.f32 %v2775_v27  ;;  %v2935_v37 = vsel %vm2927_vm5, %v2914_v58, %v2917_v17  ;;  %v2931_v29 = vsel %vm2927_vm5, %v2911_v24, %v2914_v58  ;;  %v2932_v7 = vsel %vm2930_vm7, %v2920_v50, 2102212464 }
 0x2af   :  { %3832 = vsinq.f32 %v2775_v27  ;;  %v2936_v11 = vsel %vm2930_vm7, %v2923_v21, 920167782  ;;  %v3570_v35 = vadd.s32 4294967294, %v2859_v63  ;;  %v2933_v33 = vsel %vm2929_vm6, %v2917_v17, %v2932_v7 }
 0x2b0   :  { %v2937_v32 = vsel %vm2929_vm6, %v2920_v50, %v2936_v11  ;;  %v2939_v62 = vsel %vm2927_vm5, %v2917_v17, %v2920_v50  ;;  %v2847_v23 = vadd.s32 %v6105_v49, %v6102_v45  ;;  %v2940_v48 = vsel %vm2930_vm7, %v2926_v46, 1326507024 }
 0x2b1   :  { %v2938_v47 = vsel %vm2928_vm11, %v2935_v37, %v2937_v32  ;;  %v3576_v43 = vadd.s32 4294967169, %v3003_v31  ;;  %vm3571_vm9 = vcmp.lt.s32.totalorder %v3570_v35, 0  ;;  %v2941_v61 = vsel %vm2929_vm6, %v2923_v21, %v2940_v48 }
 0x2b2   :  { %v6181_v8 = vmul.u32.u64.low %v6159_v57, %v2938_v47  ;;  %v6182_v22 = vmul.u32.u64.high %v6159_v57, %v2938_v47, %v6181_v8  ;;  %v2862_v3 = vsel %vm3571_vm9, 0, %v3570_v35  ;;  %v2877_v19 = vsub.s32 4, %v6137_v39 }
 0x2b3   :  { %v2934_v4 = vsel %vm2928_vm11, %v2931_v29, %v2933_v33  ;;  %v2942_v45 = vsel %vm2928_vm11, %v2939_v62, %v2941_v61  ;;  %v2863_v49 = vsub.s32 32, %v2862_v3  ;;  %v2864_v16 = vshll.u32 %v6149_v18, %v2862_v3 }
 0x2b4   :  { %v2867_v28 = vsub.s32 4294967266, %v2862_v3  ;;  %v3009_v13 = vadd.s32 1, %v3576_v43  ;;  %vm2782_vm10 = vcmp.lt.s32.totalorder %v6133_v54, 2  ;;  %vm6192_vm12 = vcmp.le.f32.partialorder %v2791_v41, 0.7853982 }
 0x2b5   :  { %v6197_v2 = vmul.u32.u64.low %v6159_v57, %v2942_v45  ;;  %v6198_v6 = vmul.u32.u64.high %v6159_v57, %v2942_v45, %v6197_v2  ;;  %vm2779_vm13 = vweird.f32 %v5764_v1  ;;  %v2865_v15 = vshrl.u32 %v2847_v23, %v2863_v49 }
 0x2b6   :  { %v2868_v9 = vadd.s32 127, %v2867_v28  ;;  %v2953_v18 = vadd.s32 1, %v6182_v22  ;;  %vm3010_vm14 = vcmp.gt.s32.totalorder %v3009_v13, 0  ;;  %v2878_v14 = vsel %vm2793_vm8, %v2877_v19, %v6137_v39 }
 0x2b7   :  { %v2950_v41 = vmul.u32 %v6159_v57, %v2934_v4  ;;  %v6208_v58 = vand.u32 8388607, %v2999_v0  ;;  %v3011_v53 = vsel %vm3010_vm14, %v3009_v13, 0  ;;  %v2866_v5 = vor.u32 %v2865_v15, %v2864_v16 }
 0x2b8   :  { %v2869_v25 = vshll.u32 %v2868_v9, 23  ;;  %v3013_v60 = vand.u32 31, %v3011_v53  ;;  %v3106_v17 = vand.u32 2139095040, %v6111_v51  ;;  %vm2783_vm15 = vcmp.eq.s32.totalorder %v6133_v54, 0 }
 0x2b9   :  { %vm2786_vm0 = vcmp.eq.s32.totalorder %v6133_v54, 2  ;;  %vm2952_vm1 = vc.u32 %v6198_v6, %v6181_v8  ;;  %v3103_v39 = vand.u32 2147483647, %v6111_v51  ;;  %v2873_v24 = vcvt.s32.f32 %v2866_v5 }
 0x2ba   :  { %v2870_v34 = vor.u32 4788187, %v2869_v25  ;;  %v2954_v21 = vsel %vm2952_vm1, %v2953_v18, %v6182_v22  ;;  %v3014_v57 = vsub.s32 32, %v3013_v60  ;;  %v2880_v10 = vsel %vm6192_vm12, 0, %v2878_v14  ;;  %v54_v25 = vld [vmem:[#allocation2 + $0xf8] sm:$0xff] }
 0x2bb   :  { %v3831_v56 = vpop.eup %3830  ;;  %v2955_v50 = vadd.s32 %v2954_v21, %v2950_v41  ;;  %v3007_v31 = vor.u32 8388608, %v6208_v58  ;;  %v6220_v27 = vshrl.u32 %v3011_v53, 5  ;;  %v3016_v29 = vshll.u32 %v3905_v36, %v3013_v60 }
 0x2bc   :  { %v3833_v46 = vpop.eup %3832  ;;  %v2787_v63 = vxor.u32 2147483648, %v3831_v56  ;;  %v2871_v37 = vand.u32 2147483647, %v2870_v34  ;;  %v3107_v7 = vshrl.u32 %v3106_v17, 23  ;;  %v3017_v33 = vshrl.u32 %v3906_v38, %v3014_v57 }
 0x2bd   :  { %v2784_v11 = vxor.u32 2147483648, %v3833_v46  ;;  %v2956_v35 = vadd.s32 536870912, %v2955_v50  ;;  %v3019_v32 = vshll.u32 %v3906_v38, %v3013_v60  ;;  %v3020_v47 = vshrl.u32 %v3907_v40, %v3014_v57 }
 0x2be   :  { %v2788_v62 = vsel %vm2786_vm0, %v2787_v63, %v3833_v46  ;;  %v2874_v23 = vmul.f32 %v2873_v24, %v2871_v37  ;;  %v3025_v48 = vshll.u32 %v3908_v42, %v3013_v60  ;;  %v3022_v22 = vshll.u32 %v3907_v40, %v3013_v60 }
 0x2bf   :  { %v2785_v43 = vsel %vm2783_vm15, %v3831_v56, %v2784_v11  ;;  %v6231_v61 = vshrl.u32 %v2956_v35, 30  ;;  %v3023_v3 = vshrl.u32 %v3908_v42, %v3014_v57  ;;  %v3026_v45 = vshrl.u32 %v3909_v44, %v3014_v57 }
 0x2c0   :  { %v2789_v19 = vsel %vm2782_vm10, %v2785_v43, %v2788_v62  ;;  %v2875_v4 = vxor.u32 2147483648, %v2874_v23  ;;  %v3028_v49 = vshll.u32 %v3909_v44, %v3013_v60  ;;  %v3015_v13 = vshrl.u32 %v3905_v36, %v3014_v57 }
 0x2c1   :  { %v2790_v16 = vsel %vm2779_vm13, nan, %v2789_v19  ;;  %v2958_v28 = vshll.u32 %v6231_v61, 30  ;;  %v3029_v2 = vshrl.u32 %v3910_v52, %v3014_v57  ;;  %v3018_v9 = vor.u32 %v3017_v33, %v3016_v29 }
 0x2c2   :  { %v2876_v15 = vsel %vm2793_vm8, %v2875_v4, %v2874_v23  ;;  %v3021_v54 = vor.u32 %v3020_v47, %v3019_v32  ;;  %v3027_v18 = vor.u32 %v3026_v45, %v3025_v48  ;;  %3440 = vst [vmem:[#allocation5 + $0xc8] sm:$0xff] %v2790_v16  ;;  %v3024_v1 = vor.u32 %v3023_v3, %v3022_v22 }
 0x2c3   :  { %v2879_v14 = vsel %vm6192_vm12, %v5845_v55, %v2876_v15  ;;  %v6249_v41 = vsub.s32 %v2955_v50, %v2958_v28  ;;  %vm3031_vm2 = vcmp.lt.s32.totalorder %v6220_v27, 1  ;;  %v3030_v58 = vor.u32 %v3029_v2, %v3028_v49 }
 0x2c4   :  { %3834 = vcosq.f32 %v2879_v14  ;;  %vm3033_vm3 = vcmp.lt.s32.totalorder %v6220_v27, 3  ;;  %vm3034_vm4 = vcmp.lt.s32.totalorder %v6220_v27, 4  ;;  %v2884_v53 = vadd.s32 3, %v2880_v10 }
 0x2c5   :  { %3836 = vsinq.f32 %v2879_v14  ;;  %v2961_v5 = vsub.s32 0, %v6249_v41  ;;  %vm3032_vm5 = vcmp.lt.s32.totalorder %v6220_v27, 2  ;;  %v3036_v30 = vsel %vm3034_vm4, %v3024_v1, 2102212464 }
 0x2c6   :  { %v3039_v60 = vsel %vm3031_vm2, %v3018_v9, %v3021_v54  ;;  %v3040_v17 = vsel %vm3034_vm4, %v3027_v18, 920167782  ;;  %v3047_v34 = vshll.u32 %v3007_v31, 8  ;;  %v3035_v21 = vsel %vm3031_vm2, %v3015_v13, %v3018_v9 }
 0x2c7   :  { %v3573_v24 = vmin.u32 %v2961_v5, %v6249_v41  ;;  %v3041_v57 = vsel %vm3033_vm3, %v3024_v1, %v3040_v17  ;;  %v3043_v56 = vsel %vm3031_vm2, %v3021_v54, %v3024_v1  ;;  %v3037_v10 = vsel %vm3033_vm3, %v3021_v54, %v3036_v30 }
 0x2c8   :  { %v3042_v50 = vsel %vm3032_vm5, %v3039_v60, %v3041_v57  ;;  %v3044_v31 = vsel %vm3034_vm4, %v3030_v58, 1326507024  ;;  %v3580_v46 = vadd.s32 4294967169, %v3107_v7  ;;  %v6275_v63 = vmul.f32 30.0, %v54_v25 }
 0x2c9   :  { %vm2897_vm6 = vcmp.lt.s32.totalorder %v5847_v20, 0  ;;  %v2963_v37 = vclz %v3573_v24  ;;  %v3110_v29 = vand.u32 8388607, %v3103_v39  ;;  %v2981_v11 = vsub.s32 4, %v6231_v61 }
 0x2ca   :  { %v3045_v35 = vsel %vm3033_vm3, %v3027_v18, %v3044_v31  ;;  %v6283_v33 = vmul.u32.u64.low %v3047_v34, %v3042_v50  ;;  %v6284_v32 = vmul.u32.u64.high %v3047_v34, %v3042_v50, %v6283_v33  ;;  %v3038_v7 = vsel %vm3032_vm5, %v3035_v21, %v3037_v10 }
 0x2cb   :  { %v3574_v62 = vadd.s32 4294967294, %v2963_v37  ;;  %v3046_v23 = vsel %vm3032_vm5, %v3043_v56, %v3045_v35  ;;  %v3113_v47 = vadd.s32 1, %v3580_v46  ;;  %vm2883_vm7 = vweird.f32 %v5845_v55 }
 0x2cc   :  { %v2885_v48 = vand.u32 3, %v2884_v53  ;;  %vm6294_vm8 = vcmp.le.f32.partialorder %v2895_v26, 0.7853982  ;;  %v6298_v22 = vmul.u32.u64.low %v3047_v34, %v3046_v23  ;;  %v6299_v3 = vmul.u32.u64.high %v3047_v34, %v3046_v23, %v6298_v22 }
 0x2cd   :  { %v2951_v19 = vadd.s32 %v6181_v8, %v6198_v6  ;;  %vm3575_vm11 = vcmp.lt.s32.totalorder %v3574_v62, 0  ;;  %v3111_v4 = vor.u32 8388608, %v3110_v29  ;;  %vm3114_vm9 = vcmp.gt.s32.totalorder %v3113_v47, 0 }
 0x2ce   :  { %v2966_v27 = vsel %vm3575_vm11, 0, %v3574_v62  ;;  %v3054_v45 = vmul.u32 %v3047_v34, %v3038_v7  ;;  %v3057_v49 = vadd.s32 1, %v6284_v32  ;;  %v3115_v16 = vsel %vm3114_vm9, %v3113_v47, 0 }
 0x2cf   :  { %v2967_v28 = vsub.s32 32, %v2966_v27  ;;  %v2968_v26 = vshll.u32 %v6249_v41, %v2966_v27  ;;  %v2971_v13 = vsub.s32 4294967266, %v2966_v27  ;;  %v6308_v2 = vsel %vm2897_vm6, %v2981_v11, %v6231_v61 }
 0x2d0   :  { %vm2886_vm10 = vcmp.lt.s32.totalorder %v2885_v48, 2  ;;  %vm2887_vm12 = vcmp.eq.s32.totalorder %v2885_v48, 0  ;;  %vm3056_vm13 = vc.u32 %v6299_v3, %v6283_v33  ;;  %v3117_v8 = vand.u32 31, %v3115_v16 }
 0x2d1   :  { %v3835_v6 = vpop.eup %3834  ;;  %vm2890_vm14 = vcmp.eq.s32.totalorder %v2885_v48, 2  ;;  %v2969_v15 = vshrl.u32 %v2951_v19, %v2967_v28  ;;  %v2972_v9 = vadd.s32 127, %v2971_v13  ;;  %v3058_v54 = vsel %vm3056_vm13, %v3057_v49, %v6284_v32 }
 0x2d2   :  { %v3837_v18 = vpop.eup %3836  ;;  %v2891_v14 = vxor.u32 2147483648, %v3835_v6  ;;  %v2984_v41 = vsel %vm6294_vm8, 0, %v6308_v2  ;;  %v3059_v61 = vadd.s32 %v3058_v54, %v3054_v45  ;;  %v3118_v1 = vsub.s32 32, %v3117_v8 }
 0x2d3   :  { %v2888_v58 = vxor.u32 2147483648, %v3837_v18  ;;  %v2970_v53 = vor.u32 %v2969_v15, %v2968_v26  ;;  %v2973_v5 = vshll.u32 %v2972_v9, 23  ;;  %v6316_v25 = vshll.u32 %v3111_v4, 8 }
 0x2d4   :  { %v2892_v30 = vsel %vm2890_vm14, %v2891_v14, %v3837_v18  ;;  %v3060_v60 = vadd.s32 536870912, %v3059_v61  ;;  %v6318_v17 = vshrl.u32 %v3115_v16, 5  ;;  %v3120_v34 = vshll.u32 %v3905_v36, %v3117_v8 }
 0x2d5   :  { %v2889_v24 = vsel %vm2887_vm12, %v3835_v6, %v2888_v58  ;;  %v2974_v21 = vor.u32 4788187, %v2973_v5  ;;  %v2977_v57 = vcvt.s32.f32 %v2970_v53  ;;  %v3123_v56 = vshll.u32 %v3906_v38, %v3117_v8 }
 0x2d6   :  { %v2893_v10 = vsel %vm2886_vm10, %v2889_v24, %v2892_v30  ;;  %v3061_v50 = vshrl.u32 %v3060_v60, 30  ;;  %v3121_v31 = vshrl.u32 %v3906_v38, %v3118_v1  ;;  %v3124_v46 = vshrl.u32 %v3907_v40, %v3118_v1 }
 0x2d7   :  { %v2894_v37 = vsel %vm2883_vm7, nan, %v2893_v10  ;;  %v2975_v29 = vand.u32 2147483647, %v2974_v21  ;;  %v3126_v11 = vshll.u32 %v3907_v40, %v3117_v8  ;;  %v3127_v35 = vshrl.u32 %v3908_v42, %v3118_v1 }
 0x2d8   :  { %v3062_v32 = vshll.u32 %v3061_v50, 30  ;;  %v3129_v62 = vshll.u32 %v3908_v42, %v3117_v8  ;;  %v3130_v7 = vshrl.u32 %v3909_v44, %v3118_v1  ;;  %v3210_v23 = vand.u32 2139095040, %v6113_v59  ;;  %3441 = vst [vmem:[#allocation5 + $0xd0] sm:$0xff] %v2894_v37 }
 0x2d9   :  { %v2978_v47 = vmul.f32 %v2977_v57, %v2975_v29  ;;  %v3119_v48 = vshrl.u32 %v3905_v36, %v3118_v1  ;;  %v3132_v22 = vshll.u32 %v3909_v44, %v3117_v8  ;;  %v3133_v55 = vshrl.u32 %v3910_v52, %v3118_v1 }
 0x2da   :  { %v6336_v19 = vsub.s32 %v3059_v61, %v3062_v32  ;;  %v3122_v4 = vor.u32 %v3121_v31, %v3120_v34  ;;  %v3125_v27 = vor.u32 %v3124_v46, %v3123_v56  ;;  %v3131_v45 = vor.u32 %v3130_v7, %v3129_v62 }
 0x2db   :  { %v2979_v49 = vxor.u32 2147483648, %v2978_v47  ;;  %vm3001_vm15 = vcmp.lt.s32.totalorder %v6109_v12, 0  ;;  %v3128_v16 = vor.u32 %v3127_v35, %v3126_v11  ;;  %vm3135_vm0 = vcmp.lt.s32.totalorder %v6318_v17, 1 }
 0x2dc   :  { %vm3136_vm1 = vcmp.lt.s32.totalorder %v6318_v17, 2  ;;  %v3065_v28 = vsub.s32 0, %v6336_v19  ;;  %v3134_v26 = vor.u32 %v3133_v55, %v3132_v22  ;;  %vm3137_vm2 = vcmp.lt.s32.totalorder %v6318_v17, 3 }
 0x2dd   :  { %vm3138_vm3 = vcmp.lt.s32.totalorder %v6318_v17, 4  ;;  %v2980_v13 = vsel %vm2897_vm6, %v2979_v49, %v2978_v47  ;;  %v3139_v2 = vsel %vm3135_vm0, %v3119_v48, %v3122_v4  ;;  %v3143_v18 = vsel %vm3135_vm0, %v3122_v4, %v3125_v27 }
 0x2de   :  { %v3140_v8 = vsel %vm3138_vm3, %v3128_v16, 2102212464  ;;  %v3144_v6 = vsel %vm3138_vm3, %v3131_v45, 920167782  ;;  %v2983_v15 = vsel %vm6294_vm8, %v5847_v20, %v2980_v13  ;;  %v3577_v9 = vmin.u32 %v3065_v28, %v6336_v19 }
 0x2df   :  { %v3141_v54 = vsel %vm3137_vm2, %v3125_v27, %v3140_v8  ;;  %3838 = vcosq.f32 %v2983_v15  ;;  %v2988_v14 = vadd.s32 3, %v2984_v41  ;;  %v3145_v61 = vsel %vm3137_vm2, %v3128_v16, %v3144_v6 }
 0x2e0   :  { %v3211_v1 = vshrl.u32 %v3210_v23, 23  ;;  %3840 = vsinq.f32 %v2983_v15  ;;  %v3067_v58 = vclz %v3577_v9  ;;  %v3085_v53 = vsub.s32 4, %v3061_v50 }
 0x2e1   :  { %v3147_v43 = vsel %vm3135_vm0, %v3125_v27, %v3128_v16  ;;  %v3142_v5 = vsel %vm3136_vm1, %v3139_v2, %v3141_v54  ;;  %v3146_v30 = vsel %vm3136_vm1, %v3143_v18, %v3145_v61  ;;  %v3148_v60 = vsel %vm3138_vm3, %v3134_v26, 1326507024 }
 0x2e2   :  { %v3207_v41 = vand.u32 2147483647, %v6113_v59  ;;  %v3578_v34 = vadd.s32 4294967294, %v3067_v58  ;;  %v3149_v24 = vsel %vm3137_vm2, %v3131_v45, %v3148_v60  ;;  %v2989_v56 = vand.u32 3, %v2988_v14 }
 0x2e3   :  { %v6374_v21 = vmul.u32.u64.low %v6316_v25, %v3146_v30  ;;  %v6375_v57 = vmul.u32.u64.high %v6316_v25, %v3146_v30, %v6374_v21  ;;  %v3055_v10 = vadd.s32 %v6283_v33, %v6299_v3  ;;  %v3150_v31 = vsel %vm3136_vm1, %v3147_v43, %v3149_v24 }
 0x2e4   :  { %v3584_v46 = vadd.s32 4294967169, %v3211_v1  ;;  %vm3579_vm4 = vcmp.lt.s32.totalorder %v3578_v34, 0  ;;  %v3086_v37 = vsel %vm3001_vm15, %v3085_v53, %v3061_v50  ;;  %v3158_v32 = vmul.u32 %v6316_v25, %v3142_v5 }
 0x2e5   :  { %v6384_v29 = vmul.u32.u64.low %v6316_v25, %v3150_v31  ;;  %v6385_v11 = vmul.u32.u64.high %v6316_v25, %v3150_v31, %v6384_v29  ;;  %v3070_v35 = vsel %vm3579_vm4, 0, %v3578_v34  ;;  %v3214_v62 = vand.u32 8388607, %v3207_v41 }
 0x2e6   :  { %v3217_v7 = vadd.s32 1, %v3584_v46  ;;  %v3071_v33 = vsub.s32 32, %v3070_v35  ;;  %v3072_v3 = vshll.u32 %v6336_v19, %v3070_v35  ;;  %v3075_v17 = vsub.s32 4294967266, %v3070_v35 }
 0x2e7   :  { %v3161_v23 = vadd.s32 1, %v6375_v57  ;;  %vm2987_vm5 = vweird.f32 %v5847_v20  ;;  %vm6395_vm6 = vcmp.le.f32.partialorder %v2999_v0, 0.7853982  ;;  %vm3160_vm8 = vc.u32 %v6385_v11, %v6374_v21 }
 0x2e8   :  { %vm3218_vm7 = vcmp.gt.s32.totalorder %v3217_v7, 0  ;;  %v3073_v25 = vshrl.u32 %v3055_v10, %v3071_v33  ;;  %v3076_v47 = vadd.s32 127, %v3075_v17  ;;  %v3088_v48 = vsel %vm6395_vm6, 0, %v3086_v37 }
 0x2e9   :  { %vm2990_vm11 = vcmp.lt.s32.totalorder %v2989_v56, 2  ;;  %v3162_v22 = vsel %vm3160_vm8, %v3161_v23, %v6375_v57  ;;  %v3215_v55 = vor.u32 8388608, %v3214_v62  ;;  %v3219_v19 = vsel %vm3218_vm7, %v3217_v7, 0 }
 0x2ea   :  { %v3074_v4 = vor.u32 %v3073_v25, %v3072_v3  ;;  %v3077_v27 = vshll.u32 %v3076_v47, 23  ;;  %v3163_v45 = vadd.s32 %v3162_v22, %v3158_v32  ;;  %v3314_v0 = vand.u32 2139095040, %v6275_v63 }
 0x2eb   :  { %vm2991_vm9 = vcmp.eq.s32.totalorder %v2989_v56, 0  ;;  %vm2994_vm10 = vcmp.eq.s32.totalorder %v2989_v56, 2  ;;  %v6404_v49 = vadd.s32 3, %v3088_v48  ;;  %v3221_v16 = vand.u32 31, %v3219_v19 }
 0x2ec   :  { %v3839_v28 = vpop.eup %3838  ;;  %v3078_v26 = vor.u32 4788187, %v3077_v27  ;;  %v3081_v13 = vcvt.s32.f32 %v3074_v4  ;;  %v3164_v2 = vadd.s32 536870912, %v3163_v45  ;;  %v3311_v8 = vand.u32 2147483647, %v6275_v63 }
 0x2ed   :  { %v3841_v6 = vpop.eup %3840  ;;  %v2995_v15 = vxor.u32 2147483648, %v3839_v28  ;;  %v6408_v9 = vadd.s32 %v6374_v21, %v6385_v11  ;;  %v3222_v54 = vsub.s32 32, %v3221_v16  ;;  %v6410_v18 = vshll.u32 %v3215_v55, 8 }
 0x2ee   :  { %v2992_v14 = vxor.u32 2147483648, %v3841_v6  ;;  %v3079_v61 = vand.u32 2147483647, %v3078_v26  ;;  %v6412_v1 = vshrl.u32 %v3164_v2, 30  ;;  %v3315_v58 = vshrl.u32 %v3314_v0, 23 }
 0x2ef   :  { %v2996_v53 = vsel %vm2994_vm10, %v2995_v15, %v3841_v6  ;;  %v3224_v43 = vshll.u32 %v3905_v36, %v3221_v16  ;;  %v3225_v5 = vshrl.u32 %v3906_v38, %v3222_v54  ;;  %v3227_v30 = vshll.u32 %v3906_v38, %v3221_v16 }
 0x2f0   :  { %v2993_v60 = vsel %vm2991_vm9, %v3839_v28, %v2992_v14  ;;  %v3082_v34 = vmul.f32 %v3081_v13, %v3079_v61  ;;  %v3166_v24 = vshll.u32 %v6412_v1, 30  ;;  %v3228_v21 = vshrl.u32 %v3907_v40, %v3222_v54 }
 0x2f1   :  { %v2997_v57 = vsel %vm2990_vm11, %v2993_v60, %v2996_v53  ;;  %v3230_v10 = vshll.u32 %v3907_v40, %v3221_v16  ;;  %v3231_v31 = vshrl.u32 %v3908_v42, %v3222_v54  ;;  %v6426_v46 = vand.u32 8388607, %v3311_v8 }
 0x2f2   :  { %v2998_v37 = vsel %vm2987_vm5, nan, %v2997_v57  ;;  %v3083_v29 = vxor.u32 2147483648, %v3082_v34  ;;  %v6430_v11 = vsub.s32 %v3163_v45, %v3166_v24  ;;  %v3220_v35 = vshrl.u32 %v3219_v19, 5 }
 0x2f3   :  { %v3223_v32 = vshrl.u32 %v3905_v36, %v3222_v54  ;;  %v3226_v62 = vor.u32 %v3225_v5, %v3224_v43  ;;  %v3233_v56 = vshll.u32 %v3908_v42, %v3221_v16  ;;  %v3234_v7 = vshrl.u32 %v3909_v44, %v3222_v54  ;;  %3442 = vst [vmem:[#allocation5 + $0xd8] sm:$0xff] %v2998_v37 }
 0x2f4   :  { %v3084_v33 = vsel %vm3001_vm15, %v3083_v29, %v3082_v34  ;;  %v3169_v3 = vsub.s32 0, %v6430_v11  ;;  %v3229_v17 = vor.u32 %v3228_v21, %v3227_v30  ;;  %v3236_v20 = vshll.u32 %v3909_v44, %v3221_v16 }
 0x2f5   :  { %v3087_v23 = vsel %vm6395_vm6, %v6109_v12, %v3084_v33  ;;  %v3232_v25 = vor.u32 %v3231_v31, %v3230_v10  ;;  %v3235_v47 = vor.u32 %v3234_v7, %v3233_v56  ;;  %v3237_v48 = vshrl.u32 %v3910_v52, %v3222_v54 }
 0x2f6   :  { %3842 = vcosq.f32 %v3087_v23  ;;  %v3581_v22 = vmin.u32 %v3169_v3, %v6430_v11  ;;  %vm3239_vm12 = vcmp.lt.s32.totalorder %v3220_v35, 1  ;;  %v3588_v55 = vadd.s32 4294967169, %v3315_v58 }
 0x2f7   :  { %3844 = vsinq.f32 %v3087_v23  ;;  %v3238_v19 = vor.u32 %v3237_v48, %v3236_v20  ;;  %vm3241_vm13 = vcmp.lt.s32.totalorder %v3220_v35, 3  ;;  %vm3242_vm14 = vcmp.lt.s32.totalorder %v3220_v35, 4 }
 0x2f8   :  { %v3171_v4 = vclz %v3581_v22  ;;  %v3189_v27 = vsub.s32 4, %v6412_v1  ;;  %vm3240_vm15 = vcmp.lt.s32.totalorder %v3220_v35, 2  ;;  %v3243_v45 = vsel %vm3239_vm12, %v3223_v32, %v3226_v62 }
 0x2f9   :  { %v3244_v50 = vsel %vm3242_vm14, %v3232_v25, 2102212464  ;;  %v3247_v0 = vsel %vm3239_vm12, %v3226_v62, %v3229_v17  ;;  %v3248_v16 = vsel %vm3242_vm14, %v3235_v47, 920167782  ;;  %v3251_v28 = vsel %vm3239_vm12, %v3229_v17, %v3232_v25 }
 0x2fa   :  { %v3582_v26 = vadd.s32 4294967294, %v3171_v4  ;;  %v3245_v13 = vsel %vm3241_vm13, %v3229_v17, %v3244_v50  ;;  %v3249_v2 = vsel %vm3241_vm13, %v3232_v25, %v3248_v16  ;;  %v3252_v6 = vsel %vm3242_vm14, %v3238_v19, 1326507024 }
 0x2fb   :  { %v3246_v15 = vsel %vm3240_vm15, %v3243_v45, %v3245_v13  ;;  %v3250_v54 = vsel %vm3240_vm15, %v3247_v0, %v3249_v2  ;;  %v3253_v14 = vsel %vm3241_vm13, %v3235_v47, %v3252_v6  ;;  %v3321_v61 = vadd.s32 1, %v3588_v55 }
 0x2fc   :  { %vm3583_vm0 = vcmp.lt.s32.totalorder %v3582_v26, 0  ;;  %v3254_v58 = vsel %vm3240_vm15, %v3251_v28, %v3253_v14  ;;  %v6449_v53 = vmul.u32.u64.low %v6410_v18, %v3250_v54  ;;  %v6450_v43 = vmul.u32.u64.high %v6410_v18, %v3250_v54, %v6449_v53 }
 0x2fd   :  { %v3093_v5 = vand.u32 3, %v6404_v49  ;;  %v3174_v30 = vsel %vm3583_vm0, 0, %v3582_v26  ;;  %v6455_v60 = vmul.u32.u64.low %v6410_v18, %v3254_v58  ;;  %v6456_v34 = vmul.u32.u64.high %v6410_v18, %v3254_v58, %v6455_v60 }
 0x2fe   :  { %vm3091_vm1 = vweird.f32 %v6109_v12  ;;  %v3175_v24 = vsub.s32 32, %v3174_v30  ;;  %v3176_v21 = vshll.u32 %v6430_v11, %v3174_v30  ;;  %v3179_v57 = vsub.s32 4294967266, %v3174_v30 }
 0x2ff   :  { %vm3322_vm2 = vcmp.gt.s32.totalorder %v3321_v61, 0  ;;  %vm3105_vm3 = vcmp.lt.s32.totalorder %v6111_v51, 0  ;;  %v3262_v10 = vmul.u32 %v6410_v18, %v3246_v15  ;;  %v3319_v31 = vor.u32 8388608, %v6426_v46 }
 0x300   :  { %v3323_v37 = vsel %vm3322_vm2, %v3321_v61, 0  ;;  %v3177_v49 = vshrl.u32 %v6408_v9, %v3175_v24  ;;  %v3180_v29 = vadd.s32 127, %v3179_v57  ;;  %v6467_v35 = vsel %vm3105_vm3, %v3189_v27, %v6412_v1 }
 0x301   :  { %v3265_v32 = vadd.s32 1, %v6450_v43  ;;  %vm3094_vm4 = vcmp.lt.s32.totalorder %v3093_v5, 2  ;;  %vm6472_vm5 = vcmp.le.f32.partialorder %v3103_v39, 0.7853982  ;;  %vm3264_vm6 = vc.u32 %v6456_v34, %v6449_v53 }
 0x302   :  { %v3325_v18 = vand.u32 31, %v3323_v37  ;;  %vm3095_vm7 = vcmp.eq.s32.totalorder %v3093_v5, 0  ;;  %v3178_v9 = vor.u32 %v3177_v49, %v3176_v21  ;;  %v3181_v46 = vshll.u32 %v3180_v29, 23 }
 0x303   :  { %v3266_v62 = vsel %vm3264_vm6, %v3265_v32, %v6450_v43  ;;  %v3843_v1 = vpop.eup %3842  ;;  %vm3098_vm8 = vcmp.eq.s32.totalorder %v3093_v5, 2  ;;  %v3192_v56 = vsel %vm6472_vm5, 0, %v6467_v35  ;;  %v6482_v23 = vshll.u32 %v3319_v31, 8 }
 0x304   :  { %v3267_v7 = vadd.s32 %v3266_v62, %v3262_v10  ;;  %v3326_v39 = vsub.s32 32, %v3325_v18  ;;  %v3845_v33 = vpop.eup %3844  ;;  %v3099_v3 = vxor.u32 2147483648, %v3843_v1  ;;  %v3182_v17 = vor.u32 4788187, %v3181_v46 }
 0x305   :  { %v3185_v20 = vcvt.s32.f32 %v3178_v9  ;;  %v3096_v25 = vxor.u32 2147483648, %v3845_v33  ;;  %v3324_v48 = vshrl.u32 %v3323_v37, 5  ;;  %v3328_v22 = vshll.u32 %v3905_v36, %v3325_v18 }
 0x306   :  { %v3268_v47 = vadd.s32 536870912, %v3267_v7  ;;  %v3100_v55 = vsel %vm3098_vm8, %v3099_v3, %v3845_v33  ;;  %v3183_v19 = vand.u32 2147483647, %v3182_v17  ;;  %v3329_v4 = vshrl.u32 %v3906_v38, %v3326_v39 }
 0x307   :  { %v3331_v27 = vshll.u32 %v3906_v38, %v3325_v18  ;;  %v3097_v45 = vsel %vm3095_vm7, %v3843_v1, %v3096_v25  ;;  %v3332_v0 = vshrl.u32 %v3907_v40, %v3326_v39  ;;  %v3337_v16 = vshll.u32 %v3908_v42, %v3325_v18 }
 0x308   :  { %v6488_v50 = vshrl.u32 %v3268_v47, 30  ;;  %v3101_v28 = vsel %vm3094_vm4, %v3097_v45, %v3100_v55  ;;  %v3186_v26 = vmul.f32 %v3185_v20, %v3183_v19  ;;  %v3334_v13 = vshll.u32 %v3907_v40, %v3325_v18 }
 0x309   :  { %v3335_v2 = vshrl.u32 %v3908_v42, %v3326_v39  ;;  %v3102_v6 = vsel %vm3091_vm1, nan, %v3101_v28  ;;  %v3338_v15 = vshrl.u32 %v3909_v44, %v3326_v39  ;;  %vm3343_vm11 = vcmp.lt.s32.totalorder %v3324_v48, 1 }
 0x30a   :  { %v3270_v38 = vshll.u32 %v6488_v50, 30  ;;  %v3187_v54 = vxor.u32 2147483648, %v3186_v26  ;;  %v3327_v14 = vshrl.u32 %v3905_v36, %v3326_v39  ;;  %v3340_v61 = vshll.u32 %v3909_v44, %v3325_v18  ;;  %3443 = vst [vmem:[#allocation5 + $0xe0] sm:$0xff] %v3102_v6 }
 0x30b   :  { %v3341_v58 = vshrl.u32 %v3910_v52, %v3326_v39  ;;  %v3330_v40 = vor.u32 %v3329_v4, %v3328_v22  ;;  %v3333_v5 = vor.u32 %v3332_v0, %v3331_v27  ;;  %v3339_v42 = vor.u32 %v3338_v15, %v3337_v16 }
 0x30c   :  { %v3271_v43 = vsub.s32 %v3267_v7, %v3270_v38  ;;  %v3188_v12 = vsel %vm3105_vm3, %v3187_v54, %v3186_v26  ;;  %v3336_v30 = vor.u32 %v3335_v2, %v3334_v13  ;;  %vm3346_vm9 = vcmp.lt.s32.totalorder %v3324_v48, 4 }
 0x30d   :  { %v3342_v60 = vor.u32 %v3341_v58, %v3340_v61  ;;  %v3191_v24 = vsel %vm6472_vm5, %v6111_v51, %v3188_v12  ;;  %vm3344_vm10 = vcmp.lt.s32.totalorder %v3324_v48, 2  ;;  %vm3345_vm12 = vcmp.lt.s32.totalorder %v3324_v48, 3 }
 0x30e   :  { %v3273_v36 = vsub.s32 0, %v3271_v43  ;;  %3846 = vcosq.f32 %v3191_v24  ;;  %v3347_v44 = vsel %vm3343_vm11, %v3327_v14, %v3330_v40  ;;  %v3348_v52 = vsel %vm3346_vm9, %v3336_v30, 2102212464 }
 0x30f   :  { %v3352_v21 = vsel %vm3346_vm9, %v3339_v42, 920167782  ;;  %3848 = vsinq.f32 %v3191_v24  ;;  %v3349_v10 = vsel %vm3345_vm12, %v3333_v5, %v3348_v52  ;;  %v3351_v31 = vsel %vm3343_vm11, %v3330_v40, %v3333_v5 }
 0x310   :  { %v3585_v57 = vmin.u32 %v3273_v36, %v3271_v43  ;;  %v3353_v37 = vsel %vm3345_vm12, %v3336_v30, %v3352_v21  ;;  %v3355_v49 = vsel %vm3343_vm11, %v3333_v5, %v3336_v30  ;;  %v3356_v29 = vsel %vm3346_vm9, %v3342_v60, 1326507024 }
 0x311   :  { %v3196_v32 = vadd.s32 3, %v3192_v56  ;;  %v3350_v11 = vsel %vm3344_vm10, %v3347_v44, %v3349_v10  ;;  %v3354_v18 = vsel %vm3344_vm10, %v3351_v31, %v3353_v37  ;;  %v3357_v9 = vsel %vm3345_vm12, %v3339_v42, %v3356_v29 }
 0x312   :  { %v3275_v35 = vclz %v3585_v57  ;;  %v3358_v62 = vsel %vm3344_vm10, %v3355_v49, %v3357_v9  ;;  %v6517_v1 = vmul.u32.u64.low %v6482_v23, %v3354_v18  ;;  %v6518_v7 = vmul.u32.u64.high %v6482_v23, %v3354_v18, %v6517_v1 }
 0x313   :  { %v6521_v39 = vmul.u32.u64.low %v6482_v23, %v3358_v62  ;;  %v6522_v33 = vmul.u32.u64.high %v6482_v23, %v3358_v62, %v6521_v39  ;;  %v3263_v56 = vadd.s32 %v6449_v53, %v6456_v34  ;;  %v3197_v3 = vand.u32 3, %v3196_v32 }
 0x314   :  { %v3586_v46 = vadd.s32 4294967294, %v3275_v35  ;;  %v3366_v20 = vmul.u32 %v6482_v23, %v3350_v11  ;;  %v3369_v22 = vadd.s32 1, %v6518_v7  ;;  %vm3195_vm2 = vweird.f32 %v6111_v51 }
 0x315   :  { %vm3368_vm14 = vc.u32 %v6522_v33, %v6517_v1  ;;  %vm3202_vm15 = vcmp.eq.s32.totalorder %v3197_v3, 2  ;;  %vm3199_vm0 = vcmp.eq.s32.totalorder %v3197_v3, 0  ;;  %vm3198_vm1 = vcmp.lt.s32.totalorder %v3197_v3, 2 }
 0x316   :  { %vm3587_vm13 = vcmp.lt.s32.totalorder %v3586_v46, 0  ;;  %v3370_v4 = vsel %vm3368_vm14, %v3369_v22, %v6518_v7  ;;  %vm3209_vm3 = vcmp.lt.s32.totalorder %v6113_v59, 0  ;;  %vm3208_vm4 = vcmp.le.f32.partialorder %v3207_v41, 0.7853982 }
 0x317   :  { %v3278_v17 = vsel %vm3587_vm13, 0, %v3586_v46  ;;  %v3371_v27 = vadd.s32 %v3370_v4, %v3366_v20  ;;  %v3367_v21 = vadd.s32 %v6517_v1, %v6522_v33  ;;  %vm3299_vm11 = vweird.f32 %v6113_v59 }
 0x318   :  { %v3279_v25 = vsub.s32 32, %v3278_v17  ;;  %v3280_v47 = vshll.u32 %v3271_v43, %v3278_v17  ;;  %v3283_v48 = vsub.s32 4294967266, %v3278_v17  ;;  %v3293_v43 = vsub.s32 4, %v6488_v50 }
 0x319   :  { %v3372_v23 = vadd.s32 536870912, %v3371_v27  ;;  %vm3313_vm9 = vcmp.lt.s32.totalorder %v6275_v63, 0  ;;  %vm3312_vm10 = vcmp.le.f32.partialorder %v3311_v8, 0.7853982 }
 0x31a   :  { %v3281_v55 = vshrl.u32 %v3263_v56, %v3279_v25  ;;  %v3284_v19 = vadd.s32 127, %v3283_v48  ;;  %v3294_v12 = vsel %vm3209_vm3, %v3293_v43, %v6488_v50 }
 0x31b   :  { %v3847_v45 = vpop.eup %3846  ;;  %v3373_v6 = vshrl.u32 %v3372_v23, 30  ;;  %v3296_v36 = vsel %vm3208_vm4, 0, %v3294_v12 }
 0x31c   :  { %v3282_v53 = vor.u32 %v3281_v55, %v3280_v47  ;;  %v3285_v34 = vshll.u32 %v3284_v19, 23  ;;  %v3849_v0 = vpop.eup %3848  ;;  %v3203_v16 = vxor.u32 2147483648, %v3847_v45  ;;  %v3300_v52 = vadd.s32 3, %v3296_v36 }
 0x31d   :  { %v3200_v28 = vxor.u32 2147483648, %v3849_v0  ;;  %v3374_v14 = vshll.u32 %v3373_v6, 30  ;;  %v3397_v3 = vsub.s32 4, %v3373_v6 }
 0x31e   :  { %v3286_v26 = vor.u32 4788187, %v3285_v34  ;;  %v3289_v13 = vcvt.s32.f32 %v3282_v53  ;;  %v3204_v2 = vsel %vm3202_vm15, %v3203_v16, %v3849_v0  ;;  %v3301_v37 = vand.u32 3, %v3300_v52 }
 0x31f   :  { %v3201_v38 = vsel %vm3199_vm0, %v3847_v45, %v3200_v28  ;;  %v3375_v40 = vsub.s32 %v3371_v27, %v3374_v14  ;;  %v3398_v47 = vsel %vm3313_vm9, %v3397_v3, %v3373_v6  ;;  %vm3403_vm15 = vweird.f32 %v6275_v63 }
 0x320   :  { %v3287_v15 = vand.u32 2147483647, %v3286_v26  ;;  %v3205_v54 = vsel %vm3198_vm1, %v3201_v38, %v3204_v2  ;;  %vm3306_vm6 = vcmp.eq.s32.totalorder %v3301_v37, 2  ;;  %vm3303_vm7 = vcmp.eq.s32.totalorder %v3301_v37, 0 }
 0x321   :  { %v3206_v61 = vsel %vm3195_vm2, nan, %v3205_v54  ;;  %v3377_v42 = vsub.s32 0, %v3375_v40  ;;  %vm3302_vm8 = vcmp.lt.s32.totalorder %v3301_v37, 2 }
 0x322   :  { %v3290_v58 = vmul.f32 %v3289_v13, %v3287_v15  ;;  %3444 = vst [vmem:[#allocation5 + $0xe8] sm:$0xff] %v3206_v61 }
 0x323   :  { %v3589_v60 = vmin.u32 %v3377_v42, %v3375_v40 }
 0x324   :  { %v3291_v5 = vxor.u32 2147483648, %v3290_v58 }
 0x325   :  { %v3379_v24 = vclz %v3589_v60 }
 0x326   :  { %v3292_v51 = vsel %vm3209_vm3, %v3291_v5, %v3290_v58 }
 0x327   :  { %v3295_v30 = vsel %vm3208_vm4, %v6113_v59, %v3292_v51  ;;  %v3590_v44 = vadd.s32 4294967294, %v3379_v24  ;;  %v3400_v59 = vsel %vm3312_vm10, 0, %v3398_v47 }
 0x328   :  { %3850 = vcosq.f32 %v3295_v30  ;;  %v3404_v22 = vadd.s32 3, %v3400_v59 }
 0x329   :  { %3852 = vsinq.f32 %v3295_v30  ;;  %vm3591_vm5 = vcmp.lt.s32.totalorder %v3590_v44, 0 }
 0x32a   :  { %v3382_v57 = vsel %vm3591_vm5, 0, %v3590_v44  ;;  %v3405_v55 = vand.u32 3, %v3404_v22 }
 0x32b   :  { %v3383_v10 = vsub.s32 32, %v3382_v57  ;;  %v3384_v41 = vshll.u32 %v3375_v40, %v3382_v57  ;;  %v3387_v31 = vsub.s32 4294967266, %v3382_v57 }
 0x32c   :  { %vm3410_vm12 = vcmp.eq.s32.totalorder %v3405_v55, 2  ;;  %vm3407_vm13 = vcmp.eq.s32.totalorder %v3405_v55, 0  ;;  %vm3406_vm14 = vcmp.lt.s32.totalorder %v3405_v55, 2 }
 0x32d   :  { %v3385_v49 = vshrl.u32 %v3367_v21, %v3383_v10  ;;  %v3388_v29 = vadd.s32 127, %v3387_v31 }
 0x32f   :  { %v3386_v50 = vor.u32 %v3385_v49, %v3384_v41  ;;  %v3389_v35 = vshll.u32 %v3388_v29, 23 }
 0x331   :  { %v3390_v11 = vor.u32 4788187, %v3389_v35  ;;  %v3393_v18 = vcvt.s32.f32 %v3386_v50 }
 0x333   :  { %v3391_v1 = vand.u32 2147483647, %v3390_v11 }
 0x335   :  { %v3851_v32 = vpop.eup %3850  ;;  %v3394_v33 = vmul.f32 %v3393_v18, %v3391_v1 }
 0x336   :  { %v3853_v9 = vpop.eup %3852  ;;  %v3307_v46 = vxor.u32 2147483648, %v3851_v32 }
 0x337   :  { %v3304_v62 = vxor.u32 2147483648, %v3853_v9  ;;  %v3395_v20 = vxor.u32 2147483648, %v3394_v33 }
 0x338   :  { %v3308_v7 = vsel %vm3306_vm6, %v3307_v46, %v3853_v9 }
 0x339   :  { %v3305_v39 = vsel %vm3303_vm7, %v3851_v32, %v3304_v62  ;;  %v3396_v25 = vsel %vm3313_vm9, %v3395_v20, %v3394_v33 }
 0x33a   :  { %v3309_v56 = vsel %vm3302_vm8, %v3305_v39, %v3308_v7  ;;  %v3399_v48 = vsel %vm3312_vm10, %v6275_v63, %v3396_v25 }
 0x33b   :  { %v3310_v17 = vsel %vm3299_vm11, nan, %v3309_v56  ;;  %3854 = vcosq.f32 %v3399_v48 }
 0x33c   :  { %3445 = vst [vmem:[#allocation5 + $0xf0] sm:$0xff] %v3310_v17  ;;  %3856 = vsinq.f32 %v3399_v48 }
 0x348   :  { %v3855_v19 = vpop.eup %3854 }
 0x349   :  { %v3857_v4 = vpop.eup %3856  ;;  %v3411_v27 = vxor.u32 2147483648, %v3855_v19 }
 0x34a   :  { %v3408_v45 = vxor.u32 2147483648, %v3857_v4 }
 0x34b   :  { %v3412_v8 = vsel %vm3410_vm12, %v3411_v27, %v3857_v4 }
 0x34c   :  { %v3409_v53 = vsel %vm3407_vm13, %v3855_v19, %v3408_v45 }
 0x34d   :  { %v3413_v34 = vsel %vm3406_vm14, %v3409_v53, %v3412_v8 }
 0x34e   :  { %v3414_v0 = vsel %vm3403_vm15, nan, %v3413_v34 }
 0x34f   :  { %3446 = vst [vmem:[#allocation5 + $0xf8] sm:$0xff] %v3414_v0 }
 0x350   :  { %3889 = shalt.err (!%p3886_p9)
}
 0x351   :  { %3458 = dma.vmem_to_hbm [thread:$0]  %s3453_s13, 4096, %s6551_s1, [#allocation4], %s3903_s9, %s3903_s9, %s3904_s10  }
 0x352   :  { %3900 = dma.done.wait [#allocation4], 4096  }
 0x353   :  { %3901 = vsyncadd [#allocation4], 4294963200 }
 0x354   :  { %3462 = vsyncpa [#allocation3], 1 }
 0x355   :  { %3463 = vsyncpa [#allocation4], 1 }

</bundles_post_ra>
